<compile_context>
chip_gen: v6e
topology: v6e:2x2x1
jax: 0.10.0
libtpu: 0.0.40
codegen_flags: <defaults>
</compile_context>

<pallas_src>
import functools

import jax
import jax.numpy as jnp
from jax.experimental import pallas as pl
from jax.experimental.pallas import tpu as pltpu

_VMEM_LIMIT = 32 * 1024 * 1024   # comfortably under v7x's 64 MiB physical VMEM per TC


# ----------------------------- Pallas kernel -----------------------------

def _policy_kernel(x_ref, w1_ref, b1_ref, w2d_ref, b2d_ref, o_ref, h_acc):
    """Fused fc1 (bf16 MXU, f32 acc) + bias + ReLU + fc2-diff + 2-class softmax-as-sigmoid."""
    k = pl.program_id(1)

    @pl.when(k == 0)
    def _init():
        h_acc[...] = jnp.zeros_like(h_acc)

    # fc1 partial product over this K tile: bf16 operands, f32 accumulation on the MXU.
    h_acc[...] += jnp.dot(x_ref[...], w1_ref[...], preferred_element_type=jnp.float32)

    @pl.when(k == pl.num_programs(1) - 1)
    def _epilogue():
        h = jnp.maximum(h_acc[...] + b1_ref[...], 0.0)                       # (tm, H) f32
        # w2d/b2d hold the signed fc2 column differences, so d = [l0-l1, l1-l0].
        d = jnp.dot(h, w2d_ref[...], preferred_element_type=jnp.float32) + b2d_ref[...]  # (tm, 2)
        # 2-class softmax == [sigmoid(l0-l1), sigmoid(l1-l0)]; no cross-lane max/sum reduces.
        o_ref[...] = (1.0 / (1.0 + jnp.exp(-d))).astype(o_ref.dtype)


# ----------------------------- wrapper -----------------------------

def _pick_k_tile(k_total, target):
    """Largest multiple of 128 dividing k_total that is <= target; falls back to full K.

    Exact division keeps the K reduction free of padded-garbage accumulation.
    """
    if k_total <= target:
        return k_total
    t = (target // 128) * 128
    while t >= 128:
        if k_total % t == 0:
            return t
        t -= 128
    return k_total


@functools.partial(jax.jit, static_argnames=("block_rows", "block_k"))
def policy_network_forward(x, w1, b1, w2, b2, block_rows=1024, block_k=4096):
    """x: (N, ...) input, flattened to (N, in_features) like x.view(x.size(0), -1)."""
    N = x.shape[0]
    x2d = x.reshape(N, -1)
    K = x2d.shape[1]                      # in_features (3072 cifar / 150528 imagenet)
    H = w1.shape[1]                       # hidden      (300 / 64)
    C = w2.shape[1]                       # num actions (2)
    assert C == 2, "policy_network has exactly 2 actions"

    # bf16 MXU operands for fc1 (free if the caller already stores x / w1 in bf16).
    x_bf = x2d.astype(jnp.bfloat16)
    w1_bf = w1.astype(jnp.bfloat16)
    b1r = b1.reshape(1, H).astype(jnp.float32)

    # Fold fc2 into signed column differences: softmax([l0,l1]) == [sigmoid(l0-l1), sigmoid(l1-l0)].
    w2d = (w2 - w2[:, ::-1]).astype(jnp.float32)          # (H, 2): [w0-w1, w1-w0]
    b2d = (b2 - b2[::-1]).reshape(1, C).astype(jnp.float32)

    # Row tile: large to amortize per-step overhead; for N > 8 guarantee >= 2 row tiles so the
    # "parallel" axis can be sharded across both v7x TensorCores.
    tm = min(block_rows, N)
    if N > 8:
        half = ((-(-N // 2)) + 7) // 8 * 8                # ceil(N/2) rounded up to a multiple of 8
        tm = min(tm, half)

    # K tile: full K for cifar (single K step, w1 resident); divisor tile for huge in_features.
    tk = _pick_k_tile(K, block_k)
    k_steps = K // tk

    grid = (pl.cdiv(N, tm), k_steps)

    return pl.pallas_call(
        _policy_kernel,
        out_shape=jax.ShapeDtypeStruct((N, C), jnp.float32),
        grid=grid,
        in_specs=[
            pl.BlockSpec((tm, tk), lambda i, k: (i, k)),   # x row/K tile (bf16)
            pl.BlockSpec((tk, H), lambda i, k: (k, 0)),    # fc1 weight K tile (bf16)
            pl.BlockSpec((1, H), lambda i, k: (0, 0)),     # fc1 bias (f32)
            pl.BlockSpec((H, C), lambda i, k: (0, 0)),     # fc2 signed column differences (f32)
            pl.BlockSpec((1, C), lambda i, k: (0, 0)),     # fc2 bias differences (f32)
        ],
        out_specs=pl.BlockSpec((tm, C), lambda i, k: (i, 0)),
        scratch_shapes=[pltpu.VMEM((tm, H), jnp.float32)],  # hidden-activation accumulator
        compiler_params=pltpu.CompilerParams(
            dimension_semantics=("parallel", "arbitrary"),
            vmem_limit_bytes=_VMEM_LIMIT,
        ),
    )(x_bf, w1_bf, b1r, w2d, b2d)


# ----------------------------- pure-JAX reference -----------------------------

def _reference(x, w1, b1, w2, b2):
    """Reference with the same bf16 fc1 numerics as the kernel."""
    x2d = x.reshape(x.shape[0], -1)
    h = jnp.maximum(
        jnp.dot(x2d.astype(jnp.bfloat16), w1.astype(jnp.bfloat16),
                preferred_element_type=jnp.float32) + b1, 0.0)
    logits = h @ w2 + b2
    return jax.nn.softmax(logits, axis=-1)


# ----------------------------- main -----------------------------

if __name__ == "__main__":
    key = jax.random.PRNGKey(0)
    kx, k1, kb1, k2, kb2 = jax.random.split(key, 5)

    # 'cifar' variant of policy_network: fc1: 3072 -> 300, fc2: 300 -> 2.
    N, C_in, Hs, Ws = 2, 3, 32, 32
    in_features = C_in * Hs * Ws          # 3072
    hidden = 300
    n_actions = 2

    x = jax.random.normal(kx, (N, C_in, Hs, Ws), jnp.float32)
    w1 = (1.0 / jnp.sqrt(in_features)) * jax.random.normal(k1, (in_features, hidden), jnp.float32)
    b1 = 0.01 * jax.random.normal(kb1, (hidden,), jnp.float32)
    w2 = (1.0 / jnp.sqrt(hidden)) * jax.random.normal(k2, (hidden, n_actions), jnp.float32)
    b2 = 0.01 * jax.random.normal(kb2, (n_actions,), jnp.float32)

    probs = jax.block_until_ready(policy_network_forward(x, w1, b1, w2, b2))
    ref = _reference(x, w1, b1, w2, b2)

    assert probs.shape == (N, n_actions)
    assert bool(jnp.all(jnp.isfinite(probs)))
    assert bool(jnp.allclose(jnp.sum(probs, axis=-1), 1.0, atol=1e-5))
    assert bool(jnp.allclose(probs, ref, atol=1e-4, rtol=1e-3))

    # Second check: batch large enough for >= 2 row tiles (v7x 2-TC path) and a ragged tail.
    N2 = 300
    x2 = jax.random.normal(jax.random.PRNGKey(1), (N2, C_in, Hs, Ws), jnp.float32)
    probs2 = jax.block_until_ready(policy_network_forward(x2, w1, b1, w2, b2))
    ref2 = _reference(x2, w1, b1, w2, b2)
    assert probs2.shape == (N2, n_actions)
    assert bool(jnp.allclose(jnp.sum(probs2, axis=-1), 1.0, atol=1e-5))
    assert bool(jnp.allclose(probs2, ref2, atol=1e-4, rtol=1e-3))

    print("KERNEL_OK")
</pallas_src>

<mosaic_0001>
module attributes {stable_mosaic.version = 11 : i64} {
  func.func @_policy_kernel(%arg0: i32, %arg1: i32, %arg2: memref<2x3072xbf16, #tpu.memory_space<vmem>>, %arg3: memref<3072x300xbf16, #tpu.memory_space<vmem>>, %arg4: memref<1x300xf32, #tpu.memory_space<vmem>>, %arg5: memref<300x2xf32, #tpu.memory_space<vmem>>, %arg6: memref<1x2xf32, #tpu.memory_space<vmem>>, %arg7: memref<2x2xf32, #tpu.memory_space<vmem>>, %arg8: memref<2x300xf32, #tpu.memory_space<vmem>>) attributes {dimension_semantics = [#tpu.dimension_semantics<parallel>, #tpu.dimension_semantics<arbitrary>], iteration_bounds = array<i64: 1, 1>, scalar_prefetch = 0 : i64, scratch_operands = 1 : i64, tpu.core_type = #tpu.core_type<tc>, window_params = [{transform_indices = @transform_0, window_bounds = array<i64: 2, 3072>}, {transform_indices = @transform_1, window_bounds = array<i64: 3072, 300>}, {pipeline_mode = #tpu.pipeline_mode<synchronous>, transform_indices = @transform_2, window_bounds = array<i64: 1, 300>}, {pipeline_mode = #tpu.pipeline_mode<synchronous>, transform_indices = @transform_3, window_bounds = array<i64: 300, 2>}, {pipeline_mode = #tpu.pipeline_mode<synchronous>, transform_indices = @transform_4, window_bounds = array<i64: 1, 2>}, {transform_indices = @transform_5, window_bounds = array<i64: 2, 2>}]} {
    %c0_i32 = arith.constant 0 : i32
    %0 = arith.cmpi eq, %arg1, %c0_i32 : i32
    %1 = arith.extui %0 : i1 to i32
    %c0_i32_0 = arith.constant 0 : i32
    %2 = arith.cmpi ne, %1, %c0_i32_0 : i32
    scf.if %2 {
      %cst_10 = arith.constant 0.000000e+00 : f32
      %12 = vector.broadcast %cst_10 : f32 to vector<2x300xf32>
      %c0_11 = arith.constant 0 : index
      %c0_12 = arith.constant 0 : index
      %13 = vector.load %arg8[%c0_11, %c0_12] : memref<2x300xf32, #tpu.memory_space<vmem>>, vector<2x300xf32>
      tpu.vector_store %arg8[%c0_11, %c0_12], %12 {strides = array<i32>} : memref<2x300xf32, #tpu.memory_space<vmem>>, vector<2x300xf32>,
    } else {
    }
    %c0 = arith.constant 0 : index
    %c0_1 = arith.constant 0 : index
    %3 = vector.load %arg8[%c0, %c0_1] : memref<2x300xf32, #tpu.memory_space<vmem>>, vector<2x300xf32>
    %c0_2 = arith.constant 0 : index
    %c0_3 = arith.constant 0 : index
    %4 = vector.load %arg2[%c0_2, %c0_3] : memref<2x3072xbf16, #tpu.memory_space<vmem>>, vector<2x3072xbf16>
    %c0_4 = arith.constant 0 : index
    %c0_5 = arith.constant 0 : index
    %5 = vector.load %arg3[%c0_4, %c0_5] : memref<3072x300xbf16, #tpu.memory_space<vmem>>, vector<3072x300xbf16>
    %cst = arith.constant dense<0.000000e+00> : vector<2x300xf32>
    %6 = tpu.matmul %4, %5, %cst {dimension_numbers = #tpu.dot_dimension_numbers<[1], [0], [0], [1], [0, 0, 1, 1], [], []>} : vector<2x3072xbf16>, vector<3072x300xbf16>, vector<2x300xf32> -> vector<2x300xf32>
    %7 = arith.addf %3, %6 : vector<2x300xf32>
    %c0_6 = arith.constant 0 : index
    %c0_7 = arith.constant 0 : index
    %8 = vector.load %arg8[%c0_6, %c0_7] : memref<2x300xf32, #tpu.memory_space<vmem>>, vector<2x300xf32>
    tpu.vector_store %arg8[%c0_6, %c0_7], %7 {strides = array<i32>} : memref<2x300xf32, #tpu.memory_space<vmem>>, vector<2x300xf32>,
    %c0_i32_8 = arith.constant 0 : i32
    %9 = arith.cmpi eq, %arg1, %c0_i32_8 : i32
    %10 = arith.extui %9 : i1 to i32
    %c0_i32_9 = arith.constant 0 : i32
    %11 = arith.cmpi ne, %10, %c0_i32_9 : i32
    scf.if %11 {
      %c0_10 = arith.constant 0 : index
      %c0_11 = arith.constant 0 : index
      %12 = vector.load %arg8[%c0_10, %c0_11] : memref<2x300xf32, #tpu.memory_space<vmem>>, vector<2x300xf32>
      %c0_12 = arith.constant 0 : index
      %c0_13 = arith.constant 0 : index
      %13 = vector.load %arg4[%c0_12, %c0_13] : memref<1x300xf32, #tpu.memory_space<vmem>>, vector<1x300xf32>
      %14 = vector.broadcast %13 : vector<1x300xf32> to vector<2x300xf32>
      %15 = arith.addf %12, %14 : vector<2x300xf32>
      %cst_14 = arith.constant 0.000000e+00 : f32
      %16 = vector.broadcast %cst_14 : f32 to vector<2x300xf32>
      %17 = arith.maximumf %15, %16 : vector<2x300xf32>
      %c0_15 = arith.constant 0 : index
      %c0_16 = arith.constant 0 : index
      %18 = vector.load %arg5[%c0_15, %c0_16] : memref<300x2xf32, #tpu.memory_space<vmem>>, vector<300x2xf32>
      %cst_17 = arith.constant dense<0.000000e+00> : vector<2x2xf32>
      %19 = tpu.matmul %17, %18, %cst_17 {dimension_numbers = #tpu.dot_dimension_numbers<[1], [0], [0], [1], [0, 0, 1, 1], [], []>} : vector<2x300xf32>, vector<300x2xf32>, vector<2x2xf32> -> vector<2x2xf32>
      %c0_18 = arith.constant 0 : index
      %c0_19 = arith.constant 0 : index
      %20 = vector.load %arg6[%c0_18, %c0_19] : memref<1x2xf32, #tpu.memory_space<vmem>>, vector<1x2xf32>
      %21 = vector.broadcast %20 : vector<1x2xf32> to vector<2x2xf32>
      %22 = arith.addf %19, %21 : vector<2x2xf32>
      %cst_20 = arith.constant 0.000000e+00 : f32
      %23 = vector.broadcast %cst_20 : f32 to vector<2x2xf32>
      %24 = arith.subf %23, %22 : vector<2x2xf32>
      %25 = math.exp %24 : vector<2x2xf32>
      %cst_21 = arith.constant 1.000000e+00 : f32
      %26 = vector.broadcast %cst_21 : f32 to vector<2x2xf32>
      %27 = arith.addf %26, %25 : vector<2x2xf32>
      %cst_22 = arith.constant 1.000000e+00 : f32
      %28 = vector.broadcast %cst_22 : f32 to vector<2x2xf32>
      %29 = arith.divf %28, %27 : vector<2x2xf32>
      %c0_23 = arith.constant 0 : index
      %c0_24 = arith.constant 0 : index
      %30 = vector.load %arg7[%c0_23, %c0_24] : memref<2x2xf32, #tpu.memory_space<vmem>>, vector<2x2xf32>
      tpu.vector_store %arg7[%c0_23, %c0_24], %29 {strides = array<i32>} : memref<2x2xf32, #tpu.memory_space<vmem>>, vector<2x2xf32>,
    } else {
    }
    return
  }
  func.func @transform_0(%arg0: i32, %arg1: i32) -> (i32, i32) {
    %c0_i32 = arith.constant 0 : i32
    return %arg0, %arg1 : i32, i32
  }
  func.func @transform_1(%arg0: i32, %arg1: i32) -> (i32, i32) {
    %c0_i32 = arith.constant 0 : i32
    %c0_i32_0 = arith.constant 0 : i32
    return %arg1, %c0_i32 : i32, i32
  }
  func.func @transform_2(%arg0: i32, %arg1: i32) -> (i32, i32) {
    %c0_i32 = arith.constant 0 : i32
    %c0_i32_0 = arith.constant 0 : i32
    %c0_i32_1 = arith.constant 0 : i32
    return %c0_i32, %c0_i32_0 : i32, i32
  }
  func.func @transform_3(%arg0: i32, %arg1: i32) -> (i32, i32) {
    %c0_i32 = arith.constant 0 : i32
    %c0_i32_0 = arith.constant 0 : i32
    %c0_i32_1 = arith.constant 0 : i32
    return %c0_i32, %c0_i32_0 : i32, i32
  }
  func.func @transform_4(%arg0: i32, %arg1: i32) -> (i32, i32) {
    %c0_i32 = arith.constant 0 : i32
    %c0_i32_0 = arith.constant 0 : i32
    %c0_i32_1 = arith.constant 0 : i32
    return %c0_i32, %c0_i32_0 : i32, i32
  }
  func.func @transform_5(%arg0: i32, %arg1: i32) -> (i32, i32) {
    %c0_i32 = arith.constant 0 : i32
    %c0_i32_0 = arith.constant 0 : i32
    return %arg0, %c0_i32 : i32, i32
  }
}

</mosaic_0001>

<bundles_post_ra>
// kernel: sub.2
= control target key start
LH: loop header
LB: loop body
LE: loop exit
PB: predicated region body
PF: predicated region fallthrough
CT: control target
= control target key end

     0   :  { %s848_s0 = inlined_call_operand.vmem [shape: f32[300,2], index: 0, kind: input, shape index: {}]   ;;  %s849_s1 = inlined_call_operand.vmem [shape: f32[300,2], index: 1, kind: input, shape index: {}]   ;;  %s850_s2 = inlined_call_operand.vmem [shape: f32[300,2], index: 2, kind: output, shape index: {}]  }
   0x1   :  { %v3_v0 = vld [vmem:[%s848_s0] sm:$0xff]  ;;  %v380_v2 = vld [vmem:[%s848_s0 + $0x8] sm:$0xff]  ;;  %v383_v5 = vld [vmem:[%s848_s0 + $0x10] sm:$0xff] }
   0x2   :  { %v4_v1 = vld [vmem:[%s849_s1] sm:$0xff]  ;;  %v381_v4 = vld [vmem:[%s849_s1 + $0x8] sm:$0xff]  ;;  %v384_v6 = vld [vmem:[%s849_s1 + $0x10] sm:$0xff] }
   0x3   :  { %v7_v3 = vsub.f32 %v3_v0, %v4_v1  ;;  %v16_v7 = vsub.f32 %v380_v2, %v381_v4  ;;  %v26_v8 = vsub.f32 %v383_v5, %v384_v6  ;;  %v386_v9 = vld [vmem:[%s848_s0 + $0x18] sm:$0xff]  ;;  %v389_v11 = vld [vmem:[%s848_s0 + $0x20] sm:$0xff]  ;;  %v392_v14 = vld [vmem:[%s848_s0 + $0x28] sm:$0xff] }
   0x4   :  { %v387_v10 = vld [vmem:[%s849_s1 + $0x18] sm:$0xff]  ;;  %v390_v13 = vld [vmem:[%s849_s1 + $0x20] sm:$0xff]  ;;  %v393_v15 = vld [vmem:[%s849_s1 + $0x28] sm:$0xff] }
   0x5   :  { %9 = vst [vmem:[%s850_s2] sm:$0xff] %v7_v3  ;;  %v36_v12 = vsub.f32 %v386_v9, %v387_v10  ;;  %382 = vst [vmem:[%s850_s2 + $0x8] sm:$0xff] %v16_v7  ;;  %v46_v16 = vsub.f32 %v389_v11, %v390_v13  ;;  %v56_v17 = vsub.f32 %v392_v14, %v393_v15  ;;  %v395_v18 = vld [vmem:[%s848_s0 + $0x30] sm:$0xff]  ;;  %v398_v20 = vld [vmem:[%s848_s0 + $0x38] sm:$0xff] }
   0x6   :  { %385 = vst [vmem:[%s850_s2 + $0x10] sm:$0xff] %v26_v8  ;;  %v396_v19 = vld [vmem:[%s849_s1 + $0x30] sm:$0xff]  ;;  %v399_v22 = vld [vmem:[%s849_s1 + $0x38] sm:$0xff]  ;;  %v401_v23 = vld [vmem:[%s848_s0 + $0x40] sm:$0xff] }
   0x7   :  { %388 = vst [vmem:[%s850_s2 + $0x18] sm:$0xff] %v36_v12  ;;  %v66_v21 = vsub.f32 %v395_v18, %v396_v19  ;;  %v402_v24 = vld [vmem:[%s849_s1 + $0x40] sm:$0xff]  ;;  %391 = vst [vmem:[%s850_s2 + $0x20] sm:$0xff] %v46_v16  ;;  %v76_v25 = vsub.f32 %v398_v20, %v399_v22  ;;  %v404_v27 = vld [vmem:[%s848_s0 + $0x48] sm:$0xff] }
   0x8   :  { %394 = vst [vmem:[%s850_s2 + $0x28] sm:$0xff] %v56_v17  ;;  %v86_v26 = vsub.f32 %v401_v23, %v402_v24  ;;  %v405_v28 = vld [vmem:[%s849_s1 + $0x48] sm:$0xff]  ;;  %v407_v29 = vld [vmem:[%s848_s0 + $0x50] sm:$0xff]  ;;  %v410_v32 = vld [vmem:[%s848_s0 + $0x58] sm:$0xff] }
   0x9   :  { %397 = vst [vmem:[%s850_s2 + $0x30] sm:$0xff] %v66_v21  ;;  %v96_v30 = vsub.f32 %v404_v27, %v405_v28  ;;  %v408_v31 = vld [vmem:[%s849_s1 + $0x50] sm:$0xff]  ;;  %v411_v33 = vld [vmem:[%s849_s1 + $0x58] sm:$0xff]  ;;  %400 = vst [vmem:[%s850_s2 + $0x38] sm:$0xff] %v76_v25 }
   0xa   :  { %403 = vst [vmem:[%s850_s2 + $0x40] sm:$0xff] %v86_v26  ;;  %v106_v34 = vsub.f32 %v407_v29, %v408_v31  ;;  %v116_v35 = vsub.f32 %v410_v32, %v411_v33  ;;  %v413_v36 = vld [vmem:[%s848_s0 + $0x60] sm:$0xff]  ;;  %v416_v38 = vld [vmem:[%s848_s0 + $0x68] sm:$0xff]  ;;  %v419_v41 = vld [vmem:[%s848_s0 + $0x70] sm:$0xff] }
   0xb   :  { %v414_v37 = vld [vmem:[%s849_s1 + $0x60] sm:$0xff]  ;;  %406 = vst [vmem:[%s850_s2 + $0x48] sm:$0xff] %v96_v30  ;;  %v417_v40 = vld [vmem:[%s849_s1 + $0x68] sm:$0xff]  ;;  %v420_v42 = vld [vmem:[%s849_s1 + $0x70] sm:$0xff] }
   0xc   :  { %v126_v39 = vsub.f32 %v413_v36, %v414_v37  ;;  %409 = vst [vmem:[%s850_s2 + $0x50] sm:$0xff] %v106_v34  ;;  %412 = vst [vmem:[%s850_s2 + $0x58] sm:$0xff] %v116_v35  ;;  %v136_v43 = vsub.f32 %v416_v38, %v417_v40  ;;  %v146_v44 = vsub.f32 %v419_v41, %v420_v42  ;;  %v422_v45 = vld [vmem:[%s848_s0 + $0x78] sm:$0xff]  ;;  %v425_v47 = vld [vmem:[%s848_s0 + $0x80] sm:$0xff] }
   0xd   :  { %v423_v46 = vld [vmem:[%s849_s1 + $0x78] sm:$0xff]  ;;  %v426_v49 = vld [vmem:[%s849_s1 + $0x80] sm:$0xff]  ;;  %v428_v50 = vld [vmem:[%s848_s0 + $0x88] sm:$0xff] }
   0xe   :  { %415 = vst [vmem:[%s850_s2 + $0x60] sm:$0xff] %v126_v39  ;;  %v156_v48 = vsub.f32 %v422_v45, %v423_v46  ;;  %v429_v51 = vld [vmem:[%s849_s1 + $0x88] sm:$0xff]  ;;  %418 = vst [vmem:[%s850_s2 + $0x68] sm:$0xff] %v136_v43  ;;  %v166_v52 = vsub.f32 %v425_v47, %v426_v49  ;;  %v431_v54 = vld [vmem:[%s848_s0 + $0x90] sm:$0xff] }
   0xf   :  { %421 = vst [vmem:[%s850_s2 + $0x70] sm:$0xff] %v146_v44  ;;  %v176_v53 = vsub.f32 %v428_v50, %v429_v51  ;;  %v432_v55 = vld [vmem:[%s849_s1 + $0x90] sm:$0xff]  ;;  %v434_v56 = vld [vmem:[%s848_s0 + $0x98] sm:$0xff]  ;;  %v437_v59 = vld [vmem:[%s848_s0 + $0xa0] sm:$0xff] }
  0x10   :  { %424 = vst [vmem:[%s850_s2 + $0x78] sm:$0xff] %v156_v48  ;;  %v186_v57 = vsub.f32 %v431_v54, %v432_v55  ;;  %v435_v58 = vld [vmem:[%s849_s1 + $0x98] sm:$0xff]  ;;  %v438_v60 = vld [vmem:[%s849_s1 + $0xa0] sm:$0xff]  ;;  %427 = vst [vmem:[%s850_s2 + $0x80] sm:$0xff] %v166_v52 }
  0x11   :  { %430 = vst [vmem:[%s850_s2 + $0x88] sm:$0xff] %v176_v53  ;;  %v196_v61 = vsub.f32 %v434_v56, %v435_v58  ;;  %v206_v62 = vsub.f32 %v437_v59, %v438_v60  ;;  %v440_v63 = vld [vmem:[%s848_s0 + $0xa8] sm:$0xff]  ;;  %v443_v1 = vld [vmem:[%s848_s0 + $0xb0] sm:$0xff]  ;;  %v446_v4 = vld [vmem:[%s848_s0 + $0xb8] sm:$0xff] }
  0x12   :  { %v441_v0 = vld [vmem:[%s849_s1 + $0xa8] sm:$0xff]  ;;  %433 = vst [vmem:[%s850_s2 + $0x90] sm:$0xff] %v186_v57  ;;  %v444_v3 = vld [vmem:[%s849_s1 + $0xb0] sm:$0xff]  ;;  %v447_v5 = vld [vmem:[%s849_s1 + $0xb8] sm:$0xff] }
  0x13   :  { %v216_v2 = vsub.f32 %v440_v63, %v441_v0  ;;  %436 = vst [vmem:[%s850_s2 + $0x98] sm:$0xff] %v196_v61  ;;  %439 = vst [vmem:[%s850_s2 + $0xa0] sm:$0xff] %v206_v62  ;;  %v226_v6 = vsub.f32 %v443_v1, %v444_v3  ;;  %v236_v7 = vsub.f32 %v446_v4, %v447_v5  ;;  %v449_v8 = vld [vmem:[%s848_s0 + $0xc0] sm:$0xff]  ;;  %v452_v10 = vld [vmem:[%s848_s0 + $0xc8] sm:$0xff] }
  0x14   :  { %v450_v9 = vld [vmem:[%s849_s1 + $0xc0] sm:$0xff]  ;;  %v453_v12 = vld [vmem:[%s849_s1 + $0xc8] sm:$0xff]  ;;  %v455_v13 = vld [vmem:[%s848_s0 + $0xd0] sm:$0xff] }
  0x15   :  { %442 = vst [vmem:[%s850_s2 + $0xa8] sm:$0xff] %v216_v2  ;;  %v246_v11 = vsub.f32 %v449_v8, %v450_v9  ;;  %v456_v14 = vld [vmem:[%s849_s1 + $0xd0] sm:$0xff]  ;;  %445 = vst [vmem:[%s850_s2 + $0xb0] sm:$0xff] %v226_v6  ;;  %v256_v15 = vsub.f32 %v452_v10, %v453_v12  ;;  %v458_v17 = vld [vmem:[%s848_s0 + $0xd8] sm:$0xff] }
  0x16   :  { %448 = vst [vmem:[%s850_s2 + $0xb8] sm:$0xff] %v236_v7  ;;  %v266_v16 = vsub.f32 %v455_v13, %v456_v14  ;;  %v459_v18 = vld [vmem:[%s849_s1 + $0xd8] sm:$0xff]  ;;  %v461_v19 = vld [vmem:[%s848_s0 + $0xe0] sm:$0xff]  ;;  %v464_v22 = vld [vmem:[%s848_s0 + $0xe8] sm:$0xff] }
  0x17   :  { %451 = vst [vmem:[%s850_s2 + $0xc0] sm:$0xff] %v246_v11  ;;  %v276_v20 = vsub.f32 %v458_v17, %v459_v18  ;;  %v462_v21 = vld [vmem:[%s849_s1 + $0xe0] sm:$0xff]  ;;  %v465_v23 = vld [vmem:[%s849_s1 + $0xe8] sm:$0xff]  ;;  %454 = vst [vmem:[%s850_s2 + $0xc8] sm:$0xff] %v256_v15 }
  0x18   :  { %457 = vst [vmem:[%s850_s2 + $0xd0] sm:$0xff] %v266_v16  ;;  %v286_v24 = vsub.f32 %v461_v19, %v462_v21  ;;  %v296_v25 = vsub.f32 %v464_v22, %v465_v23  ;;  %v467_v26 = vld [vmem:[%s848_s0 + $0xf0] sm:$0xff]  ;;  %v470_v28 = vld [vmem:[%s848_s0 + $0xf8] sm:$0xff]  ;;  %v473_v31 = vld [vmem:[%s848_s0 + $0x100] sm:$0xff] }
  0x19   :  { %v468_v27 = vld [vmem:[%s849_s1 + $0xf0] sm:$0xff]  ;;  %460 = vst [vmem:[%s850_s2 + $0xd8] sm:$0xff] %v276_v20  ;;  %v471_v30 = vld [vmem:[%s849_s1 + $0xf8] sm:$0xff]  ;;  %v474_v32 = vld [vmem:[%s849_s1 + $0x100] sm:$0xff] }
  0x1a   :  { %v306_v29 = vsub.f32 %v467_v26, %v468_v27  ;;  %463 = vst [vmem:[%s850_s2 + $0xe0] sm:$0xff] %v286_v24  ;;  %466 = vst [vmem:[%s850_s2 + $0xe8] sm:$0xff] %v296_v25  ;;  %v316_v33 = vsub.f32 %v470_v28, %v471_v30  ;;  %v326_v34 = vsub.f32 %v473_v31, %v474_v32  ;;  %v476_v35 = vld [vmem:[%s848_s0 + $0x108] sm:$0xff]  ;;  %v479_v37 = vld [vmem:[%s848_s0 + $0x110] sm:$0xff] }
  0x1b   :  { %v477_v36 = vld [vmem:[%s849_s1 + $0x108] sm:$0xff]  ;;  %v480_v39 = vld [vmem:[%s849_s1 + $0x110] sm:$0xff]  ;;  %v482_v40 = vld [vmem:[%s848_s0 + $0x118] sm:$0xff] }
  0x1c   :  { %469 = vst [vmem:[%s850_s2 + $0xf0] sm:$0xff] %v306_v29  ;;  %v336_v38 = vsub.f32 %v476_v35, %v477_v36  ;;  %v483_v41 = vld [vmem:[%s849_s1 + $0x118] sm:$0xff]  ;;  %472 = vst [vmem:[%s850_s2 + $0xf8] sm:$0xff] %v316_v33  ;;  %v346_v42 = vsub.f32 %v479_v37, %v480_v39  ;;  %v485_v44 = vld [vmem:[%s848_s0 + $0x120] sm:$0xff] }
  0x1d   :  { %475 = vst [vmem:[%s850_s2 + $0x100] sm:$0xff] %v326_v34  ;;  %v356_v43 = vsub.f32 %v482_v40, %v483_v41  ;;  %v486_v45 = vld [vmem:[%s849_s1 + $0x120] sm:$0xff]  ;;  %v488_v46 = vld [vmem:[%s848_s0 + $0x128] sm:$0xff] }
  0x1e   :  { %478 = vst [vmem:[%s850_s2 + $0x108] sm:$0xff] %v336_v38  ;;  %v366_v47 = vsub.f32 %v485_v44, %v486_v45  ;;  %v489_v48 = vld [vmem:[%s849_s1 + $0x128] sm:$0xff]  ;;  %481 = vst [vmem:[%s850_s2 + $0x110] sm:$0xff] %v346_v42 }
  0x1f   :  { %484 = vst [vmem:[%s850_s2 + $0x118] sm:$0xff] %v356_v43  ;;  %v376_v49 = vsub.f32 %v488_v46, %v489_v48 }
  0x20   :  { %487 = vst [vmem:[%s850_s2 + $0x120] sm:$0xff] %v366_v47 }
  0x21   :  { %490 = vst [vmem:[%s850_s2 + $0x128] sm:$0xff] %v376_v49 }

// kernel: policy_network_forward.1
= control target key start
LH: loop header
LB: loop body
LE: loop exit
PB: predicated region body
PF: predicated region fallthrough
CT: control target
= control target key end

     0   :  { %v7021_v36 = vmov 1966171168   ;;  %v811_v38 = vlaneseq  ;;  %s9156_s0 = inlined_call_operand.vmem [shape: bf16[2,3072], index: 0, kind: input, shape index: {}]   ;;  %s9157_s1 = inlined_call_operand.vmem [shape: bf16[3072,300], index: 1, kind: input, shape index: {}]   ;;  %s9158_s2 = inlined_call_operand.vmem [shape: f32[1,300], index: 2, kind: input, shape index: {}]   ;;  %s9159_s3 = inlined_call_operand.vmem [shape: f32[300,2], index: 3, kind: input, shape index: {}]   ;;  %s9160_s4 = inlined_call_operand.vmem [shape: f32[1,2], index: 4, kind: input, shape index: {}]   ;;  %s9161_s5 = inlined_call_operand.hbm [shape: f32[2,2], index: 5, kind: output, shape index: {}]  }
   0x1   :  { %v6224_v0 = vld [vmem:[%s9157_s1 + $0xac] ss:$12 sps:$4 sm:$0xff]   ;;  %v6228_v2 = vld [vmem:[%s9157_s1 + $0xa8] ss:$12 sps:$4 sm:$0xff]   ;;  %v6234_v6 = vld [vmem:[%s9157_s1 + $0x90] ss:$12 sps:$4 sm:$0xff]   ;;  %v809_v37 = vunpack.c.l.s4 %v7021_v36 }
   0x2   :  { %v6226_v1 = vld [vmem:[%s9157_s1 + $0x22c] ss:$12 sps:$4 sm:$0xff]   ;;  %4050 = vmatprep.subr.bf16.mxu0 %v6224_v0  ;;  %v6229_v3 = vld [vmem:[%s9157_s1 + $0x228] ss:$12 sps:$4 sm:$0xff]   ;;  %v6235_v7 = vld [vmem:[%s9157_s1 + $0x210] ss:$12 sps:$4 sm:$0xff]  }
   0x3   :  { %4091 = vmatprep.subr.bf16.mxu1 %v6226_v1  ;;  %v6230_v4 = vld [vmem:[%s9157_s1 + $0x94] ss:$12 sps:$4 sm:$0xff]   ;;  %4051 = vmatpush1.bf16.msra.mxu0 %v6228_v2  ;;  %v6236_v8 = vld [vmem:[%s9157_s1 + $0x7c] ss:$12 sps:$4 sm:$0xff]   ;;  %v6240_v10 = vld [vmem:[%s9157_s1 + $0x78] ss:$12 sps:$4 sm:$0xff]   ;;  %v810_v42 = vunpack.c.0.s8 %v809_v37 }
   0x4   :  { %4092 = vmatpush1.bf16.msra.mxu1 %v6229_v3  ;;  %v6232_v5 = vld [vmem:[%s9157_s1 + $0x214] ss:$12 sps:$4 sm:$0xff]   ;;  %4052 = vmatprep.subr.bf16.mxu0 %v6230_v4  ;;  %v6238_v9 = vld [vmem:[%s9157_s1 + $0x1fc] ss:$12 sps:$4 sm:$0xff]   ;;  %v6241_v11 = vld [vmem:[%s9157_s1 + $0x1f8] ss:$12 sps:$4 sm:$0xff]  }
   0x5   :  { %4093 = vmatprep.subr.bf16.mxu1 %v6232_v5  ;;  %v6242_v12 = vld [vmem:[%s9157_s1 + $0x64] ss:$12 sps:$4 sm:$0xff]   ;;  %v6246_v14 = vld [vmem:[%s9157_s1 + $0x60] ss:$12 sps:$4 sm:$0xff]   ;;  %v6252_v18 = vld [vmem:[%s9157_s1 + $0x48] ss:$12 sps:$4 sm:$0xff]  }
   0x6   :  { %v6244_v13 = vld [vmem:[%s9157_s1 + $0x1e4] ss:$12 sps:$4 sm:$0xff]   ;;  %v6247_v15 = vld [vmem:[%s9157_s1 + $0x1e0] ss:$12 sps:$4 sm:$0xff]   ;;  %v6253_v19 = vld [vmem:[%s9157_s1 + $0x1c8] ss:$12 sps:$4 sm:$0xff]  }
   0x7   :  { %4053 = vmatpush1.bf16.msra.mxu0 %v6234_v6  ;;  %v6248_v16 = vld [vmem:[%s9157_s1 + $0x4c] ss:$12 sps:$4 sm:$0xff]   ;;  %v6254_v20 = vld [vmem:[%s9157_s1 + $0x34] ss:$12 sps:$4 sm:$0xff]   ;;  %v6258_v22 = vld [vmem:[%s9157_s1 + $0x30] ss:$12 sps:$4 sm:$0xff]  }
   0x8   :  { %4094 = vmatpush1.bf16.msra.mxu1 %v6235_v7  ;;  %4054 = vmatprep.subr.bf16.mxu0 %v6236_v8  ;;  %v6250_v17 = vld [vmem:[%s9157_s1 + $0x1cc] ss:$12 sps:$4 sm:$0xff]   ;;  %v6256_v21 = vld [vmem:[%s9157_s1 + $0x1b4] ss:$12 sps:$4 sm:$0xff]   ;;  %v6259_v23 = vld [vmem:[%s9157_s1 + $0x1b0] ss:$12 sps:$4 sm:$0xff]  }
   0x9   :  { %4095 = vmatprep.subr.bf16.mxu1 %v6238_v9  ;;  %v6260_v24 = vld [vmem:[%s9157_s1 + $0x1c] ss:$12 sps:$4 sm:$0xff]   ;;  %v6264_v26 = vld [vmem:[%s9157_s1 + $0x18] ss:$12 sps:$4 sm:$0xff]   ;;  %v6270_v30 = vld [vmem:[%s9157_s1] ss:$12 sps:$4 sm:$0xff]  }
   0xa   :  { %v6262_v25 = vld [vmem:[%s9157_s1 + $0x19c] ss:$12 sps:$4 sm:$0xff]   ;;  %v6265_v27 = vld [vmem:[%s9157_s1 + $0x198] ss:$12 sps:$4 sm:$0xff]   ;;  %v6271_v31 = vld [vmem:[%s9157_s1 + $0x180] ss:$12 sps:$4 sm:$0xff]  }
   0xb   :  { %4055 = vmatpush1.bf16.msra.mxu0 %v6240_v10  ;;  %v6266_v28 = vld [vmem:[%s9157_s1 + $0x4] ss:$12 sps:$4 sm:$0xff]   ;;  %v6272_v32 = vld [vmem:[%s9157_s1 + $0x16c] ss:$12 sps:$4 sm:$0xff]   ;;  %v6276_v34 = vld [vmem:[%s9157_s1 + $0x168] ss:$12 sps:$4 sm:$0xff]  }
   0xc   :  { %4096 = vmatpush1.bf16.msra.mxu1 %v6241_v11  ;;  %4056 = vmatprep.subr.bf16.mxu0 %v6242_v12  ;;  %v6268_v29 = vld [vmem:[%s9157_s1 + $0x184] ss:$12 sps:$4 sm:$0xff]   ;;  %v6274_v33 = vld [vmem:[%s9157_s1 + $0x2ec] ss:$12 sps:$4 sm:$0xff]   ;;  %v6277_v35 = vld [vmem:[%s9157_s1 + $0x2e8] ss:$12 sps:$4 sm:$0xff]  }
   0xd   :  { %4097 = vmatprep.subr.bf16.mxu1 %v6244_v13  ;;  %v6278_v39 = vld [vmem:[%s9157_s1 + $0x154] ss:$12 sps:$4 sm:$0xff]   ;;  %v6282_v41 = vld [vmem:[%s9157_s1 + $0x150] ss:$12 sps:$4 sm:$0xff]   ;;  %v7173_v43 = vshrl.u32 %v811_v38, 7 }
   0xe   :  { %v6280_v40 = vld [vmem:[%s9157_s1 + $0x2d4] ss:$12 sps:$4 sm:$0xff]   ;;  %v6283_v44 = vld [vmem:[%s9157_s1 + $0x2d0] ss:$12 sps:$4 sm:$0xff]   ;;  %v6288_v47 = vld [vmem:[%s9157_s1 + $0x138] ss:$12 sps:$4 sm:$0xff]  }
   0xf   :  { %4057 = vmatpush1.bf16.msra.mxu0 %v6246_v14  ;;  %v6284_v45 = vld [vmem:[%s9157_s1 + $0x13c] ss:$12 sps:$4 sm:$0xff]   ;;  %v6289_v48 = vld [vmem:[%s9157_s1 + $0x2b8] ss:$12 sps:$4 sm:$0xff]   ;;  %v7191_v49 = vsub.s32 %v810_v42, %v7173_v43  ;;  %v6294_v53 = vld [vmem:[%s9157_s1 + $0x120] ss:$12 sps:$4 sm:$0xff]  }
  0x10   :  { %4098 = vmatpush1.bf16.msra.mxu1 %v6247_v15  ;;  %4058 = vmatprep.subr.bf16.mxu0 %v6248_v16  ;;  %v6286_v46 = vld [vmem:[%s9157_s1 + $0x2bc] ss:$12 sps:$4 sm:$0xff]   ;;  %v6290_v50 = vld [vmem:[%s9157_s1 + $0x124] ss:$12 sps:$4 sm:$0xff]   ;;  %v6295_v55 = vld [vmem:[%s9157_s1 + $0x2a0] ss:$12 sps:$4 sm:$0xff]  }
  0x11   :  { %4099 = vmatprep.subr.bf16.mxu1 %v6250_v17  ;;  %v6292_v51 = vld [vmem:[%s9157_s1 + $0x2a4] ss:$12 sps:$4 sm:$0xff]   ;;  %v6296_v56 = vld [vmem:[%s9157_s1 + $0x10c] ss:$12 sps:$4 sm:$0xff]   ;;  %v6300_v59 = vld [vmem:[%s9157_s1 + $0x108] ss:$12 sps:$4 sm:$0xff]  }
  0x12   :  { %v33_v52 = vld [vmem:[%s9156_s0] sm:$0xff]  ;;  %v6298_v57 = vld [vmem:[%s9157_s1 + $0x28c] ss:$12 sps:$4 sm:$0xff]   ;;  %v6301_v61 = vld [vmem:[%s9157_s1 + $0x288] ss:$12 sps:$4 sm:$0xff]  }
  0x13   :  { %4059 = vmatpush1.bf16.msra.mxu0 %v6252_v18  ;;  %v814_v54 = vrot.slane %v33_v52, %v7191_v49  ;;  %v6302_v62 = vld [vmem:[%s9157_s1 + $0xf4] ss:$12 sps:$4 sm:$0xff]   ;;  %v807_v1 = vcombine.high %v33_v52, %v33_v52  ;;  %v6306_v2 = vld [vmem:[%s9157_s1 + $0xf0] ss:$12 sps:$4 sm:$0xff]   ;;  %v6312_v7 = vld [vmem:[%s9157_s1 + $0xd8] ss:$12 sps:$4 sm:$0xff]  }
  0x14   :  { %4100 = vmatpush1.bf16.msra.mxu1 %v6253_v19  ;;  %4060 = vmatprep.subr.bf16.mxu0 %v6254_v20  ;;  %v6304_v63 = vld [vmem:[%s9157_s1 + $0x274] ss:$12 sps:$4 sm:$0xff]   ;;  %v6307_v3 = vld [vmem:[%s9157_s1 + $0x270] ss:$12 sps:$4 sm:$0xff]   ;;  %v6313_v8 = vld [vmem:[%s9157_s1 + $0x258] ss:$12 sps:$4 sm:$0xff]  }
  0x15   :  { %4101 = vmatprep.subr.bf16.mxu1 %v6256_v21  ;;  %v822_v58 = vcombine.high %v814_v54, %v814_v54  ;;  %v6308_v4 = vld [vmem:[%s9157_s1 + $0xdc] ss:$12 sps:$4 sm:$0xff]   ;;  %v7249_v6 = vrot.slane %v807_v1, %v7191_v49  ;;  %v6314_v9 = vld [vmem:[%s9157_s1 + $0xc4] ss:$12 sps:$4 sm:$0xff]   ;;  %v6318_v12 = vld [vmem:[%s9157_s1 + $0xc0] ss:$12 sps:$4 sm:$0xff]   ;;  %v7269_v13 = vrot.slane %v814_v54, %v7191_v49 }
  0x16   :  { %v6310_v5 = vld [vmem:[%s9157_s1 + $0x25c] ss:$12 sps:$4 sm:$0xff]   ;;  %v6316_v10 = vld [vmem:[%s9157_s1 + $0x244] ss:$12 sps:$4 sm:$0xff]   ;;  %v6319_v14 = vld [vmem:[%s9157_s1 + $0x240] ss:$12 sps:$4 sm:$0xff]  }
  0x17   :  { %4061 = vmatpush1.bf16.msra.mxu0 %v6258_v22  ;;  %v7219_v60 = vrot.slane %v822_v58, %v7191_v49  ;;  %v823_v11 = vcombine.high %v7249_v6, %v7249_v6  ;;  %v6322_v15 = vld [vmem:[%s9157_s1 + $0x3ac] ss:$12 sps:$4 sm:$0xff]   ;;  %v7285_v18 = vcombine.high %v7269_v13, %v7269_v13  ;;  %v6320_v19 = vld [vmem:[%s9157_s1 + $0x3a8] ss:$12 sps:$4 sm:$0xff]   ;;  %v6374_v58 = vld [vmem:[%s9157_s1 + $0x450] ss:$12 sps:$4 sm:$0xff]  }
  0x18   :  { %4102 = vmatpush1.bf16.msra.mxu1 %v6259_v23  ;;  %4062 = vmatprep.subr.bf16.mxu0 %v6260_v24  ;;  %v6325_v16 = vld [vmem:[%s9157_s1 + $0x52c] ss:$12 sps:$4 sm:$0xff]   ;;  %v6323_v20 = vld [vmem:[%s9157_s1 + $0x528] ss:$12 sps:$4 sm:$0xff]   ;;  %v6326_v24 = vld [vmem:[%s9157_s1 + $0x390] ss:$12 sps:$4 sm:$0xff]  }
  0x19   :  { %4103 = vmatprep.subr.bf16.mxu1 %v6262_v25  ;;  %v7232_v0 = vcombine.high %v7219_v60, %v7219_v60  ;;  %4082 = vmatprep.mubr.bf16.mxu0 %v7219_v60  ;;  %v7281_v17 = vrot.slane %v823_v11, %v7191_v49  ;;  %v6328_v21 = vld [vmem:[%s9157_s1 + $0x394] ss:$12 sps:$4 sm:$0xff]   ;;  %v6329_v25 = vld [vmem:[%s9157_s1 + $0x510] ss:$12 sps:$4 sm:$0xff]   ;;  %v6370_v52 = vld [vmem:[%s9157_s1 + $0x46c] ss:$12 sps:$4 sm:$0xff]  }
  0x1a   :  { %v6331_v22 = vld [vmem:[%s9157_s1 + $0x514] ss:$12 sps:$4 sm:$0xff]   ;;  %v6358_v42 = vld [vmem:[%s9157_s1 + $0x31c] ss:$12 sps:$4 sm:$0xff]   ;;  %v6383_v1 = vld [vmem:[%s9157_s1 + $0x5b8] ss:$12 sps:$4 sm:$0xff]  }
  0x1b   :  { %4063 = vmatpush1.bf16.msra.mxu0 %v6264_v26  ;;  %4123 = vmatprep.mubr.bf16.mxu1 %v7232_v0  ;;  %v7301_v23 = vcombine.high %v7281_v17, %v7281_v17  ;;  %v6334_v26 = vld [vmem:[%s9157_s1 + $0x37c] ss:$12 sps:$4 sm:$0xff]   ;;  %v6352_v38 = vld [vmem:[%s9157_s1 + $0x334] ss:$12 sps:$4 sm:$0xff]  }
  0x1c   :  { %4104 = vmatpush1.bf16.msra.mxu1 %v6265_v27  ;;  %4064 = vmatprep.subr.bf16.mxu0 %v6266_v28  ;;  %v6337_v27 = vld [vmem:[%s9157_s1 + $0x4fc] ss:$12 sps:$4 sm:$0xff]   ;;  %v6332_v28 = vld [vmem:[%s9157_s1 + $0x378] ss:$12 sps:$4 sm:$0xff]   ;;  %v6400_v11 = vld [vmem:[%s9157_s1 + $0x3f4] ss:$12 sps:$4 sm:$0xff]  }
  0x1d   :  { %4105 = vmatprep.subr.bf16.mxu1 %v6268_v29  ;;  %v6335_v29 = vld [vmem:[%s9157_s1 + $0x4f8] ss:$12 sps:$4 sm:$0xff]   ;;  %v6344_v36 = vld [vmem:[%s9157_s1 + $0x348] ss:$12 sps:$4 sm:$0xff]  }
  0x1e   :  { %v6347_v37 = vld [vmem:[%s9157_s1 + $0x4c8] ss:$12 sps:$4 sm:$0xff]  }
  0x1f   :  { %4065 = vmatpush1.bf16.msra.mxu0 %v6270_v30  ;;  %v6340_v30 = vld [vmem:[%s9157_s1 + $0x364] ss:$12 sps:$4 sm:$0xff]   ;;  %v6368_v54 = vld [vmem:[%s9157_s1 + $0x468] ss:$12 sps:$4 sm:$0xff]  }
  0x20   :  { %4106 = vmatpush1.bf16.msra.mxu1 %v6271_v31  ;;  %4066 = vmatprep.subr.bf16.mxu0 %v6272_v32  ;;  %v6343_v31 = vld [vmem:[%s9157_s1 + $0x4e4] ss:$12 sps:$4 sm:$0xff]   ;;  %v6338_v32 = vld [vmem:[%s9157_s1 + $0x360] ss:$12 sps:$4 sm:$0xff]  }
  0x21   :  { %4107 = vmatprep.subr.bf16.mxu1 %v6274_v33  ;;  %v6341_v33 = vld [vmem:[%s9157_s1 + $0x4e0] ss:$12 sps:$4 sm:$0xff]  }
  0x23   :  { %4067 = vmatpush2.bf16.msra.mxu0 %v6276_v34  ;;  %v6346_v34 = vld [vmem:[%s9157_s1 + $0x34c] ss:$12 sps:$4 sm:$0xff]  }
  0x24   :  { %4108 = vmatpush2.bf16.msra.mxu1 %v6277_v35  ;;  %4068 = vmatprep.subr.bf16.mxu0 %v6278_v39  ;;  %v6349_v35 = vld [vmem:[%s9157_s1 + $0x4cc] ss:$12 sps:$4 sm:$0xff]   ;;  %v6355_v39 = vld [vmem:[%s9157_s1 + $0x4b4] ss:$12 sps:$4 sm:$0xff]  }
  0x25   :  { %4109 = vmatprep.subr.bf16.mxu1 %v6280_v40  ;;  %v6350_v40 = vld [vmem:[%s9157_s1 + $0x330] ss:$12 sps:$4 sm:$0xff]  }
  0x27   :  { %4069 = vmatpush2.bf16.msra.mxu0 %v6282_v41  ;;  %v6353_v41 = vld [vmem:[%s9157_s1 + $0x4b0] ss:$12 sps:$4 sm:$0xff]  }
  0x28   :  { %4110 = vmatpush2.bf16.msra.mxu1 %v6283_v44  ;;  %4070 = vmatprep.subr.bf16.mxu0 %v6284_v45  ;;  %v6361_v44 = vld [vmem:[%s9157_s1 + $0x49c] ss:$12 sps:$4 sm:$0xff]   ;;  %v6356_v45 = vld [vmem:[%s9157_s1 + $0x318] ss:$12 sps:$4 sm:$0xff]  }
  0x29   :  { %4111 = vmatprep.subr.bf16.mxu1 %v6286_v46  ;;  %v6359_v46 = vld [vmem:[%s9157_s1 + $0x498] ss:$12 sps:$4 sm:$0xff]  }
  0x2b   :  { %4071 = vmatpush2.bf16.msra.mxu0 %v6288_v47  ;;  %v6364_v47 = vld [vmem:[%s9157_s1 + $0x304] ss:$12 sps:$4 sm:$0xff]  }
  0x2c   :  { %4112 = vmatpush2.bf16.msra.mxu1 %v6289_v48  ;;  %4072 = vmatprep.subr.bf16.mxu0 %v6290_v50  ;;  %v6367_v48 = vld [vmem:[%s9157_s1 + $0x484] ss:$12 sps:$4 sm:$0xff]   ;;  %v6362_v50 = vld [vmem:[%s9157_s1 + $0x300] ss:$12 sps:$4 sm:$0xff]  }
  0x2d   :  { %4113 = vmatprep.subr.bf16.mxu1 %v6292_v51  ;;  %v6365_v51 = vld [vmem:[%s9157_s1 + $0x480] ss:$12 sps:$4 sm:$0xff]  }
  0x2f   :  { %4073 = vmatpush2.bf16.msra.mxu0 %v6294_v53  ;;  %v6373_v53 = vld [vmem:[%s9157_s1 + $0x5ec] ss:$12 sps:$4 sm:$0xff]  }
  0x30   :  { %4114 = vmatpush2.bf16.msra.mxu1 %v6295_v55  ;;  %4074 = vmatprep.subr.bf16.mxu0 %v6296_v56  ;;  %v6371_v55 = vld [vmem:[%s9157_s1 + $0x5e8] ss:$12 sps:$4 sm:$0xff]  }
  0x31   :  { %4115 = vmatprep.subr.bf16.mxu1 %v6298_v57  ;;  %v6376_v56 = vld [vmem:[%s9157_s1 + $0x454] ss:$12 sps:$4 sm:$0xff]  }
  0x32   :  { %v6379_v57 = vld [vmem:[%s9157_s1 + $0x5d4] ss:$12 sps:$4 sm:$0xff]  }
  0x33   :  { %4075 = vmatpush2.bf16.msra.mxu0 %v6300_v59  ;;  %v6377_v59 = vld [vmem:[%s9157_s1 + $0x5d0] ss:$12 sps:$4 sm:$0xff]  }
  0x34   :  { %4116 = vmatpush2.bf16.msra.mxu1 %v6301_v61  ;;  %4076 = vmatprep.subr.bf16.mxu0 %v6302_v62  ;;  %v6382_v61 = vld [vmem:[%s9157_s1 + $0x43c] ss:$12 sps:$4 sm:$0xff]  }
  0x35   :  { %4117 = vmatprep.subr.bf16.mxu1 %v6304_v63  ;;  %v6385_v62 = vld [vmem:[%s9157_s1 + $0x5bc] ss:$12 sps:$4 sm:$0xff]   ;;  %v6380_v63 = vld [vmem:[%s9157_s1 + $0x438] ss:$12 sps:$4 sm:$0xff]  }
  0x37   :  { %4077 = vmatpush2.bf16.msra.mxu0 %v6306_v2  ;;  %v6388_v2 = vld [vmem:[%s9157_s1 + $0x424] ss:$12 sps:$4 sm:$0xff]  }
  0x38   :  { %4118 = vmatpush2.bf16.msra.mxu1 %v6307_v3  ;;  %4078 = vmatprep.subr.bf16.mxu0 %v6308_v4  ;;  %v6391_v3 = vld [vmem:[%s9157_s1 + $0x5a4] ss:$12 sps:$4 sm:$0xff]   ;;  %v6386_v4 = vld [vmem:[%s9157_s1 + $0x420] ss:$12 sps:$4 sm:$0xff]  }
  0x39   :  { %4119 = vmatprep.subr.bf16.mxu1 %v6310_v5  ;;  %v6389_v5 = vld [vmem:[%s9157_s1 + $0x5a0] ss:$12 sps:$4 sm:$0xff]  }
  0x3b   :  { %4079 = vmatpush2.bf16.msra.mxu0 %v6312_v7  ;;  %v6394_v7 = vld [vmem:[%s9157_s1 + $0x40c] ss:$12 sps:$4 sm:$0xff]  }
  0x3c   :  { %4120 = vmatpush2.bf16.msra.mxu1 %v6313_v8  ;;  %4080 = vmatprep.subr.bf16.mxu0 %v6314_v9  ;;  %v6397_v8 = vld [vmem:[%s9157_s1 + $0x58c] ss:$12 sps:$4 sm:$0xff]   ;;  %v6392_v9 = vld [vmem:[%s9157_s1 + $0x408] ss:$12 sps:$4 sm:$0xff]  }
  0x3d   :  { %4121 = vmatprep.subr.bf16.mxu1 %v6316_v10  ;;  %v6395_v10 = vld [vmem:[%s9157_s1 + $0x588] ss:$12 sps:$4 sm:$0xff]  }
  0x3f   :  { %4081 = vmatpush2.bf16.msra.mxu0 %v6318_v12  ;;  %v6403_v12 = vld [vmem:[%s9157_s1 + $0x574] ss:$12 sps:$4 sm:$0xff]  }
  0x40   :  { %4122 = vmatpush2.bf16.msra.mxu1 %v6319_v14  ;;  %4132 = vmatprep.subr.bf16.mxu0 %v6322_v15  ;;  %v6398_v14 = vld [vmem:[%s9157_s1 + $0x3f0] ss:$12 sps:$4 sm:$0xff]  }
  0x41   :  { %4173 = vmatprep.subr.bf16.mxu1 %v6325_v16  ;;  %v6401_v15 = vld [vmem:[%s9157_s1 + $0x570] ss:$12 sps:$4 sm:$0xff]  }
  0x42   :  { %4083 = vmatmul.mubr.bf16.vlgmr.msra.gmra.mxu0 %v7269_v13  ;;  %v6406_v16 = vld [vmem:[%s9157_s1 + $0x3dc] ss:$12 sps:$4 sm:$0xff]  }
  0x43   :  { %4124 = vmatmul.mubr.bf16.vlgmr.msra.gmra.mxu1 %v7285_v18  ;;  %4133 = vmatpush1.bf16.msra.mxu0 %v6320_v19  ;;  %v6409_v19 = vld [vmem:[%s9157_s1 + $0x55c] ss:$12 sps:$4 sm:$0xff]  }
  0x44   :  { %4174 = vmatpush1.bf16.msra.mxu1 %v6323_v20  ;;  %4134 = vmatprep.subr.bf16.mxu0 %v6328_v21  ;;  %v6404_v20 = vld [vmem:[%s9157_s1 + $0x3d8] ss:$12 sps:$4 sm:$0xff]  }
  0x45   :  { %4175 = vmatprep.subr.bf16.mxu1 %v6331_v22  ;;  %4164 = vmatprep.mubr.bf16.mxu0 %v7281_v17  ;;  %v6407_v21 = vld [vmem:[%s9157_s1 + $0x558] ss:$12 sps:$4 sm:$0xff]  }
  0x46   :  { %4205 = vmatprep.mubr.bf16.mxu1 %v7301_v23  ;;  %v6412_v22 = vld [vmem:[%s9157_s1 + $0x3c4] ss:$12 sps:$4 sm:$0xff]  }
  0x47   :  { %4135 = vmatpush1.bf16.msra.mxu0 %v6326_v24  ;;  %v6415_v24 = vld [vmem:[%s9157_s1 + $0x544] ss:$12 sps:$4 sm:$0xff]  }
  0x48   :  { %4176 = vmatpush1.bf16.msra.mxu1 %v6329_v25  ;;  %4136 = vmatprep.subr.bf16.mxu0 %v6334_v26  ;;  %v6410_v25 = vld [vmem:[%s9157_s1 + $0x3c0] ss:$12 sps:$4 sm:$0xff]   ;;  %v7480_v26 = vrot.slane %v7249_v6, %v7191_v49 }
  0x49   :  { %4177 = vmatprep.subr.bf16.mxu1 %v6337_v27  ;;  %v6413_v27 = vld [vmem:[%s9157_s1 + $0x540] ss:$12 sps:$4 sm:$0xff]  }
  0x4a   :  { %v7493_v6 = vcombine.high %v7480_v26, %v7480_v26 }
  0x4b   :  { %4137 = vmatpush1.bf16.msra.mxu0 %v6332_v28  ;;  %v6419_v28 = vld [vmem:[%s9157_s1 + $0x6ac] ss:$12 sps:$4 sm:$0xff]  }
  0x4c   :  { %4178 = vmatpush1.bf16.msra.mxu1 %v6335_v29  ;;  %4138 = vmatprep.subr.bf16.mxu0 %v6340_v30  ;;  %v6422_v29 = vld [vmem:[%s9157_s1 + $0x82c] ss:$12 sps:$4 sm:$0xff]   ;;  %v6417_v30 = vld [vmem:[%s9157_s1 + $0x6a8] ss:$12 sps:$4 sm:$0xff]  }
  0x4d   :  { %4179 = vmatprep.subr.bf16.mxu1 %v6343_v31  ;;  %v6420_v31 = vld [vmem:[%s9157_s1 + $0x828] ss:$12 sps:$4 sm:$0xff]  }
  0x4f   :  { %4139 = vmatpush1.bf16.msra.mxu0 %v6338_v32  ;;  %v7504_v32 = vld [vmem:[%s9156_s0 + $0x8] sm:$0xff] }
  0x50   :  { %4180 = vmatpush1.bf16.msra.mxu1 %v6341_v33  ;;  %4140 = vmatprep.subr.bf16.mxu0 %v6346_v34  ;;  %v6425_v33 = vld [vmem:[%s9157_s1 + $0x694] ss:$12 sps:$4 sm:$0xff]  }
  0x51   :  { %4181 = vmatprep.subr.bf16.mxu1 %v6349_v35  ;;  %v6428_v34 = vld [vmem:[%s9157_s1 + $0x814] ss:$12 sps:$4 sm:$0xff]   ;;  %v7514_v35 = vrot.slane %v7504_v32, %v7191_v49 }
  0x53   :  { %4141 = vmatpush1.bf16.msra.mxu0 %v6344_v36  ;;  %v871_v36 = vcombine.high %v7514_v35, %v7514_v35 }
  0x54   :  { %4182 = vmatpush1.bf16.msra.mxu1 %v6347_v37  ;;  %4142 = vmatprep.subr.bf16.mxu0 %v6352_v38  ;;  %v6423_v37 = vld [vmem:[%s9157_s1 + $0x690] ss:$12 sps:$4 sm:$0xff]  }
  0x55   :  { %4183 = vmatprep.subr.bf16.mxu1 %v6355_v39  ;;  %v6426_v38 = vld [vmem:[%s9157_s1 + $0x810] ss:$12 sps:$4 sm:$0xff]  }
  0x56   :  { %v6431_v39 = vld [vmem:[%s9157_s1 + $0x67c] ss:$12 sps:$4 sm:$0xff]  }
  0x57   :  { %4143 = vmatpush1.bf16.msra.mxu0 %v6350_v40  ;;  %v6434_v40 = vld [vmem:[%s9157_s1 + $0x7fc] ss:$12 sps:$4 sm:$0xff]  }
  0x58   :  { %4184 = vmatpush1.bf16.msra.mxu1 %v6353_v41  ;;  %4144 = vmatprep.subr.bf16.mxu0 %v6358_v42  ;;  %v7533_v41 = vrot.slane %v871_v36, %v7191_v49  ;;  %v6495_v36 = vld [vmem:[%s9157_s1 + $0x6f0] ss:$12 sps:$4 sm:$0xff]  }
  0x59   :  { %4185 = vmatprep.subr.bf16.mxu1 %v6361_v44  ;;  %v6429_v44 = vld [vmem:[%s9157_s1 + $0x678] ss:$12 sps:$4 sm:$0xff]  }
  0x5a   :  { %v7538_v42 = vcombine.high %v7533_v41, %v7533_v41 }
  0x5b   :  { %4145 = vmatpush1.bf16.msra.mxu0 %v6356_v45  ;;  %v6432_v45 = vld [vmem:[%s9157_s1 + $0x7f8] ss:$12 sps:$4 sm:$0xff]  }
  0x5c   :  { %4186 = vmatpush1.bf16.msra.mxu1 %v6359_v46  ;;  %4146 = vmatprep.subr.bf16.mxu0 %v6364_v47  ;;  %v6437_v46 = vld [vmem:[%s9157_s1 + $0x664] ss:$12 sps:$4 sm:$0xff]  }
  0x5d   :  { %4187 = vmatprep.subr.bf16.mxu1 %v6367_v48  ;;  %v6440_v47 = vld [vmem:[%s9157_s1 + $0x7e4] ss:$12 sps:$4 sm:$0xff]   ;;  %v6435_v48 = vld [vmem:[%s9157_s1 + $0x660] ss:$12 sps:$4 sm:$0xff]  }
  0x5f   :  { %4147 = vmatpush1.bf16.msra.mxu0 %v6362_v50  ;;  %v6438_v50 = vld [vmem:[%s9157_s1 + $0x7e0] ss:$12 sps:$4 sm:$0xff]  }
  0x60   :  { %4188 = vmatpush1.bf16.msra.mxu1 %v6365_v51  ;;  %4148 = vmatprep.subr.bf16.mxu0 %v6370_v52  ;;  %v6443_v51 = vld [vmem:[%s9157_s1 + $0x64c] ss:$12 sps:$4 sm:$0xff]  }
  0x61   :  { %4189 = vmatprep.subr.bf16.mxu1 %v6373_v53  ;;  %v6446_v52 = vld [vmem:[%s9157_s1 + $0x7cc] ss:$12 sps:$4 sm:$0xff]   ;;  %v6441_v53 = vld [vmem:[%s9157_s1 + $0x648] ss:$12 sps:$4 sm:$0xff]  }
  0x63   :  { %4149 = vmatpush2.bf16.msra.mxu0 %v6368_v54  ;;  %v6444_v54 = vld [vmem:[%s9157_s1 + $0x7c8] ss:$12 sps:$4 sm:$0xff]  }
  0x64   :  { %4190 = vmatpush2.bf16.msra.mxu1 %v6371_v55  ;;  %4150 = vmatprep.subr.bf16.mxu0 %v6376_v56  ;;  %v6449_v55 = vld [vmem:[%s9157_s1 + $0x634] ss:$12 sps:$4 sm:$0xff]  }
  0x65   :  { %4191 = vmatprep.subr.bf16.mxu1 %v6379_v57  ;;  %v6452_v56 = vld [vmem:[%s9157_s1 + $0x7b4] ss:$12 sps:$4 sm:$0xff]   ;;  %v6447_v57 = vld [vmem:[%s9157_s1 + $0x630] ss:$12 sps:$4 sm:$0xff]  }
  0x67   :  { %4151 = vmatpush2.bf16.msra.mxu0 %v6374_v58  ;;  %v6450_v58 = vld [vmem:[%s9157_s1 + $0x7b0] ss:$12 sps:$4 sm:$0xff]  }
  0x68   :  { %4192 = vmatpush2.bf16.msra.mxu1 %v6377_v59  ;;  %4152 = vmatprep.subr.bf16.mxu0 %v6382_v61  ;;  %v6455_v59 = vld [vmem:[%s9157_s1 + $0x61c] ss:$12 sps:$4 sm:$0xff]  }
  0x69   :  { %4193 = vmatprep.subr.bf16.mxu1 %v6385_v62  ;;  %v6458_v61 = vld [vmem:[%s9157_s1 + $0x79c] ss:$12 sps:$4 sm:$0xff]   ;;  %v6453_v62 = vld [vmem:[%s9157_s1 + $0x618] ss:$12 sps:$4 sm:$0xff]  }
  0x6b   :  { %4153 = vmatpush2.bf16.msra.mxu0 %v6380_v63  ;;  %v6456_v63 = vld [vmem:[%s9157_s1 + $0x798] ss:$12 sps:$4 sm:$0xff]  }
  0x6c   :  { %4194 = vmatpush2.bf16.msra.mxu1 %v6383_v1  ;;  %4154 = vmatprep.subr.bf16.mxu0 %v6388_v2  ;;  %v6461_v1 = vld [vmem:[%s9157_s1 + $0x604] ss:$12 sps:$4 sm:$0xff]  }
  0x6d   :  { %4195 = vmatprep.subr.bf16.mxu1 %v6391_v3  ;;  %v6464_v2 = vld [vmem:[%s9157_s1 + $0x784] ss:$12 sps:$4 sm:$0xff]   ;;  %v6459_v3 = vld [vmem:[%s9157_s1 + $0x600] ss:$12 sps:$4 sm:$0xff]  }
  0x6f   :  { %4155 = vmatpush2.bf16.msra.mxu0 %v6386_v4  ;;  %v6462_v4 = vld [vmem:[%s9157_s1 + $0x780] ss:$12 sps:$4 sm:$0xff]  }
  0x70   :  { %4196 = vmatpush2.bf16.msra.mxu1 %v6389_v5  ;;  %4156 = vmatprep.subr.bf16.mxu0 %v6394_v7  ;;  %v6467_v5 = vld [vmem:[%s9157_s1 + $0x76c] ss:$12 sps:$4 sm:$0xff]  }
  0x71   :  { %4197 = vmatprep.subr.bf16.mxu1 %v6397_v8  ;;  %v6470_v7 = vld [vmem:[%s9157_s1 + $0x8ec] ss:$12 sps:$4 sm:$0xff]   ;;  %v6465_v8 = vld [vmem:[%s9157_s1 + $0x768] ss:$12 sps:$4 sm:$0xff]  }
  0x73   :  { %4157 = vmatpush2.bf16.msra.mxu0 %v6392_v9  ;;  %v6468_v9 = vld [vmem:[%s9157_s1 + $0x8e8] ss:$12 sps:$4 sm:$0xff]  }
  0x74   :  { %4198 = vmatpush2.bf16.msra.mxu1 %v6395_v10  ;;  %4158 = vmatprep.subr.bf16.mxu0 %v6400_v11  ;;  %v6473_v10 = vld [vmem:[%s9157_s1 + $0x754] ss:$12 sps:$4 sm:$0xff]  }
  0x75   :  { %4199 = vmatprep.subr.bf16.mxu1 %v6403_v12  ;;  %v6476_v11 = vld [vmem:[%s9157_s1 + $0x8d4] ss:$12 sps:$4 sm:$0xff]   ;;  %v6471_v12 = vld [vmem:[%s9157_s1 + $0x750] ss:$12 sps:$4 sm:$0xff]  }
  0x77   :  { %4159 = vmatpush2.bf16.msra.mxu0 %v6398_v14  ;;  %v6474_v14 = vld [vmem:[%s9157_s1 + $0x8d0] ss:$12 sps:$4 sm:$0xff]  }
  0x78   :  { %4200 = vmatpush2.bf16.msra.mxu1 %v6401_v15  ;;  %4160 = vmatprep.subr.bf16.mxu0 %v6406_v16  ;;  %v6479_v15 = vld [vmem:[%s9157_s1 + $0x73c] ss:$12 sps:$4 sm:$0xff]  }
  0x79   :  { %4201 = vmatprep.subr.bf16.mxu1 %v6409_v19  ;;  %v6482_v16 = vld [vmem:[%s9157_s1 + $0x8bc] ss:$12 sps:$4 sm:$0xff]   ;;  %v6477_v19 = vld [vmem:[%s9157_s1 + $0x738] ss:$12 sps:$4 sm:$0xff]  }
  0x7b   :  { %4161 = vmatpush2.bf16.msra.mxu0 %v6404_v20  ;;  %v6480_v20 = vld [vmem:[%s9157_s1 + $0x8b8] ss:$12 sps:$4 sm:$0xff]  }
  0x7c   :  { %4202 = vmatpush2.bf16.msra.mxu1 %v6407_v21  ;;  %4162 = vmatprep.subr.bf16.mxu0 %v6412_v22  ;;  %v6485_v21 = vld [vmem:[%s9157_s1 + $0x724] ss:$12 sps:$4 sm:$0xff]  }
  0x7d   :  { %4203 = vmatprep.subr.bf16.mxu1 %v6415_v24  ;;  %v6488_v22 = vld [vmem:[%s9157_s1 + $0x8a4] ss:$12 sps:$4 sm:$0xff]   ;;  %v6483_v24 = vld [vmem:[%s9157_s1 + $0x720] ss:$12 sps:$4 sm:$0xff]  }
  0x7f   :  { %4163 = vmatpush2.bf16.msra.mxu0 %v6410_v25  ;;  %v6486_v25 = vld [vmem:[%s9157_s1 + $0x8a0] ss:$12 sps:$4 sm:$0xff]  }
  0x80   :  { %4204 = vmatpush2.bf16.msra.mxu1 %v6413_v27  ;;  %4214 = vmatprep.subr.bf16.mxu0 %v6419_v28  ;;  %v6491_v27 = vld [vmem:[%s9157_s1 + $0x70c] ss:$12 sps:$4 sm:$0xff]  }
  0x81   :  { %4255 = vmatprep.subr.bf16.mxu1 %v6422_v29  ;;  %v6494_v28 = vld [vmem:[%s9157_s1 + $0x88c] ss:$12 sps:$4 sm:$0xff]   ;;  %v6489_v29 = vld [vmem:[%s9157_s1 + $0x708] ss:$12 sps:$4 sm:$0xff]  }
  0x82   :  { %4165 = vmatmul.mubr.bf16.vlgmr.msra.gmra.mxu0 %v7480_v26 }
  0x83   :  { %4206 = vmatmul.mubr.bf16.vlgmr.msra.gmra.mxu1 %v7493_v6  ;;  %4215 = vmatpush1.bf16.msra.mxu0 %v6417_v30  ;;  %v6492_v30 = vld [vmem:[%s9157_s1 + $0x888] ss:$12 sps:$4 sm:$0xff]  }
  0x84   :  { %4256 = vmatpush1.bf16.msra.mxu1 %v6420_v31  ;;  %4216 = vmatprep.subr.bf16.mxu0 %v6425_v33  ;;  %v6497_v31 = vld [vmem:[%s9157_s1 + $0x6f4] ss:$12 sps:$4 sm:$0xff]  }
  0x85   :  { %4257 = vmatprep.subr.bf16.mxu1 %v6428_v34  ;;  %4246 = vmatprep.mubr.bf16.mxu0 %v7533_v41  ;;  %v6500_v33 = vld [vmem:[%s9157_s1 + $0x874] ss:$12 sps:$4 sm:$0xff]   ;;  %v856_v34 = vcombine.high %v7504_v32, %v7504_v32  ;;  %v6506_v32 = vld [vmem:[%s9157_s1 + $0x85c] ss:$12 sps:$4 sm:$0xff]  }
  0x86   :  { %4287 = vmatprep.mubr.bf16.mxu1 %v7538_v42 }
  0x87   :  { %4217 = vmatpush1.bf16.msra.mxu0 %v6423_v37  ;;  %v6498_v37 = vld [vmem:[%s9157_s1 + $0x870] ss:$12 sps:$4 sm:$0xff]  }
  0x88   :  { %4258 = vmatpush1.bf16.msra.mxu1 %v6426_v38  ;;  %4218 = vmatprep.subr.bf16.mxu0 %v6431_v39  ;;  %v6503_v38 = vld [vmem:[%s9157_s1 + $0x6dc] ss:$12 sps:$4 sm:$0xff]   ;;  %v7688_v39 = vrot.slane %v856_v34, %v7191_v49 }
  0x89   :  { %4259 = vmatprep.subr.bf16.mxu1 %v6434_v40  ;;  %v6501_v40 = vld [vmem:[%s9157_s1 + $0x6d8] ss:$12 sps:$4 sm:$0xff]   ;;  %v6564_v34 = vld [vmem:[%s9157_s1 + $0xbe8] ss:$12 sps:$4 sm:$0xff]  }
  0x8b   :  { %4219 = vmatpush1.bf16.msra.mxu0 %v6429_v44  ;;  %v6504_v44 = vld [vmem:[%s9157_s1 + $0x858] ss:$12 sps:$4 sm:$0xff]  }
  0x8c   :  { %4260 = vmatpush1.bf16.msra.mxu1 %v6432_v45  ;;  %4220 = vmatprep.subr.bf16.mxu0 %v6437_v46  ;;  %v6509_v45 = vld [vmem:[%s9157_s1 + $0x6c4] ss:$12 sps:$4 sm:$0xff]  }
  0x8d   :  { %4261 = vmatprep.subr.bf16.mxu1 %v6440_v47  ;;  %v6512_v46 = vld [vmem:[%s9157_s1 + $0x844] ss:$12 sps:$4 sm:$0xff]   ;;  %v872_v47 = vcombine.high %v7688_v39, %v7688_v39 }
  0x8f   :  { %4221 = vmatpush1.bf16.msra.mxu0 %v6435_v48  ;;  %v7706_v48 = vrot.slane %v7514_v35, %v7191_v49  ;;  %v6518_v35 = vld [vmem:[%s9157_s1 + $0xb2c] ss:$12 sps:$4 sm:$0xff]  }
  0x90   :  { %4262 = vmatpush1.bf16.msra.mxu1 %v6438_v50  ;;  %4222 = vmatprep.subr.bf16.mxu0 %v6443_v51  ;;  %v6507_v50 = vld [vmem:[%s9157_s1 + $0x6c0] ss:$12 sps:$4 sm:$0xff]  }
  0x91   :  { %4263 = vmatprep.subr.bf16.mxu1 %v6446_v52  ;;  %v6510_v51 = vld [vmem:[%s9157_s1 + $0x840] ss:$12 sps:$4 sm:$0xff]  }
  0x92   :  { %v6515_v52 = vld [vmem:[%s9157_s1 + $0x9ac] ss:$12 sps:$4 sm:$0xff]  }
  0x93   :  { %4223 = vmatpush1.bf16.msra.mxu0 %v6441_v53  ;;  %v7721_v53 = vrot.slane %v872_v47, %v7191_v49  ;;  %v6581_v47 = vld [vmem:[%s9157_s1 + $0xa24] ss:$12 sps:$4 sm:$0xff]  }
  0x94   :  { %4264 = vmatpush1.bf16.msra.mxu1 %v6444_v54  ;;  %4224 = vmatprep.subr.bf16.mxu0 %v6449_v55  ;;  %v7725_v54 = vcombine.high %v7706_v48, %v7706_v48  ;;  %v6513_v55 = vld [vmem:[%s9157_s1 + $0x9a8] ss:$12 sps:$4 sm:$0xff]  }
  0x95   :  { %4265 = vmatprep.subr.bf16.mxu1 %v6452_v56  ;;  %v6516_v56 = vld [vmem:[%s9157_s1 + $0xb28] ss:$12 sps:$4 sm:$0xff]  }
  0x97   :  { %4225 = vmatpush1.bf16.msra.mxu0 %v6447_v57  ;;  %v6521_v57 = vld [vmem:[%s9157_s1 + $0x994] ss:$12 sps:$4 sm:$0xff]  }
  0x98   :  { %4266 = vmatpush1.bf16.msra.mxu1 %v6450_v58  ;;  %4226 = vmatprep.subr.bf16.mxu0 %v6455_v59  ;;  %v6524_v58 = vld [vmem:[%s9157_s1 + $0xb14] ss:$12 sps:$4 sm:$0xff]   ;;  %v7741_v59 = vcombine.high %v7721_v53, %v7721_v53 }
  0x99   :  { %4267 = vmatprep.subr.bf16.mxu1 %v6458_v61  ;;  %v6519_v61 = vld [vmem:[%s9157_s1 + $0x990] ss:$12 sps:$4 sm:$0xff]  }
  0x9b   :  { %4227 = vmatpush1.bf16.msra.mxu0 %v6453_v62  ;;  %v6522_v62 = vld [vmem:[%s9157_s1 + $0xb10] ss:$12 sps:$4 sm:$0xff]  }
  0x9c   :  { %4268 = vmatpush1.bf16.msra.mxu1 %v6456_v63  ;;  %4228 = vmatprep.subr.bf16.mxu0 %v6461_v1  ;;  %v6527_v63 = vld [vmem:[%s9157_s1 + $0x97c] ss:$12 sps:$4 sm:$0xff]  }
  0x9d   :  { %4269 = vmatprep.subr.bf16.mxu1 %v6464_v2  ;;  %v6530_v1 = vld [vmem:[%s9157_s1 + $0xafc] ss:$12 sps:$4 sm:$0xff]   ;;  %v6525_v2 = vld [vmem:[%s9157_s1 + $0x978] ss:$12 sps:$4 sm:$0xff]  }
  0x9f   :  { %4229 = vmatpush1.bf16.msra.mxu0 %v6459_v3  ;;  %v6528_v3 = vld [vmem:[%s9157_s1 + $0xaf8] ss:$12 sps:$4 sm:$0xff]  }
  0xa0   :  { %4270 = vmatpush1.bf16.msra.mxu1 %v6462_v4  ;;  %4230 = vmatprep.subr.bf16.mxu0 %v6467_v5  ;;  %v6533_v4 = vld [vmem:[%s9157_s1 + $0x964] ss:$12 sps:$4 sm:$0xff]  }
  0xa1   :  { %4271 = vmatprep.subr.bf16.mxu1 %v6470_v7  ;;  %v6536_v5 = vld [vmem:[%s9157_s1 + $0xae4] ss:$12 sps:$4 sm:$0xff]   ;;  %v6531_v7 = vld [vmem:[%s9157_s1 + $0x960] ss:$12 sps:$4 sm:$0xff]  }
  0xa3   :  { %4231 = vmatpush2.bf16.msra.mxu0 %v6465_v8  ;;  %v6534_v8 = vld [vmem:[%s9157_s1 + $0xae0] ss:$12 sps:$4 sm:$0xff]  }
  0xa4   :  { %4272 = vmatpush2.bf16.msra.mxu1 %v6468_v9  ;;  %4232 = vmatprep.subr.bf16.mxu0 %v6473_v10  ;;  %v6539_v9 = vld [vmem:[%s9157_s1 + $0x94c] ss:$12 sps:$4 sm:$0xff]  }
  0xa5   :  { %4273 = vmatprep.subr.bf16.mxu1 %v6476_v11  ;;  %v6542_v10 = vld [vmem:[%s9157_s1 + $0xacc] ss:$12 sps:$4 sm:$0xff]   ;;  %v6537_v11 = vld [vmem:[%s9157_s1 + $0x948] ss:$12 sps:$4 sm:$0xff]  }
  0xa7   :  { %4233 = vmatpush2.bf16.msra.mxu0 %v6471_v12  ;;  %v6540_v12 = vld [vmem:[%s9157_s1 + $0xac8] ss:$12 sps:$4 sm:$0xff]  }
  0xa8   :  { %4274 = vmatpush2.bf16.msra.mxu1 %v6474_v14  ;;  %4234 = vmatprep.subr.bf16.mxu0 %v6479_v15  ;;  %v6545_v14 = vld [vmem:[%s9157_s1 + $0x934] ss:$12 sps:$4 sm:$0xff]  }
  0xa9   :  { %4275 = vmatprep.subr.bf16.mxu1 %v6482_v16  ;;  %v6548_v15 = vld [vmem:[%s9157_s1 + $0xab4] ss:$12 sps:$4 sm:$0xff]   ;;  %v6543_v16 = vld [vmem:[%s9157_s1 + $0x930] ss:$12 sps:$4 sm:$0xff]  }
  0xab   :  { %4235 = vmatpush2.bf16.msra.mxu0 %v6477_v19  ;;  %v6546_v19 = vld [vmem:[%s9157_s1 + $0xab0] ss:$12 sps:$4 sm:$0xff]  }
  0xac   :  { %4276 = vmatpush2.bf16.msra.mxu1 %v6480_v20  ;;  %4236 = vmatprep.subr.bf16.mxu0 %v6485_v21  ;;  %v6551_v20 = vld [vmem:[%s9157_s1 + $0x91c] ss:$12 sps:$4 sm:$0xff]  }
  0xad   :  { %4277 = vmatprep.subr.bf16.mxu1 %v6488_v22  ;;  %v6554_v21 = vld [vmem:[%s9157_s1 + $0xa9c] ss:$12 sps:$4 sm:$0xff]   ;;  %v6549_v22 = vld [vmem:[%s9157_s1 + $0x918] ss:$12 sps:$4 sm:$0xff]  }
  0xaf   :  { %4237 = vmatpush2.bf16.msra.mxu0 %v6483_v24  ;;  %v6552_v24 = vld [vmem:[%s9157_s1 + $0xa98] ss:$12 sps:$4 sm:$0xff]  }
  0xb0   :  { %4278 = vmatpush2.bf16.msra.mxu1 %v6486_v25  ;;  %4238 = vmatprep.subr.bf16.mxu0 %v6491_v27  ;;  %v6557_v25 = vld [vmem:[%s9157_s1 + $0x904] ss:$12 sps:$4 sm:$0xff]  }
  0xb1   :  { %4279 = vmatprep.subr.bf16.mxu1 %v6494_v28  ;;  %v6560_v27 = vld [vmem:[%s9157_s1 + $0xa84] ss:$12 sps:$4 sm:$0xff]   ;;  %v6555_v28 = vld [vmem:[%s9157_s1 + $0x900] ss:$12 sps:$4 sm:$0xff]  }
  0xb3   :  { %4239 = vmatpush2.bf16.msra.mxu0 %v6489_v29  ;;  %v6558_v29 = vld [vmem:[%s9157_s1 + $0xa80] ss:$12 sps:$4 sm:$0xff]  }
  0xb4   :  { %4280 = vmatpush2.bf16.msra.mxu1 %v6492_v30  ;;  %4240 = vmatprep.subr.bf16.mxu0 %v6497_v31  ;;  %v6563_v30 = vld [vmem:[%s9157_s1 + $0xa6c] ss:$12 sps:$4 sm:$0xff]  }
  0xb5   :  { %4281 = vmatprep.subr.bf16.mxu1 %v6500_v33  ;;  %v6566_v31 = vld [vmem:[%s9157_s1 + $0xbec] ss:$12 sps:$4 sm:$0xff]   ;;  %v6561_v33 = vld [vmem:[%s9157_s1 + $0xa68] ss:$12 sps:$4 sm:$0xff]  }
  0xb7   :  { %4241 = vmatpush2.bf16.msra.mxu0 %v6495_v36  ;;  %v6569_v36 = vld [vmem:[%s9157_s1 + $0xa54] ss:$12 sps:$4 sm:$0xff]  }
  0xb8   :  { %4282 = vmatpush2.bf16.msra.mxu1 %v6498_v37  ;;  %4242 = vmatprep.subr.bf16.mxu0 %v6503_v38  ;;  %v6572_v37 = vld [vmem:[%s9157_s1 + $0xbd4] ss:$12 sps:$4 sm:$0xff]   ;;  %v6567_v38 = vld [vmem:[%s9157_s1 + $0xa50] ss:$12 sps:$4 sm:$0xff]  }
  0xb9   :  { %4283 = vmatprep.subr.bf16.mxu1 %v6506_v32  ;;  %v6570_v32 = vld [vmem:[%s9157_s1 + $0xbd0] ss:$12 sps:$4 sm:$0xff]  }
  0xbb   :  { %4243 = vmatpush2.bf16.msra.mxu0 %v6501_v40  ;;  %v6575_v40 = vld [vmem:[%s9157_s1 + $0xa3c] ss:$12 sps:$4 sm:$0xff]  }
  0xbc   :  { %4284 = vmatpush2.bf16.msra.mxu1 %v6504_v44  ;;  %4244 = vmatprep.subr.bf16.mxu0 %v6509_v45  ;;  %v6578_v44 = vld [vmem:[%s9157_s1 + $0xbbc] ss:$12 sps:$4 sm:$0xff]   ;;  %v6573_v45 = vld [vmem:[%s9157_s1 + $0xa38] ss:$12 sps:$4 sm:$0xff]  }
  0xbd   :  { %4285 = vmatprep.subr.bf16.mxu1 %v6512_v46  ;;  %v6576_v46 = vld [vmem:[%s9157_s1 + $0xbb8] ss:$12 sps:$4 sm:$0xff]  }
  0xbf   :  { %4245 = vmatpush2.bf16.msra.mxu0 %v6507_v50  ;;  %v6584_v50 = vld [vmem:[%s9157_s1 + $0xba4] ss:$12 sps:$4 sm:$0xff]  }
  0xc0   :  { %4286 = vmatpush2.bf16.msra.mxu1 %v6510_v51  ;;  %4296 = vmatprep.subr.bf16.mxu0 %v6515_v52  ;;  %v6579_v51 = vld [vmem:[%s9157_s1 + $0xa20] ss:$12 sps:$4 sm:$0xff]  }
  0xc1   :  { %4337 = vmatprep.subr.bf16.mxu1 %v6518_v35  ;;  %v6582_v52 = vld [vmem:[%s9157_s1 + $0xba0] ss:$12 sps:$4 sm:$0xff]  }
  0xc2   :  { %4247 = vmatmul.mubr.bf16.vlgmr.msra.gmra.mxu0 %v7706_v48  ;;  %v6587_v35 = vld [vmem:[%s9157_s1 + $0xa0c] ss:$12 sps:$4 sm:$0xff]  }
  0xc3   :  { %4288 = vmatmul.mubr.bf16.vlgmr.msra.gmra.mxu1 %v7725_v54  ;;  %4297 = vmatpush1.bf16.msra.mxu0 %v6513_v55  ;;  %v6590_v55 = vld [vmem:[%s9157_s1 + $0xb8c] ss:$12 sps:$4 sm:$0xff]  }
  0xc4   :  { %4338 = vmatpush1.bf16.msra.mxu1 %v6516_v56  ;;  %4298 = vmatprep.subr.bf16.mxu0 %v6521_v57  ;;  %v6585_v56 = vld [vmem:[%s9157_s1 + $0xa08] ss:$12 sps:$4 sm:$0xff]  }
  0xc5   :  { %4339 = vmatprep.subr.bf16.mxu1 %v6524_v58  ;;  %4328 = vmatprep.mubr.bf16.mxu0 %v7721_v53  ;;  %v6588_v57 = vld [vmem:[%s9157_s1 + $0xb88] ss:$12 sps:$4 sm:$0xff]  }
  0xc6   :  { %4369 = vmatprep.mubr.bf16.mxu1 %v7741_v59  ;;  %v6593_v58 = vld [vmem:[%s9157_s1 + $0x9f4] ss:$12 sps:$4 sm:$0xff]  }
  0xc7   :  { %4299 = vmatpush1.bf16.msra.mxu0 %v6519_v61  ;;  %v6596_v61 = vld [vmem:[%s9157_s1 + $0xb74] ss:$12 sps:$4 sm:$0xff]  }
  0xc8   :  { %4340 = vmatpush1.bf16.msra.mxu1 %v6522_v62  ;;  %4300 = vmatprep.subr.bf16.mxu0 %v6527_v63  ;;  %v6591_v62 = vld [vmem:[%s9157_s1 + $0x9f0] ss:$12 sps:$4 sm:$0xff]  }
  0xc9   :  { %4341 = vmatprep.subr.bf16.mxu1 %v6530_v1  ;;  %v7897_v63 = vld [vmem:[%s9156_s0 + $0x10] sm:$0xff] }
  0xca   :  { %v6594_v1 = vld [vmem:[%s9157_s1 + $0xb70] ss:$12 sps:$4 sm:$0xff]  }
  0xcb   :  { %4301 = vmatpush1.bf16.msra.mxu0 %v6525_v2  ;;  %v6599_v2 = vld [vmem:[%s9157_s1 + $0x9dc] ss:$12 sps:$4 sm:$0xff]  }
  0xcc   :  { %4342 = vmatpush1.bf16.msra.mxu1 %v6528_v3  ;;  %4302 = vmatprep.subr.bf16.mxu0 %v6533_v4  ;;  %v6602_v3 = vld [vmem:[%s9157_s1 + $0xb5c] ss:$12 sps:$4 sm:$0xff]   ;;  %v7910_v4 = vrot.slane %v7897_v63, %v7191_v49 }
  0xcd   :  { %4343 = vmatprep.subr.bf16.mxu1 %v6536_v5  ;;  %v6597_v5 = vld [vmem:[%s9157_s1 + $0x9d8] ss:$12 sps:$4 sm:$0xff]  }
  0xcf   :  { %4303 = vmatpush1.bf16.msra.mxu0 %v6531_v7  ;;  %v6600_v7 = vld [vmem:[%s9157_s1 + $0xb58] ss:$12 sps:$4 sm:$0xff]  }
  0xd0   :  { %4344 = vmatpush1.bf16.msra.mxu1 %v6534_v8  ;;  %4304 = vmatprep.subr.bf16.mxu0 %v6539_v9  ;;  %v6605_v8 = vld [vmem:[%s9157_s1 + $0x9c4] ss:$12 sps:$4 sm:$0xff]  }
  0xd1   :  { %4345 = vmatprep.subr.bf16.mxu1 %v6542_v10  ;;  %v6608_v9 = vld [vmem:[%s9157_s1 + $0xb44] ss:$12 sps:$4 sm:$0xff]   ;;  %v920_v10 = vcombine.high %v7910_v4, %v7910_v4 }
  0xd3   :  { %4305 = vmatpush1.bf16.msra.mxu0 %v6537_v11  ;;  %v6603_v11 = vld [vmem:[%s9157_s1 + $0x9c0] ss:$12 sps:$4 sm:$0xff]  }
  0xd4   :  { %4346 = vmatpush1.bf16.msra.mxu1 %v6540_v12  ;;  %4306 = vmatprep.subr.bf16.mxu0 %v6545_v14  ;;  %v7931_v12 = vrot.slane %v7688_v39, %v7191_v49  ;;  %v6606_v14 = vld [vmem:[%s9157_s1 + $0xb40] ss:$12 sps:$4 sm:$0xff]  }
  0xd5   :  { %4347 = vmatprep.subr.bf16.mxu1 %v6548_v15  ;;  %v6612_v15 = vld [vmem:[%s9157_s1 + $0xcac] ss:$12 sps:$4 sm:$0xff]  }
  0xd6   :  { %v7947_v39 = vcombine.high %v7931_v12, %v7931_v12 }
  0xd7   :  { %4307 = vmatpush1.bf16.msra.mxu0 %v6543_v16  ;;  %v6615_v16 = vld [vmem:[%s9157_s1 + $0xe2c] ss:$12 sps:$4 sm:$0xff]  }
  0xd8   :  { %4348 = vmatpush1.bf16.msra.mxu1 %v6546_v19  ;;  %4308 = vmatprep.subr.bf16.mxu0 %v6551_v20  ;;  %v7943_v19 = vrot.slane %v920_v10, %v7191_v49  ;;  %v6610_v20 = vld [vmem:[%s9157_s1 + $0xca8] ss:$12 sps:$4 sm:$0xff]   ;;  %v6657_v10 = vld [vmem:[%s9157_s1 + $0xd84] ss:$12 sps:$4 sm:$0xff]  }
  0xd9   :  { %4349 = vmatprep.subr.bf16.mxu1 %v6554_v21  ;;  %v6613_v21 = vld [vmem:[%s9157_s1 + $0xe28] ss:$12 sps:$4 sm:$0xff]  }
  0xdb   :  { %4309 = vmatpush1.bf16.msra.mxu0 %v6549_v22  ;;  %v6618_v22 = vld [vmem:[%s9157_s1 + $0xc94] ss:$12 sps:$4 sm:$0xff]  }
  0xdc   :  { %4350 = vmatpush1.bf16.msra.mxu1 %v6552_v24  ;;  %4310 = vmatprep.subr.bf16.mxu0 %v6557_v25  ;;  %v6621_v24 = vld [vmem:[%s9157_s1 + $0xe14] ss:$12 sps:$4 sm:$0xff]   ;;  %v6616_v25 = vld [vmem:[%s9157_s1 + $0xc90] ss:$12 sps:$4 sm:$0xff]  }
  0xdd   :  { %4351 = vmatprep.subr.bf16.mxu1 %v6560_v27  ;;  %v7966_v27 = vcombine.high %v7943_v19, %v7943_v19 }
  0xdf   :  { %4311 = vmatpush1.bf16.msra.mxu0 %v6555_v28 }
  0xe0   :  { %4352 = vmatpush1.bf16.msra.mxu1 %v6558_v29  ;;  %4312 = vmatprep.subr.bf16.mxu0 %v6563_v30  ;;  %v6619_v30 = vld [vmem:[%s9157_s1 + $0xe10] ss:$12 sps:$4 sm:$0xff]  }
  0xe1   :  { %4353 = vmatprep.subr.bf16.mxu1 %v6566_v31 }
  0xe3   :  { %4313 = vmatpush2.bf16.msra.mxu0 %v6561_v33  ;;  %v6624_v33 = vld [vmem:[%s9157_s1 + $0xc7c] ss:$12 sps:$4 sm:$0xff]  }
  0xe4   :  { %4354 = vmatpush2.bf16.msra.mxu1 %v6564_v34  ;;  %4314 = vmatprep.subr.bf16.mxu0 %v6569_v36 }
  0xe5   :  { %4355 = vmatprep.subr.bf16.mxu1 %v6572_v37  ;;  %v6627_v37 = vld [vmem:[%s9157_s1 + $0xdfc] ss:$12 sps:$4 sm:$0xff]  }
  0xe7   :  { %4315 = vmatpush2.bf16.msra.mxu0 %v6567_v38 }
  0xe8   :  { %4356 = vmatpush2.bf16.msra.mxu1 %v6570_v32  ;;  %4316 = vmatprep.subr.bf16.mxu0 %v6575_v40  ;;  %v6622_v32 = vld [vmem:[%s9157_s1 + $0xc78] ss:$12 sps:$4 sm:$0xff]  }
  0xe9   :  { %4357 = vmatprep.subr.bf16.mxu1 %v6578_v44 }
  0xeb   :  { %4317 = vmatpush2.bf16.msra.mxu0 %v6573_v45  ;;  %v6625_v45 = vld [vmem:[%s9157_s1 + $0xdf8] ss:$12 sps:$4 sm:$0xff]  }
  0xec   :  { %4358 = vmatpush2.bf16.msra.mxu1 %v6576_v46  ;;  %4318 = vmatprep.subr.bf16.mxu0 %v6581_v47  ;;  %v6630_v46 = vld [vmem:[%s9157_s1 + $0xc64] ss:$12 sps:$4 sm:$0xff]  }
  0xed   :  { %4359 = vmatprep.subr.bf16.mxu1 %v6584_v50 }
  0xef   :  { %4319 = vmatpush2.bf16.msra.mxu0 %v6579_v51  ;;  %v6633_v51 = vld [vmem:[%s9157_s1 + $0xde4] ss:$12 sps:$4 sm:$0xff]  }
  0xf0   :  { %4360 = vmatpush2.bf16.msra.mxu1 %v6582_v52  ;;  %4320 = vmatprep.subr.bf16.mxu0 %v6587_v35  ;;  %v6628_v52 = vld [vmem:[%s9157_s1 + $0xc60] ss:$12 sps:$4 sm:$0xff]  }
  0xf1   :  { %4361 = vmatprep.subr.bf16.mxu1 %v6590_v55  ;;  %v6631_v35 = vld [vmem:[%s9157_s1 + $0xde0] ss:$12 sps:$4 sm:$0xff]  }
  0xf2   :  { %v6636_v55 = vld [vmem:[%s9157_s1 + $0xc4c] ss:$12 sps:$4 sm:$0xff]  }
  0xf3   :  { %4321 = vmatpush2.bf16.msra.mxu0 %v6585_v56  ;;  %v6639_v56 = vld [vmem:[%s9157_s1 + $0xdcc] ss:$12 sps:$4 sm:$0xff]  }
  0xf4   :  { %4362 = vmatpush2.bf16.msra.mxu1 %v6588_v57  ;;  %4322 = vmatprep.subr.bf16.mxu0 %v6593_v58  ;;  %v6634_v57 = vld [vmem:[%s9157_s1 + $0xc48] ss:$12 sps:$4 sm:$0xff]  }
  0xf5   :  { %4363 = vmatprep.subr.bf16.mxu1 %v6596_v61  ;;  %v6637_v58 = vld [vmem:[%s9157_s1 + $0xdc8] ss:$12 sps:$4 sm:$0xff]  }
  0xf6   :  { %v6642_v61 = vld [vmem:[%s9157_s1 + $0xc34] ss:$12 sps:$4 sm:$0xff]  }
  0xf7   :  { %4323 = vmatpush2.bf16.msra.mxu0 %v6591_v62  ;;  %v6645_v62 = vld [vmem:[%s9157_s1 + $0xdb4] ss:$12 sps:$4 sm:$0xff]  }
  0xf8   :  { %4364 = vmatpush2.bf16.msra.mxu1 %v6594_v1  ;;  %4324 = vmatprep.subr.bf16.mxu0 %v6599_v2  ;;  %v6640_v1 = vld [vmem:[%s9157_s1 + $0xc30] ss:$12 sps:$4 sm:$0xff]  }
  0xf9   :  { %4365 = vmatprep.subr.bf16.mxu1 %v6602_v3  ;;  %v6643_v2 = vld [vmem:[%s9157_s1 + $0xdb0] ss:$12 sps:$4 sm:$0xff]  }
  0xfa   :  { %v6648_v3 = vld [vmem:[%s9157_s1 + $0xc1c] ss:$12 sps:$4 sm:$0xff]  }
  0xfb   :  { %4325 = vmatpush2.bf16.msra.mxu0 %v6597_v5  ;;  %v6651_v5 = vld [vmem:[%s9157_s1 + $0xd9c] ss:$12 sps:$4 sm:$0xff]  }
  0xfc   :  { %4366 = vmatpush2.bf16.msra.mxu1 %v6600_v7  ;;  %4326 = vmatprep.subr.bf16.mxu0 %v6605_v8  ;;  %v6646_v7 = vld [vmem:[%s9157_s1 + $0xc18] ss:$12 sps:$4 sm:$0xff]  }
  0xfd   :  { %4367 = vmatprep.subr.bf16.mxu1 %v6608_v9  ;;  %v6649_v8 = vld [vmem:[%s9157_s1 + $0xd98] ss:$12 sps:$4 sm:$0xff]  }
  0xfe   :  { %v6654_v9 = vld [vmem:[%s9157_s1 + $0xc04] ss:$12 sps:$4 sm:$0xff]  }
  0xff   :  { %4327 = vmatpush2.bf16.msra.mxu0 %v6603_v11  ;;  %v6652_v11 = vld [vmem:[%s9157_s1 + $0xc00] ss:$12 sps:$4 sm:$0xff]  }
 0x100   :  { %4368 = vmatpush2.bf16.msra.mxu1 %v6606_v14  ;;  %4378 = vmatprep.subr.bf16.mxu0 %v6612_v15  ;;  %v6655_v14 = vld [vmem:[%s9157_s1 + $0xd80] ss:$12 sps:$4 sm:$0xff]  }
 0x101   :  { %4419 = vmatprep.subr.bf16.mxu1 %v6615_v16  ;;  %v6660_v15 = vld [vmem:[%s9157_s1 + $0xd6c] ss:$12 sps:$4 sm:$0xff]  }
 0x102   :  { %v4084_v28 = vpop.f32.mrf.mxu0  ;;  %4329 = vmatmul.mubr.bf16.vlgmr.msra.gmra.mxu0 %v7931_v12  ;;  %v6663_v16 = vld [vmem:[%s9157_s1 + $0xeec] ss:$12 sps:$4 sm:$0xff]  }
 0x103   :  { %v4125_v29 = vpop.f32.mrf.mxu1  ;;  %4370 = vmatmul.mubr.bf16.vlgmr.msra.gmra.mxu1 %v7947_v39  ;;  %4379 = vmatpush1.bf16.msra.mxu0 %v6610_v20  ;;  %v6658_v20 = vld [vmem:[%s9157_s1 + $0xd68] ss:$12 sps:$4 sm:$0xff]  }
 0x104   :  { %v7973_v31 = vadd.f32 %v4125_v29, %v4084_v28  ;;  %4420 = vmatpush1.bf16.msra.mxu1 %v6613_v21  ;;  %v4086_v34 = vpop.f32.mrf.mxu0  ;;  %4380 = vmatprep.subr.bf16.mxu0 %v6618_v22  ;;  %v6661_v21 = vld [vmem:[%s9157_s1 + $0xee8] ss:$12 sps:$4 sm:$0xff]   ;;  %v6667_v28 = vld [vmem:[%s9157_s1 + $0xed0] ss:$12 sps:$4 sm:$0xff]  }
 0x105   :  { %v4127_v36 = vpop.f32.mrf.mxu1  ;;  %4421 = vmatprep.subr.bf16.mxu1 %v6621_v24  ;;  %4410 = vmatprep.mubr.bf16.mxu0 %v7943_v19  ;;  %v6666_v22 = vld [vmem:[%s9157_s1 + $0xd54] ss:$12 sps:$4 sm:$0xff]   ;;  %v6672_v29 = vld [vmem:[%s9157_s1 + $0xd3c] ss:$12 sps:$4 sm:$0xff]  }
 0x106   :  { %v7981_v38 = vadd.f32 %v4127_v36, %v4086_v34  ;;  %4451 = vmatprep.mubr.bf16.mxu1 %v7966_v27  ;;  %v4088_v40 = vpop.f32.mrf.mxu0  ;;  %v6669_v24 = vld [vmem:[%s9157_s1 + $0xed4] ss:$12 sps:$4 sm:$0xff]   ;;  %v6673_v34 = vld [vmem:[%s9157_s1 + $0xeb8] ss:$12 sps:$4 sm:$0xff]  }
 0x107   :  { %v4129_v44 = vpop.f32.mrf.mxu1  ;;  %4381 = vmatpush1.bf16.msra.mxu0 %v6616_v25  ;;  %v6664_v25 = vld [vmem:[%s9157_s1 + $0xd50] ss:$12 sps:$4 sm:$0xff]   ;;  %v6679_v40 = vld [vmem:[%s9157_s1 + $0xea0] ss:$12 sps:$4 sm:$0xff]  }
 0x108   :  { %4422 = vmatpush1.bf16.msra.mxu1 %v6619_v30  ;;  %v4089_v47 = vpop.f32.mrf.mxu0  ;;  %4382 = vmatprep.subr.bf16.mxu0 %v6624_v33  ;;  %v6675_v30 = vld [vmem:[%s9157_s1 + $0xebc] ss:$12 sps:$4 sm:$0xff]   ;;  %v6670_v33 = vld [vmem:[%s9157_s1 + $0xd38] ss:$12 sps:$4 sm:$0xff]  }
 0x109   :  { %v4130_v50 = vpop.f32.mrf.mxu1  ;;  %4423 = vmatprep.subr.bf16.mxu1 %v6627_v37  ;;  %v6678_v36 = vld [vmem:[%s9157_s1 + $0xd24] ss:$12 sps:$4 sm:$0xff]   ;;  %v6684_v44 = vld [vmem:[%s9157_s1 + $0xd0c] ss:$12 sps:$4 sm:$0xff]   ;;  %v6685_v47 = vld [vmem:[%s9157_s1 + $0xe88] ss:$12 sps:$4 sm:$0xff]  }
 0x10a   :  { %v6681_v37 = vld [vmem:[%s9157_s1 + $0xea4] ss:$12 sps:$4 sm:$0xff]   ;;  %v6690_v50 = vld [vmem:[%s9157_s1 + $0xcf4] ss:$12 sps:$4 sm:$0xff]  }
 0x10b   :  { %4383 = vmatpush1.bf16.msra.mxu0 %v6622_v32  ;;  %v6676_v32 = vld [vmem:[%s9157_s1 + $0xd20] ss:$12 sps:$4 sm:$0xff]  }
 0x10c   :  { %4424 = vmatpush1.bf16.msra.mxu1 %v6625_v45  ;;  %4384 = vmatprep.subr.bf16.mxu0 %v6630_v46  ;;  %v6687_v45 = vld [vmem:[%s9157_s1 + $0xe8c] ss:$12 sps:$4 sm:$0xff]   ;;  %v6682_v46 = vld [vmem:[%s9157_s1 + $0xd08] ss:$12 sps:$4 sm:$0xff]  }
 0x10d   :  { %4425 = vmatprep.subr.bf16.mxu1 %v6633_v51  ;;  %v6693_v51 = vld [vmem:[%s9157_s1 + $0xe74] ss:$12 sps:$4 sm:$0xff]  }
 0x10f   :  { %4385 = vmatpush1.bf16.msra.mxu0 %v6628_v52  ;;  %v6688_v52 = vld [vmem:[%s9157_s1 + $0xcf0] ss:$12 sps:$4 sm:$0xff]  }
 0x110   :  { %4426 = vmatpush1.bf16.msra.mxu1 %v6631_v35  ;;  %4386 = vmatprep.subr.bf16.mxu0 %v6636_v55  ;;  %v905_v35 = vcombine.high %v7897_v63, %v7897_v63  ;;  %v6691_v55 = vld [vmem:[%s9157_s1 + $0xe70] ss:$12 sps:$4 sm:$0xff]   ;;  %v6694_v63 = vld [vmem:[%s9157_s1 + $0xcd8] ss:$12 sps:$4 sm:$0xff]  }
 0x111   :  { %4427 = vmatprep.subr.bf16.mxu1 %v6639_v56  ;;  %v6696_v56 = vld [vmem:[%s9157_s1 + $0xcdc] ss:$12 sps:$4 sm:$0xff]  }
 0x113   :  { %4387 = vmatpush1.bf16.msra.mxu0 %v6634_v57  ;;  %v6699_v57 = vld [vmem:[%s9157_s1 + $0xe5c] ss:$12 sps:$4 sm:$0xff]  }
 0x114   :  { %4428 = vmatpush1.bf16.msra.mxu1 %v6637_v58  ;;  %4388 = vmatprep.subr.bf16.mxu0 %v6642_v61  ;;  %v8135_v58 = vrot.slane %v905_v35, %v7191_v49  ;;  %v6697_v61 = vld [vmem:[%s9157_s1 + $0xe58] ss:$12 sps:$4 sm:$0xff]  }
 0x115   :  { %4429 = vmatprep.subr.bf16.mxu1 %v6645_v62  ;;  %v6702_v62 = vld [vmem:[%s9157_s1 + $0xcc4] ss:$12 sps:$4 sm:$0xff]   ;;  %v6732_v35 = vld [vmem:[%s9157_s1 + $0xf4c] ss:$12 sps:$4 sm:$0xff]  }
 0x117   :  { %4389 = vmatpush1.bf16.msra.mxu0 %v6640_v1  ;;  %v6705_v1 = vld [vmem:[%s9157_s1 + $0xe44] ss:$12 sps:$4 sm:$0xff]  }
 0x118   :  { %4430 = vmatpush1.bf16.msra.mxu1 %v6643_v2  ;;  %4390 = vmatprep.subr.bf16.mxu0 %v6648_v3  ;;  %v6700_v2 = vld [vmem:[%s9157_s1 + $0xcc0] ss:$12 sps:$4 sm:$0xff]   ;;  %v921_v3 = vcombine.high %v8135_v58, %v8135_v58 }
 0x119   :  { %4431 = vmatprep.subr.bf16.mxu1 %v6651_v5  ;;  %v6703_v5 = vld [vmem:[%s9157_s1 + $0xe40] ss:$12 sps:$4 sm:$0xff]  }
 0x11b   :  { %4391 = vmatpush1.bf16.msra.mxu0 %v6646_v7  ;;  %v8156_v7 = vrot.slane %v7910_v4, %v7191_v49 }
 0x11c   :  { %4432 = vmatpush1.bf16.msra.mxu1 %v6649_v8  ;;  %4392 = vmatprep.subr.bf16.mxu0 %v6654_v9  ;;  %v6708_v8 = vld [vmem:[%s9157_s1 + $0xfac] ss:$12 sps:$4 sm:$0xff]  }
 0x11d   :  { %4433 = vmatprep.subr.bf16.mxu1 %v6657_v10  ;;  %v6711_v9 = vld [vmem:[%s9157_s1 + $0x112c] ss:$12 sps:$4 sm:$0xff]   ;;  %v6706_v10 = vld [vmem:[%s9157_s1 + $0xfa8] ss:$12 sps:$4 sm:$0xff]   ;;  %v8172_v4 = vcombine.high %v8156_v7, %v8156_v7 }
 0x11f   :  { %4393 = vmatpush1.bf16.msra.mxu0 %v6652_v11  ;;  %v8168_v11 = vrot.slane %v921_v3, %v7191_v49  ;;  %v6747_v3 = vld [vmem:[%s9157_s1 + $0x109c] ss:$12 sps:$4 sm:$0xff]  }
 0x120   :  { %4434 = vmatpush1.bf16.msra.mxu1 %v6655_v14  ;;  %4394 = vmatprep.subr.bf16.mxu0 %v6660_v15  ;;  %v6709_v14 = vld [vmem:[%s9157_s1 + $0x1128] ss:$12 sps:$4 sm:$0xff]  }
 0x121   :  { %4435 = vmatprep.subr.bf16.mxu1 %v6663_v16  ;;  %v6714_v15 = vld [vmem:[%s9157_s1 + $0xf94] ss:$12 sps:$4 sm:$0xff]  }
 0x122   :  { %v6717_v16 = vld [vmem:[%s9157_s1 + $0x1114] ss:$12 sps:$4 sm:$0xff]  }
 0x123   :  { %4395 = vmatpush2.bf16.msra.mxu0 %v6658_v20  ;;  %v6712_v20 = vld [vmem:[%s9157_s1 + $0xf90] ss:$12 sps:$4 sm:$0xff]  }
 0x124   :  { %4436 = vmatpush2.bf16.msra.mxu1 %v6661_v21  ;;  %4396 = vmatprep.subr.bf16.mxu0 %v6666_v22  ;;  %v8188_v21 = vcombine.high %v8168_v11, %v8168_v11 }
 0x125   :  { %4437 = vmatprep.subr.bf16.mxu1 %v6669_v24 }
 0x127   :  { %4397 = vmatpush2.bf16.msra.mxu0 %v6664_v25  ;;  %v6715_v25 = vld [vmem:[%s9157_s1 + $0x1110] ss:$12 sps:$4 sm:$0xff]  }
 0x128   :  { %4438 = vmatpush2.bf16.msra.mxu1 %v6667_v28  ;;  %4398 = vmatprep.subr.bf16.mxu0 %v6672_v29  ;;  %v6720_v29 = vld [vmem:[%s9157_s1 + $0xf7c] ss:$12 sps:$4 sm:$0xff]  }
 0x129   :  { %4439 = vmatprep.subr.bf16.mxu1 %v6675_v30 }
 0x12b   :  { %4399 = vmatpush2.bf16.msra.mxu0 %v6670_v33 }
 0x12c   :  { %4440 = vmatpush2.bf16.msra.mxu1 %v6673_v34  ;;  %4400 = vmatprep.subr.bf16.mxu0 %v6678_v36  ;;  %v6723_v34 = vld [vmem:[%s9157_s1 + $0x10fc] ss:$12 sps:$4 sm:$0xff]  }
 0x12d   :  { %4441 = vmatprep.subr.bf16.mxu1 %v6681_v37 }
 0x12f   :  { %4401 = vmatpush2.bf16.msra.mxu0 %v6676_v32 }
 0x130   :  { %4442 = vmatpush2.bf16.msra.mxu1 %v6679_v40  ;;  %4402 = vmatprep.subr.bf16.mxu0 %v6684_v44  ;;  %v6721_v44 = vld [vmem:[%s9157_s1 + $0x10f8] ss:$12 sps:$4 sm:$0xff]  }
 0x131   :  { %4443 = vmatprep.subr.bf16.mxu1 %v6687_v45 }
 0x133   :  { %4403 = vmatpush2.bf16.msra.mxu0 %v6682_v46 }
 0x134   :  { %4444 = vmatpush2.bf16.msra.mxu1 %v6685_v47  ;;  %4404 = vmatprep.subr.bf16.mxu0 %v6690_v50  ;;  %v6729_v50 = vld [vmem:[%s9157_s1 + $0x10e4] ss:$12 sps:$4 sm:$0xff]  }
 0x135   :  { %4445 = vmatprep.subr.bf16.mxu1 %v6693_v51  ;;  %v6724_v51 = vld [vmem:[%s9157_s1 + $0xf60] ss:$12 sps:$4 sm:$0xff]  }
 0x137   :  { %4405 = vmatpush2.bf16.msra.mxu0 %v6688_v52  ;;  %v6727_v52 = vld [vmem:[%s9157_s1 + $0x10e0] ss:$12 sps:$4 sm:$0xff]  }
 0x138   :  { %4446 = vmatpush2.bf16.msra.mxu1 %v6691_v55  ;;  %4406 = vmatprep.subr.bf16.mxu0 %v6696_v56  ;;  %v6735_v55 = vld [vmem:[%s9157_s1 + $0x10cc] ss:$12 sps:$4 sm:$0xff]   ;;  %v6730_v56 = vld [vmem:[%s9157_s1 + $0xf48] ss:$12 sps:$4 sm:$0xff]  }
 0x139   :  { %4447 = vmatprep.subr.bf16.mxu1 %v6699_v57  ;;  %v6733_v57 = vld [vmem:[%s9157_s1 + $0x10c8] ss:$12 sps:$4 sm:$0xff]  }
 0x13b   :  { %4407 = vmatpush2.bf16.msra.mxu0 %v6694_v63  ;;  %v6738_v63 = vld [vmem:[%s9157_s1 + $0xf34] ss:$12 sps:$4 sm:$0xff]  }
 0x13c   :  { %4448 = vmatpush2.bf16.msra.mxu1 %v6697_v61  ;;  %4408 = vmatprep.subr.bf16.mxu0 %v6702_v62  ;;  %v6741_v61 = vld [vmem:[%s9157_s1 + $0x10b4] ss:$12 sps:$4 sm:$0xff]   ;;  %v6736_v62 = vld [vmem:[%s9157_s1 + $0xf30] ss:$12 sps:$4 sm:$0xff]  }
 0x13d   :  { %4449 = vmatprep.subr.bf16.mxu1 %v6705_v1  ;;  %v6739_v1 = vld [vmem:[%s9157_s1 + $0x10b0] ss:$12 sps:$4 sm:$0xff]  }
 0x13f   :  { %4409 = vmatpush2.bf16.msra.mxu0 %v6700_v2  ;;  %v6744_v2 = vld [vmem:[%s9157_s1 + $0xf1c] ss:$12 sps:$4 sm:$0xff]  }
 0x140   :  { %4450 = vmatpush2.bf16.msra.mxu1 %v6703_v5  ;;  %4460 = vmatprep.subr.bf16.mxu0 %v6708_v8  ;;  %v6742_v5 = vld [vmem:[%s9157_s1 + $0xf18] ss:$12 sps:$4 sm:$0xff]  }
 0x141   :  { %4501 = vmatprep.subr.bf16.mxu1 %v6711_v9  ;;  %v6745_v8 = vld [vmem:[%s9157_s1 + $0x1098] ss:$12 sps:$4 sm:$0xff]  }
 0x142   :  { %v4166_v22 = vpop.f32.mrf.mxu0  ;;  %4411 = vmatmul.mubr.bf16.vlgmr.msra.gmra.mxu0 %v8156_v7  ;;  %v6750_v9 = vld [vmem:[%s9157_s1 + $0xf04] ss:$12 sps:$4 sm:$0xff]  }
 0x143   :  { %v4207_v24 = vpop.f32.mrf.mxu1  ;;  %4452 = vmatmul.mubr.bf16.vlgmr.msra.gmra.mxu1 %v8172_v4  ;;  %v4167_v28 = vadd.f32 %v4166_v22, %v7973_v31  ;;  %4461 = vmatpush1.bf16.msra.mxu0 %v6706_v10  ;;  %v6718_v31 = vld [vmem:[%s9157_s1 + $0xf78] ss:$12 sps:$4 sm:$0xff]   ;;  %v6754_v22 = vld [vmem:[%s9157_s1 + $0x1068] ss:$12 sps:$4 sm:$0xff]  }
 0x144   :  { %4502 = vmatpush1.bf16.msra.mxu1 %v6709_v14  ;;  %v4168_v30 = vpop.f32.mrf.mxu0  ;;  %4462 = vmatprep.subr.bf16.mxu0 %v6714_v15  ;;  %v6753_v10 = vld [vmem:[%s9157_s1 + $0x1084] ss:$12 sps:$4 sm:$0xff]   ;;  %v6748_v14 = vld [vmem:[%s9157_s1 + $0xf00] ss:$12 sps:$4 sm:$0xff]  }
 0x145   :  { %v4209_v33 = vpop.f32.mrf.mxu1  ;;  %4503 = vmatprep.subr.bf16.mxu1 %v6717_v16  ;;  %v8202_v36 = vadd.f32 %v4207_v24, %v4167_v28  ;;  %v4169_v37 = vadd.f32 %v4168_v30, %v7981_v38  ;;  %4492 = vmatprep.mubr.bf16.mxu0 %v8168_v11  ;;  %v6726_v38 = vld [vmem:[%s9157_s1 + $0xf64] ss:$12 sps:$4 sm:$0xff]   ;;  %v6751_v15 = vld [vmem:[%s9157_s1 + $0x1080] ss:$12 sps:$4 sm:$0xff]   ;;  %v6757_v24 = vld [vmem:[%s9157_s1 + $0x11e8] ss:$12 sps:$4 sm:$0xff]  }
 0x146   :  { %4533 = vmatprep.mubr.bf16.mxu1 %v8188_v21  ;;  %v4170_v32 = vpop.f32.mrf.mxu0  ;;  %v6756_v16 = vld [vmem:[%s9157_s1 + $0x106c] ss:$12 sps:$4 sm:$0xff]   ;;  %v6765_v28 = vld [vmem:[%s9157_s1 + $0x11d4] ss:$12 sps:$4 sm:$0xff]   ;;  %v6763_v30 = vld [vmem:[%s9157_s1 + $0x11d0] ss:$12 sps:$4 sm:$0xff]  }
 0x147   :  { %v4211_v40 = vpop.f32.mrf.mxu1  ;;  %v8213_v45 = vadd.f32 %v4209_v33, %v4169_v37  ;;  %4463 = vmatpush1.bf16.msra.mxu0 %v6712_v20  ;;  %v6759_v20 = vld [vmem:[%s9157_s1 + $0x11ec] ss:$12 sps:$4 sm:$0xff]   ;;  %v6768_v33 = vld [vmem:[%s9157_s1 + $0x103c] ss:$12 sps:$4 sm:$0xff]   ;;  %v6774_v32 = vld [vmem:[%s9157_s1 + $0x1024] ss:$12 sps:$4 sm:$0xff]  }
 0x148   :  { %4504 = vmatpush1.bf16.msra.mxu1 %v6715_v25  ;;  %v4171_v46 = vpop.f32.mrf.mxu0  ;;  %4464 = vmatprep.subr.bf16.mxu0 %v6720_v29  ;;  %v6762_v25 = vld [vmem:[%s9157_s1 + $0x1054] ss:$12 sps:$4 sm:$0xff]   ;;  %v6760_v29 = vld [vmem:[%s9157_s1 + $0x1050] ss:$12 sps:$4 sm:$0xff]   ;;  %v6766_v37 = vld [vmem:[%s9157_s1 + $0x1038] ss:$12 sps:$4 sm:$0xff]  }
 0x149   :  { %v4212_v47 = vpop.f32.mrf.mxu1  ;;  %4505 = vmatprep.subr.bf16.mxu1 %v6723_v34  ;;  %v6771_v34 = vld [vmem:[%s9157_s1 + $0x11bc] ss:$12 sps:$4 sm:$0xff]   ;;  %v6777_v40 = vld [vmem:[%s9157_s1 + $0x11a4] ss:$12 sps:$4 sm:$0xff]   ;;  %v6780_v46 = vld [vmem:[%s9157_s1 + $0x100c] ss:$12 sps:$4 sm:$0xff]  }
 0x14a   :  { %v6783_v47 = vld [vmem:[%s9157_s1 + $0x118c] ss:$12 sps:$4 sm:$0xff]  }
 0x14b   :  { %4465 = vmatpush1.bf16.msra.mxu0 %v6718_v31  ;;  %v6769_v31 = vld [vmem:[%s9157_s1 + $0x11b8] ss:$12 sps:$4 sm:$0xff]  }
 0x14c   :  { %4506 = vmatpush1.bf16.msra.mxu1 %v6721_v44  ;;  %4466 = vmatprep.subr.bf16.mxu0 %v6726_v38  ;;  %v6772_v44 = vld [vmem:[%s9157_s1 + $0x1020] ss:$12 sps:$4 sm:$0xff]  }
 0x14d   :  { %4507 = vmatprep.subr.bf16.mxu1 %v6729_v50  ;;  %v6775_v38 = vld [vmem:[%s9157_s1 + $0x11a0] ss:$12 sps:$4 sm:$0xff]   ;;  %v6778_v50 = vld [vmem:[%s9157_s1 + $0x1008] ss:$12 sps:$4 sm:$0xff]  }
 0x14f   :  { %4467 = vmatpush1.bf16.msra.mxu0 %v6724_v51  ;;  %v6781_v51 = vld [vmem:[%s9157_s1 + $0x1188] ss:$12 sps:$4 sm:$0xff]  }
 0x150   :  { %4508 = vmatpush1.bf16.msra.mxu1 %v6727_v52  ;;  %4468 = vmatprep.subr.bf16.mxu0 %v6732_v35  ;;  %v6786_v52 = vld [vmem:[%s9157_s1 + $0xff4] ss:$12 sps:$4 sm:$0xff]  }
 0x151   :  { %4509 = vmatprep.subr.bf16.mxu1 %v6735_v55  ;;  %v6789_v35 = vld [vmem:[%s9157_s1 + $0x1174] ss:$12 sps:$4 sm:$0xff]   ;;  %v6784_v55 = vld [vmem:[%s9157_s1 + $0xff0] ss:$12 sps:$4 sm:$0xff]  }
 0x153   :  { %4469 = vmatpush1.bf16.msra.mxu0 %v6730_v56  ;;  %v6787_v56 = vld [vmem:[%s9157_s1 + $0x1170] ss:$12 sps:$4 sm:$0xff]  }
 0x154   :  { %4510 = vmatpush1.bf16.msra.mxu1 %v6733_v57  ;;  %4470 = vmatprep.subr.bf16.mxu0 %v6738_v63  ;;  %v6792_v57 = vld [vmem:[%s9157_s1 + $0xfdc] ss:$12 sps:$4 sm:$0xff]  }
 0x155   :  { %4511 = vmatprep.subr.bf16.mxu1 %v6741_v61  ;;  %v6795_v63 = vld [vmem:[%s9157_s1 + $0x115c] ss:$12 sps:$4 sm:$0xff]   ;;  %v6790_v61 = vld [vmem:[%s9157_s1 + $0xfd8] ss:$12 sps:$4 sm:$0xff]  }
 0x157   :  { %4471 = vmatpush1.bf16.msra.mxu0 %v6736_v62  ;;  %v6793_v62 = vld [vmem:[%s9157_s1 + $0x1158] ss:$12 sps:$4 sm:$0xff]  }
 0x158   :  { %4512 = vmatpush1.bf16.msra.mxu1 %v6739_v1  ;;  %4472 = vmatprep.subr.bf16.mxu0 %v6744_v2  ;;  %v6798_v1 = vld [vmem:[%s9157_s1 + $0xfc4] ss:$12 sps:$4 sm:$0xff]  }
 0x159   :  { %4513 = vmatprep.subr.bf16.mxu1 %v6747_v3  ;;  %v6801_v2 = vld [vmem:[%s9157_s1 + $0x1144] ss:$12 sps:$4 sm:$0xff]   ;;  %v6796_v3 = vld [vmem:[%s9157_s1 + $0xfc0] ss:$12 sps:$4 sm:$0xff]  }
 0x15b   :  { %4473 = vmatpush1.bf16.msra.mxu0 %v6742_v5  ;;  %v6799_v5 = vld [vmem:[%s9157_s1 + $0x1140] ss:$12 sps:$4 sm:$0xff]  }
 0x15c   :  { %4514 = vmatpush1.bf16.msra.mxu1 %v6745_v8  ;;  %4474 = vmatprep.subr.bf16.mxu0 %v6750_v9  ;;  %v8373_v8 = vrot.slane %v8135_v58, %v7191_v49  ;;  %v6803_v9 = vld [vmem:[%s9157_s1 + $0x170] ss:$12 sps:$4 sm:$0xff]  }
 0x15d   :  { %4515 = vmatprep.subr.bf16.mxu1 %v6753_v10  ;;  %v6804_v10 = vld [vmem:[%s9157_s1 + $0x2f0] ss:$12 sps:$4 sm:$0xff]  }
 0x15e   :  { %v8386_v49 = vcombine.high %v8373_v8, %v8373_v8  ;;  %v6806_v58 = vld [vmem:[%s9157_s1 + $0x230] ss:$12 sps:$4 sm:$0xff]  }
 0x15f   :  { %4475 = vmatpush1.bf16.msra.mxu0 %v6748_v14  ;;  %v6805_v14 = vld [vmem:[%s9157_s1 + $0xb0] ss:$12 sps:$4 sm:$0xff]  }
 0x160   :  { %4516 = vmatpush1.bf16.msra.mxu1 %v6751_v15  ;;  %4476 = vmatprep.subr.bf16.mxu0 %v6756_v16  ;;  %v6807_v15 = vld [vmem:[%s9157_s1 + $0x158] ss:$12 sps:$4 sm:$0xff]  }
 0x161   :  { %4517 = vmatprep.subr.bf16.mxu1 %v6759_v20  ;;  %v6808_v16 = vld [vmem:[%s9157_s1 + $0x2d8] ss:$12 sps:$4 sm:$0xff]  }
 0x162   :  { %v6809_v20 = vld [vmem:[%s9157_s1 + $0x98] ss:$12 sps:$4 sm:$0xff]  }
 0x163   :  { %4477 = vmatpush2.bf16.msra.mxu0 %v6754_v22 }
 0x164   :  { %4518 = vmatpush2.bf16.msra.mxu1 %v6757_v24  ;;  %4478 = vmatprep.subr.bf16.mxu0 %v6762_v25  ;;  %v6810_v25 = vld [vmem:[%s9157_s1 + $0x218] ss:$12 sps:$4 sm:$0xff]  }
 0x165   :  { %4519 = vmatprep.subr.bf16.mxu1 %v6765_v28 }
 0x167   :  { %4479 = vmatpush2.bf16.msra.mxu0 %v6760_v29  ;;  %v6811_v29 = vld [vmem:[%s9157_s1 + $0x140] ss:$12 sps:$4 sm:$0xff]  }
 0x168   :  { %4520 = vmatpush2.bf16.msra.mxu1 %v6763_v30  ;;  %4480 = vmatprep.subr.bf16.mxu0 %v6768_v33 }
 0x169   :  { %4521 = vmatprep.subr.bf16.mxu1 %v6771_v34  ;;  %v6812_v34 = vld [vmem:[%s9157_s1 + $0x2c0] ss:$12 sps:$4 sm:$0xff]  }
 0x16b   :  { %4481 = vmatpush2.bf16.msra.mxu0 %v6766_v37 }
 0x16c   :  { %4522 = vmatpush2.bf16.msra.mxu1 %v6769_v31  ;;  %4482 = vmatprep.subr.bf16.mxu0 %v6774_v32 }
 0x16d   :  { %4523 = vmatprep.subr.bf16.mxu1 %v6777_v40 }
 0x16f   :  { %4483 = vmatpush2.bf16.msra.mxu0 %v6772_v44  ;;  %v6814_v44 = vld [vmem:[%s9157_s1 + $0x200] ss:$12 sps:$4 sm:$0xff]  }
 0x170   :  { %4524 = vmatpush2.bf16.msra.mxu1 %v6775_v38  ;;  %4484 = vmatprep.subr.bf16.mxu0 %v6780_v46 }
 0x171   :  { %4525 = vmatprep.subr.bf16.mxu1 %v6783_v47 }
 0x173   :  { %4485 = vmatpush2.bf16.msra.mxu0 %v6778_v50  ;;  %v6818_v50 = vld [vmem:[%s9157_s1 + $0x1e8] ss:$12 sps:$4 sm:$0xff]  }
 0x174   :  { %4526 = vmatpush2.bf16.msra.mxu1 %v6781_v51  ;;  %4486 = vmatprep.subr.bf16.mxu0 %v6786_v52  ;;  %v6819_v51 = vld [vmem:[%s9157_s1 + $0x110] ss:$12 sps:$4 sm:$0xff]  }
 0x175   :  { %4527 = vmatprep.subr.bf16.mxu1 %v6789_v35  ;;  %v6820_v52 = vld [vmem:[%s9157_s1 + $0x290] ss:$12 sps:$4 sm:$0xff]  }
 0x176   :  { %v6821_v35 = vld [vmem:[%s9157_s1 + $0x50] ss:$12 sps:$4 sm:$0xff]  }
 0x177   :  { %4487 = vmatpush2.bf16.msra.mxu0 %v6784_v55  ;;  %v6822_v55 = vld [vmem:[%s9157_s1 + $0x1d0] ss:$12 sps:$4 sm:$0xff]  }
 0x178   :  { %4528 = vmatpush2.bf16.msra.mxu1 %v6787_v56  ;;  %4488 = vmatprep.subr.bf16.mxu0 %v6792_v57  ;;  %v6823_v56 = vld [vmem:[%s9157_s1 + $0xf8] ss:$12 sps:$4 sm:$0xff]  }
 0x179   :  { %4529 = vmatprep.subr.bf16.mxu1 %v6795_v63  ;;  %v6824_v57 = vld [vmem:[%s9157_s1 + $0x278] ss:$12 sps:$4 sm:$0xff]  }
 0x17a   :  { %v6825_v63 = vld [vmem:[%s9157_s1 + $0x38] ss:$12 sps:$4 sm:$0xff]  }
 0x17b   :  { %4489 = vmatpush2.bf16.msra.mxu0 %v6790_v61  ;;  %v6826_v61 = vld [vmem:[%s9157_s1 + $0x1b8] ss:$12 sps:$4 sm:$0xff]  }
 0x17c   :  { %4530 = vmatpush2.bf16.msra.mxu1 %v6793_v62  ;;  %4490 = vmatprep.subr.bf16.mxu0 %v6798_v1  ;;  %v6827_v62 = vld [vmem:[%s9157_s1 + $0xe0] ss:$12 sps:$4 sm:$0xff]  }
 0x17d   :  { %4531 = vmatprep.subr.bf16.mxu1 %v6801_v2  ;;  %v6828_v1 = vld [vmem:[%s9157_s1 + $0x260] ss:$12 sps:$4 sm:$0xff]  }
 0x17e   :  { %v6829_v2 = vld [vmem:[%s9157_s1 + $0x20] ss:$12 sps:$4 sm:$0xff]  }
 0x17f   :  { %4491 = vmatpush2.bf16.msra.mxu0 %v6796_v3  ;;  %v6830_v3 = vld [vmem:[%s9157_s1 + $0x1a0] ss:$12 sps:$4 sm:$0xff]  }
 0x180   :  { %4532 = vmatpush2.bf16.msra.mxu1 %v6799_v5  ;;  %5898 = vmatprep.subr.bf16.mxu0 %v6803_v9  ;;  %v6831_v5 = vld [vmem:[%s9157_s1 + $0xc8] ss:$12 sps:$4 sm:$0xff]  }
 0x181   :  { %5920 = vmatprep.subr.bf16.mxu1 %v6804_v10  ;;  %v6832_v9 = vld [vmem:[%s9157_s1 + $0x248] ss:$12 sps:$4 sm:$0xff]  }
 0x182   :  { %v4248_v22 = vpop.f32.mrf.mxu0  ;;  %4493 = vmatmul.mubr.bf16.vlgmr.msra.gmra.mxu0 %v8373_v8  ;;  %v6833_v10 = vld [vmem:[%s9157_s1 + $0x8] ss:$12 sps:$4 sm:$0xff]  }
 0x183   :  { %v4289_v24 = vpop.f32.mrf.mxu1  ;;  %4534 = vmatmul.mubr.bf16.vlgmr.msra.gmra.mxu1 %v8386_v49  ;;  %v4249_v28 = vadd.f32 %v4248_v22, %v8202_v36  ;;  %5899 = vmatpush3.bf16.msra.mxu0 %v6805_v14  ;;  %v6813_v36 = vld [vmem:[%s9157_s1 + $0x80] ss:$12 sps:$4 sm:$0xff]   ;;  %v6834_v14 = vld [vmem:[%s9157_s1 + $0x188] ss:$12 sps:$4 sm:$0xff]   ;;  %v6839_v22 = vld [vmem:[%s9157_s1 + $0x458] ss:$12 sps:$4 sm:$0xff]  }
 0x184   :  { %5921 = vmatpush3.bf16.msra.mxu1 %v6806_v58  ;;  %v4250_v30 = vpop.f32.mrf.mxu0  ;;  %5900 = vmatprep.subr.bf16.mxu0 %v6807_v15  ;;  %v6835_v58 = vld [vmem:[%s9157_s1 + $0x470] ss:$12 sps:$4 sm:$0xff]  }
 0x185   :  { %v4291_v33 = vpop.f32.mrf.mxu1  ;;  %5922 = vmatprep.subr.bf16.mxu1 %v6808_v16  ;;  %v8412_v37 = vadd.f32 %v4289_v24, %v4249_v28  ;;  %v4251_v31 = vadd.f32 %v4250_v30, %v8213_v45  ;;  %4574 = vmatprep.mubr.bf16.mxu0 %v7219_v60  ;;  %v6815_v45 = vld [vmem:[%s9157_s1 + $0x128] ss:$12 sps:$4 sm:$0xff]   ;;  %v6836_v15 = vld [vmem:[%s9157_s1 + $0x5f0] ss:$12 sps:$4 sm:$0xff]   ;;  %v6840_v24 = vld [vmem:[%s9157_s1 + $0x5d8] ss:$12 sps:$4 sm:$0xff]  }
 0x186   :  { %4614 = vmatprep.mubr.bf16.mxu1 %v7232_v0  ;;  %v4252_v32 = vpop.f32.mrf.mxu0  ;;  %v6816_v60 = vld [vmem:[%s9157_s1 + $0x2a8] ss:$12 sps:$4 sm:$0xff]   ;;  %v6837_v16 = vld [vmem:[%s9157_s1 + $0x3b0] ss:$12 sps:$4 sm:$0xff]   ;;  %v6842_v28 = vld [vmem:[%s9157_s1 + $0x518] ss:$12 sps:$4 sm:$0xff]  }
 0x187   :  { %v4293_v40 = vpop.f32.mrf.mxu1  ;;  %v8423_v38 = vadd.f32 %v4291_v33, %v4251_v31  ;;  %5901 = vmatpush3.bf16.msra.mxu0 %v6809_v20  ;;  %v6817_v0 = vld [vmem:[%s9157_s1 + $0x68] ss:$12 sps:$4 sm:$0xff]   ;;  %v6838_v20 = vld [vmem:[%s9157_s1 + $0x530] ss:$12 sps:$4 sm:$0xff]   ;;  %v6844_v30 = vld [vmem:[%s9157_s1 + $0x5c0] ss:$12 sps:$4 sm:$0xff]  }
 0x188   :  { %5923 = vmatpush3.bf16.msra.mxu1 %v6810_v25  ;;  %v4253_v46 = vpop.f32.mrf.mxu0  ;;  %5902 = vmatprep.subr.bf16.mxu0 %v6811_v29  ;;  %v6841_v25 = vld [vmem:[%s9157_s1 + $0x398] ss:$12 sps:$4 sm:$0xff]   ;;  %v6843_v29 = vld [vmem:[%s9157_s1 + $0x440] ss:$12 sps:$4 sm:$0xff]   ;;  %v6847_v33 = vld [vmem:[%s9157_s1 + $0x428] ss:$12 sps:$4 sm:$0xff]  }
 0x189   :  { %v4294_v47 = vpop.f32.mrf.mxu1  ;;  %5924 = vmatprep.subr.bf16.mxu1 %v6812_v34  ;;  %v6848_v34 = vld [vmem:[%s9157_s1 + $0x5a8] ss:$12 sps:$4 sm:$0xff]   ;;  %v6851_v31 = vld [vmem:[%s9157_s1 + $0x410] ss:$12 sps:$4 sm:$0xff]   ;;  %v6857_v46 = vld [vmem:[%s9157_s1 + $0x338] ss:$12 sps:$4 sm:$0xff]  }
 0x18a   :  { %v6853_v32 = vld [vmem:[%s9157_s1 + $0x350] ss:$12 sps:$4 sm:$0xff]   ;;  %v6858_v47 = vld [vmem:[%s9157_s1 + $0x4b8] ss:$12 sps:$4 sm:$0xff]  }
 0x18b   :  { %5903 = vmatpush3.bf16.msra.mxu0 %v6813_v36  ;;  %v6852_v36 = vld [vmem:[%s9157_s1 + $0x590] ss:$12 sps:$4 sm:$0xff]  }
 0x18c   :  { %5925 = vmatpush3.bf16.msra.mxu1 %v6814_v44  ;;  %5904 = vmatprep.subr.bf16.mxu0 %v6815_v45  ;;  %v6854_v40 = vld [vmem:[%s9157_s1 + $0x4d0] ss:$12 sps:$4 sm:$0xff]   ;;  %v6855_v44 = vld [vmem:[%s9157_s1 + $0x3f8] ss:$12 sps:$4 sm:$0xff]  }
 0x18d   :  { %5926 = vmatprep.subr.bf16.mxu1 %v6816_v60  ;;  %v6856_v45 = vld [vmem:[%s9157_s1 + $0x578] ss:$12 sps:$4 sm:$0xff]   ;;  %v6859_v60 = vld [vmem:[%s9157_s1 + $0x3e0] ss:$12 sps:$4 sm:$0xff]  }
 0x18f   :  { %5905 = vmatpush3.bf16.msra.mxu0 %v6817_v0  ;;  %v6860_v0 = vld [vmem:[%s9157_s1 + $0x560] ss:$12 sps:$4 sm:$0xff]  }
 0x190   :  { %5927 = vmatpush3.bf16.msra.mxu1 %v6818_v50  ;;  %5906 = vmatprep.subr.bf16.mxu0 %v6819_v51  ;;  %v6861_v50 = vld [vmem:[%s9157_s1 + $0x320] ss:$12 sps:$4 sm:$0xff]  }
 0x191   :  { %5928 = vmatprep.subr.bf16.mxu1 %v6820_v52  ;;  %v6862_v51 = vld [vmem:[%s9157_s1 + $0x4a0] ss:$12 sps:$4 sm:$0xff]   ;;  %v6863_v52 = vld [vmem:[%s9157_s1 + $0x3c8] ss:$12 sps:$4 sm:$0xff]  }
 0x193   :  { %5907 = vmatpush3.bf16.msra.mxu0 %v6821_v35  ;;  %v6864_v35 = vld [vmem:[%s9157_s1 + $0x548] ss:$12 sps:$4 sm:$0xff]  }
 0x194   :  { %5929 = vmatpush3.bf16.msra.mxu1 %v6822_v55  ;;  %5908 = vmatprep.subr.bf16.mxu0 %v6823_v56  ;;  %v6865_v55 = vld [vmem:[%s9157_s1 + $0x308] ss:$12 sps:$4 sm:$0xff]  }
 0x195   :  { %5930 = vmatprep.subr.bf16.mxu1 %v6824_v57  ;;  %v6866_v56 = vld [vmem:[%s9157_s1 + $0x488] ss:$12 sps:$4 sm:$0xff]   ;;  %v6867_v57 = vld [vmem:[%s9157_s1 + $0x770] ss:$12 sps:$4 sm:$0xff]  }
 0x197   :  { %5909 = vmatpush3.bf16.msra.mxu0 %v6825_v63  ;;  %v6868_v63 = vld [vmem:[%s9157_s1 + $0x8f0] ss:$12 sps:$4 sm:$0xff]  }
 0x198   :  { %5931 = vmatpush3.bf16.msra.mxu1 %v6826_v61  ;;  %5910 = vmatprep.subr.bf16.mxu0 %v6827_v62  ;;  %v6869_v61 = vld [vmem:[%s9157_s1 + $0x6b0] ss:$12 sps:$4 sm:$0xff]  }
 0x199   :  { %5932 = vmatprep.subr.bf16.mxu1 %v6828_v1  ;;  %v6870_v62 = vld [vmem:[%s9157_s1 + $0x830] ss:$12 sps:$4 sm:$0xff]   ;;  %v6871_v1 = vld [vmem:[%s9157_s1 + $0x758] ss:$12 sps:$4 sm:$0xff]  }
 0x19b   :  { %5911 = vmatpush3.bf16.msra.mxu0 %v6829_v2  ;;  %v6872_v2 = vld [vmem:[%s9157_s1 + $0x8d8] ss:$12 sps:$4 sm:$0xff]  }
 0x19c   :  { %5933 = vmatpush3.bf16.msra.mxu1 %v6830_v3  ;;  %5912 = vmatprep.subr.bf16.mxu0 %v6831_v5 }
 0x19d   :  { %5934 = vmatprep.subr.bf16.mxu1 %v6832_v9 }
 0x19f   :  { %5913 = vmatpush3.bf16.msra.mxu0 %v6833_v10 }
 0x1a0   :  { %5935 = vmatpush3.bf16.msra.mxu1 %v6834_v14  ;;  %5942 = vmatprep.subr.bf16.mxu0 %v6835_v58 }
 0x1a1   :  { %5964 = vmatprep.subr.bf16.mxu1 %v6836_v15 }
 0x1a2   :  { %4575 = vmatmul.mubr.bf16.vlgmr.msra.gmra.mxu0 %v7269_v13  ;;  %v6845_v13 = vld [vmem:[%s9157_s1 + $0x380] ss:$12 sps:$4 sm:$0xff]  }
 0x1a3   :  { %4615 = vmatmul.mubr.bf16.vlgmr.msra.gmra.mxu1 %v7285_v18  ;;  %5943 = vmatpush3.bf16.msra.mxu0 %v6837_v16  ;;  %v6846_v18 = vld [vmem:[%s9157_s1 + $0x500] ss:$12 sps:$4 sm:$0xff]  }
 0x1a4   :  { %5965 = vmatpush3.bf16.msra.mxu1 %v6838_v20  ;;  %5944 = vmatprep.subr.bf16.mxu0 %v6839_v22 }
 0x1a5   :  { %5966 = vmatprep.subr.bf16.mxu1 %v6840_v24  ;;  %4654 = vmatprep.mubr.bf16.mxu0 %v7281_v17  ;;  %v6849_v17 = vld [vmem:[%s9157_s1 + $0x368] ss:$12 sps:$4 sm:$0xff]  }
 0x1a6   :  { %4694 = vmatprep.mubr.bf16.mxu1 %v7301_v23  ;;  %v6850_v23 = vld [vmem:[%s9157_s1 + $0x4e8] ss:$12 sps:$4 sm:$0xff]  }
 0x1a7   :  { %5945 = vmatpush3.bf16.msra.mxu0 %v6841_v25 }
 0x1a8   :  { %5967 = vmatpush3.bf16.msra.mxu1 %v6842_v28  ;;  %5946 = vmatprep.subr.bf16.mxu0 %v6843_v29 }
 0x1a9   :  { %5968 = vmatprep.subr.bf16.mxu1 %v6844_v30 }
 0x1ab   :  { %5947 = vmatpush3.bf16.msra.mxu0 %v6845_v13 }
 0x1ac   :  { %5969 = vmatpush3.bf16.msra.mxu1 %v6846_v18  ;;  %5948 = vmatprep.subr.bf16.mxu0 %v6847_v33 }
 0x1ad   :  { %5970 = vmatprep.subr.bf16.mxu1 %v6848_v34 }
 0x1af   :  { %5949 = vmatpush3.bf16.msra.mxu0 %v6849_v17 }
 0x1b0   :  { %5971 = vmatpush3.bf16.msra.mxu1 %v6850_v23  ;;  %5950 = vmatprep.subr.bf16.mxu0 %v6851_v31 }
 0x1b1   :  { %5972 = vmatprep.subr.bf16.mxu1 %v6852_v36 }
 0x1b3   :  { %5951 = vmatpush3.bf16.msra.mxu0 %v6853_v32 }
 0x1b4   :  { %5973 = vmatpush3.bf16.msra.mxu1 %v6854_v40  ;;  %5952 = vmatprep.subr.bf16.mxu0 %v6855_v44 }
 0x1b5   :  { %5974 = vmatprep.subr.bf16.mxu1 %v6856_v45 }
 0x1b7   :  { %5953 = vmatpush3.bf16.msra.mxu0 %v6857_v46 }
 0x1b8   :  { %5975 = vmatpush3.bf16.msra.mxu1 %v6858_v47  ;;  %5954 = vmatprep.subr.bf16.mxu0 %v6859_v60 }
 0x1b9   :  { %5976 = vmatprep.subr.bf16.mxu1 %v6860_v0 }
 0x1bb   :  { %5955 = vmatpush3.bf16.msra.mxu0 %v6861_v50 }
 0x1bc   :  { %5977 = vmatpush3.bf16.msra.mxu1 %v6862_v51  ;;  %5956 = vmatprep.subr.bf16.mxu0 %v6863_v52 }
 0x1bd   :  { %5978 = vmatprep.subr.bf16.mxu1 %v6864_v35 }
 0x1bf   :  { %5957 = vmatpush3.bf16.msra.mxu0 %v6865_v55 }
 0x1c0   :  { %5979 = vmatpush3.bf16.msra.mxu1 %v6866_v56  ;;  %5986 = vmatprep.subr.bf16.mxu0 %v6867_v57 }
 0x1c1   :  { %6008 = vmatprep.subr.bf16.mxu1 %v6868_v63 }
 0x1c2   :  { %10 = vsyncpa [#allocation4], 0  ;;  %v4330_v3 = vpop.f32.mrf.mxu0  ;;  %4655 = vmatmul.mubr.bf16.vlgmr.msra.gmra.mxu0 %v7480_v26  ;;  %v6873_v10 = vld [vmem:[%s9157_s1 + $0x698] ss:$12 sps:$4 sm:$0xff]   ;;  %v6875_v26 = vld [vmem:[%s9157_s1 + $0x740] ss:$12 sps:$4 sm:$0xff]  }
 0x1c3   :  { %v4371_v5 = vpop.f32.mrf.mxu1  ;;  %4695 = vmatmul.mubr.bf16.vlgmr.msra.gmra.mxu1 %v7493_v6  ;;  %v4331_v9 = vadd.f32 %v4330_v3, %v8412_v37  ;;  %5987 = vmatpush3.bf16.msra.mxu0 %v6869_v61  ;;  %v6874_v14 = vld [vmem:[%s9157_s1 + $0x818] ss:$12 sps:$4 sm:$0xff]   ;;  %v6876_v6 = vld [vmem:[%s9157_s1 + $0x8c0] ss:$12 sps:$4 sm:$0xff]   ;;  %v6881_v30 = vld [vmem:[%s9157_s1 + $0x668] ss:$12 sps:$4 sm:$0xff]  }
 0x1c4   :  { %6009 = vmatpush3.bf16.msra.mxu1 %v6870_v62  ;;  %v4332_v58 = vpop.f32.mrf.mxu0  ;;  %5988 = vmatprep.subr.bf16.mxu0 %v6871_v1  ;;  %v6877_v25 = vld [vmem:[%s9157_s1 + $0x680] ss:$12 sps:$4 sm:$0xff]   ;;  %v6882_v13 = vld [vmem:[%s9157_s1 + $0x7e8] ss:$12 sps:$4 sm:$0xff]   ;;  %v6883_v18 = vld [vmem:[%s9157_s1 + $0x710] ss:$12 sps:$4 sm:$0xff]  }
 0x1c5   :  { %v4373_v15 = vpop.f32.mrf.mxu1  ;;  %6010 = vmatprep.subr.bf16.mxu1 %v6872_v2  ;;  %v8618_v37 = vadd.f32 %v4371_v5, %v4331_v9  ;;  %v4333_v16 = vadd.f32 %v4332_v58, %v8423_v38  ;;  %4734 = vmatprep.mubr.bf16.mxu0 %v7533_v41  ;;  %v6878_v28 = vld [vmem:[%s9157_s1 + $0x800] ss:$12 sps:$4 sm:$0xff]   ;;  %v6879_v41 = vld [vmem:[%s9157_s1 + $0x728] ss:$12 sps:$4 sm:$0xff]   ;;  %v6884_v33 = vld [vmem:[%s9157_s1 + $0x890] ss:$12 sps:$4 sm:$0xff]  }
 0x1c6   :  { %4774 = vmatprep.mubr.bf16.mxu1 %v7538_v42  ;;  %v4334_v20 = vpop.f32.mrf.mxu0  ;;  %v6880_v42 = vld [vmem:[%s9157_s1 + $0x8a8] ss:$12 sps:$4 sm:$0xff]   ;;  %v6885_v34 = vld [vmem:[%s9157_s1 + $0x650] ss:$12 sps:$4 sm:$0xff]   ;;  %v6887_v23 = vld [vmem:[%s9157_s1 + $0x6f8] ss:$12 sps:$4 sm:$0xff]  }
 0x1c7   :  { %v4375_v22 = vpop.f32.mrf.mxu1  ;;  %v8623_v24 = vadd.f32 %v4373_v15, %v4333_v16  ;;  %5989 = vmatpush3.bf16.msra.mxu0 %v6873_v10  ;;  %v6886_v17 = vld [vmem:[%s9157_s1 + $0x7d0] ss:$12 sps:$4 sm:$0xff]   ;;  %v6888_v31 = vld [vmem:[%s9157_s1 + $0x878] ss:$12 sps:$4 sm:$0xff]   ;;  %v6891_v40 = vld [vmem:[%s9157_s1 + $0x6e0] ss:$12 sps:$4 sm:$0xff]  }
 0x1c8   :  { %6011 = vmatpush3.bf16.msra.mxu1 %v6874_v14  ;;  %v4335_v29 = vpop.f32.mrf.mxu0  ;;  %5990 = vmatprep.subr.bf16.mxu0 %v6875_v26  ;;  %v6889_v36 = vld [vmem:[%s9157_s1 + $0x638] ss:$12 sps:$4 sm:$0xff]   ;;  %v6892_v44 = vld [vmem:[%s9157_s1 + $0x860] ss:$12 sps:$4 sm:$0xff]   ;;  %v6895_v47 = vld [vmem:[%s9157_s1 + $0x6c8] ss:$12 sps:$4 sm:$0xff]  }
 0x1c9   :  { %v4376_v38 = vpop.f32.mrf.mxu1  ;;  %6012 = vmatprep.subr.bf16.mxu1 %v6876_v6  ;;  %v6890_v32 = vld [vmem:[%s9157_s1 + $0x7b8] ss:$12 sps:$4 sm:$0xff]   ;;  %v6893_v45 = vld [vmem:[%s9157_s1 + $0x620] ss:$12 sps:$4 sm:$0xff]   ;;  %v6896_v60 = vld [vmem:[%s9157_s1 + $0x848] ss:$12 sps:$4 sm:$0xff]  }
 0x1ca   :  { %v6894_v46 = vld [vmem:[%s9157_s1 + $0x7a0] ss:$12 sps:$4 sm:$0xff]   ;;  %v6897_v0 = vld [vmem:[%s9157_s1 + $0x608] ss:$12 sps:$4 sm:$0xff]   ;;  %v6899_v51 = vld [vmem:[%s9157_s1 + $0xa70] ss:$12 sps:$4 sm:$0xff]  }
 0x1cb   :  { %5991 = vmatpush3.bf16.msra.mxu0 %v6877_v25  ;;  %v6898_v50 = vld [vmem:[%s9157_s1 + $0x788] ss:$12 sps:$4 sm:$0xff]   ;;  %v6900_v52 = vld [vmem:[%s9157_s1 + $0xbf0] ss:$12 sps:$4 sm:$0xff]   ;;  %v6903_v56 = vld [vmem:[%s9157_s1 + $0xa58] ss:$12 sps:$4 sm:$0xff]  }
 0x1cc   :  { %6013 = vmatpush3.bf16.msra.mxu1 %v6878_v28  ;;  %5992 = vmatprep.subr.bf16.mxu0 %v6879_v41  ;;  %v6901_v35 = vld [vmem:[%s9157_s1 + $0x9b0] ss:$12 sps:$4 sm:$0xff]   ;;  %v6904_v57 = vld [vmem:[%s9157_s1 + $0xbd8] ss:$12 sps:$4 sm:$0xff]   ;;  %v6907_v62 = vld [vmem:[%s9157_s1 + $0xa40] ss:$12 sps:$4 sm:$0xff]  }
 0x1cd   :  { %6014 = vmatprep.subr.bf16.mxu1 %v6880_v42  ;;  %v6902_v55 = vld [vmem:[%s9157_s1 + $0xb30] ss:$12 sps:$4 sm:$0xff]   ;;  %v6905_v63 = vld [vmem:[%s9157_s1 + $0x998] ss:$12 sps:$4 sm:$0xff]   ;;  %v6910_v1 = vld [vmem:[%s9157_s1 + $0xb00] ss:$12 sps:$4 sm:$0xff]  }
 0x1ce   :  { %v6906_v61 = vld [vmem:[%s9157_s1 + $0xb18] ss:$12 sps:$4 sm:$0xff]   ;;  %v6911_v2 = vld [vmem:[%s9157_s1 + $0xa28] ss:$12 sps:$4 sm:$0xff]   ;;  %v6915_v5 = vld [vmem:[%s9157_s1 + $0xa10] ss:$12 sps:$4 sm:$0xff]  }
 0x1cf   :  { %5993 = vmatpush3.bf16.msra.mxu0 %v6881_v30  ;;  %v6914_v3 = vld [vmem:[%s9157_s1 + $0xae8] ss:$12 sps:$4 sm:$0xff]   ;;  %v6916_v9 = vld [vmem:[%s9157_s1 + $0xb90] ss:$12 sps:$4 sm:$0xff]   ;;  %v6919_v58 = vld [vmem:[%s9157_s1 + $0x9f8] ss:$12 sps:$4 sm:$0xff]  }
 0x1d0   :  { %6015 = vmatpush3.bf16.msra.mxu1 %v6882_v13  ;;  %5994 = vmatprep.subr.bf16.mxu0 %v6883_v18  ;;  %v6917_v10 = vld [vmem:[%s9157_s1 + $0x950] ss:$12 sps:$4 sm:$0xff]   ;;  %v6920_v15 = vld [vmem:[%s9157_s1 + $0xb78] ss:$12 sps:$4 sm:$0xff]   ;;  %v6923_v16 = vld [vmem:[%s9157_s1 + $0x9e0] ss:$12 sps:$4 sm:$0xff]  }
 0x1d1   :  { %6016 = vmatprep.subr.bf16.mxu1 %v6884_v33  ;;  %v6918_v14 = vld [vmem:[%s9157_s1 + $0xad0] ss:$12 sps:$4 sm:$0xff]   ;;  %v6921_v26 = vld [vmem:[%s9157_s1 + $0x938] ss:$12 sps:$4 sm:$0xff]   ;;  %v6924_v20 = vld [vmem:[%s9157_s1 + $0xb60] ss:$12 sps:$4 sm:$0xff]  }
 0x1d2   :  { %v6922_v6 = vld [vmem:[%s9157_s1 + $0xab8] ss:$12 sps:$4 sm:$0xff]   ;;  %v6925_v22 = vld [vmem:[%s9157_s1 + $0x920] ss:$12 sps:$4 sm:$0xff]   ;;  %v6927_v28 = vld [vmem:[%s9157_s1 + $0x9c8] ss:$12 sps:$4 sm:$0xff]  }
 0x1d3   :  { %5995 = vmatpush3.bf16.msra.mxu0 %v6885_v34  ;;  %v6926_v25 = vld [vmem:[%s9157_s1 + $0xaa0] ss:$12 sps:$4 sm:$0xff]   ;;  %v6928_v29 = vld [vmem:[%s9157_s1 + $0xb48] ss:$12 sps:$4 sm:$0xff]   ;;  %v6931_v42 = vld [vmem:[%s9157_s1 + $0xd70] ss:$12 sps:$4 sm:$0xff]  }
 0x1d4   :  { %6017 = vmatpush3.bf16.msra.mxu1 %v6886_v17  ;;  %5996 = vmatprep.subr.bf16.mxu0 %v6887_v23  ;;  %v6929_v38 = vld [vmem:[%s9157_s1 + $0x908] ss:$12 sps:$4 sm:$0xff]   ;;  %v6932_v30 = vld [vmem:[%s9157_s1 + $0xef0] ss:$12 sps:$4 sm:$0xff]   ;;  %v6935_v33 = vld [vmem:[%s9157_s1 + $0xd58] ss:$12 sps:$4 sm:$0xff]  }
 0x1d5   :  { %6018 = vmatprep.subr.bf16.mxu1 %v6888_v31  ;;  %v6930_v41 = vld [vmem:[%s9157_s1 + $0xa88] ss:$12 sps:$4 sm:$0xff]   ;;  %v6933_v13 = vld [vmem:[%s9157_s1 + $0xcb0] ss:$12 sps:$4 sm:$0xff]   ;;  %v6936_v34 = vld [vmem:[%s9157_s1 + $0xed8] ss:$12 sps:$4 sm:$0xff]  }
 0x1d6   :  { %v6934_v18 = vld [vmem:[%s9157_s1 + $0xe30] ss:$12 sps:$4 sm:$0xff]   ;;  %vm26_vm0 = vcmask 1041408   ;;  %vm27_vm1 = vcmask 1043458   ;;  %vm29_vm3 = vcmask 357380   ;;  %vm5153_vm5 = vcmask 1043456  }
 0x1d7   :  { %5997 = vmatpush3.bf16.msra.mxu0 %v6889_v36  ;;  %v6937_v36 = vld [vmem:[%s9157_s1 + $0xc98] ss:$12 sps:$4 sm:$0xff]   ;;  %vm28_vm2 = vmor %vm27_vm1, %vm26_vm0  ;;  %vm7023_vm6 = vmmov 0   ;;  %vm5150_vm7 = vcmask 359424   ;;  %s7025_s23 = smov [#allocation3]   ;;  %vm5303_vm8 = vcmask 9216  }
 0x1d8   :  { %6019 = vmatpush3.bf16.msra.mxu1 %v6890_v32  ;;  %5998 = vmatprep.subr.bf16.mxu0 %v6891_v40  ;;  %v6938_v32 = vld [vmem:[%s9157_s1 + $0xe18] ss:$12 sps:$4 sm:$0xff]   ;;  %vm9022_vm4 = vmor %vm29_vm3, %vm28_vm2  ;;  %s5311_s0 = sshll.u32 %s7025_s23, 4  ;;  %s5312_s0 = int_to_ptr.vmem [resolvable:$true] %s5311_s0 }
 0x1d9   :  { %6020 = vmatprep.subr.bf16.mxu1 %v6892_v44  ;;  %s6999_s24 = scalar_lea.vmem %s5312_s0, 32  ;;  %p7004_p1 = scmp.lt.s32.totalorder %s5312_s0, %s5312_s0 }
 0x1da   :  { %p7000_p0 = scmp.ne.s32.totalorder %s5312_s0, %s6999_s24  ;;  %p7005_p2 = scmp.lt.s32.totalorder %s6999_s24, %s6999_s24 }
 0x1db   :  { %5999 = vmatpush3.bf16.msra.mxu0 %v6893_v45 }
 0x1dc   :  { %6021 = vmatpush3.bf16.msra.mxu1 %v6894_v46  ;;  %6000 = vmatprep.subr.bf16.mxu0 %v6895_v47  ;;  %p7006_p3 = por %p7005_p2, %p7004_p1 }
 0x1dd   :  { %6022 = vmatprep.subr.bf16.mxu1 %v6896_v60 }
 0x1de   :  { %p7007_p4 = pnand %p7006_p3, %p7000_p0 }
 0x1df   :  { %6001 = vmatpush3.bf16.msra.mxu0 %v6897_v0  ;;  %v6941_v0 = vld [vmem:[%s9157_s1 + $0xc80] ss:$12 sps:$4 sm:$0xff]  }
 0x1e0   :  { %6023 = vmatpush3.bf16.msra.mxu1 %v6898_v50  ;;  %6030 = vmatprep.subr.bf16.mxu0 %v6899_v51  ;;  %v6942_v50 = vld [vmem:[%s9157_s1 + $0xe00] ss:$12 sps:$4 sm:$0xff]  }
 0x1e1   :  { %6052 = vmatprep.subr.bf16.mxu1 %v6900_v52  ;;  %v6945_v52 = vld [vmem:[%s9157_s1 + $0xc68] ss:$12 sps:$4 sm:$0xff]  }
 0x1e2   :  { %4735 = vmatmul.mubr.bf16.vlgmr.msra.gmra.mxu0 %v7706_v48  ;;  %v6908_v48 = vld [vmem:[%s9157_s1 + $0xbc0] ss:$12 sps:$4 sm:$0xff]  }
 0x1e3   :  { %4775 = vmatmul.mubr.bf16.vlgmr.msra.gmra.mxu1 %v7725_v54  ;;  %6031 = vmatpush3.bf16.msra.mxu0 %v6901_v35  ;;  %v6909_v54 = vld [vmem:[%s9157_s1 + $0x980] ss:$12 sps:$4 sm:$0xff]   ;;  %v6946_v35 = vld [vmem:[%s9157_s1 + $0xde8] ss:$12 sps:$4 sm:$0xff]  }
 0x1e4   :  { %6053 = vmatpush3.bf16.msra.mxu1 %v6902_v55  ;;  %6032 = vmatprep.subr.bf16.mxu0 %v6903_v56  ;;  %v6947_v55 = vld [vmem:[%s9157_s1 + $0xd10] ss:$12 sps:$4 sm:$0xff]  }
 0x1e5   :  { %6054 = vmatprep.subr.bf16.mxu1 %v6904_v57  ;;  %4814 = vmatprep.mubr.bf16.mxu0 %v7721_v53  ;;  %v6912_v53 = vld [vmem:[%s9157_s1 + $0xba8] ss:$12 sps:$4 sm:$0xff]   ;;  %v6948_v56 = vld [vmem:[%s9157_s1 + $0xe90] ss:$12 sps:$4 sm:$0xff]  }
 0x1e6   :  { %4854 = vmatprep.mubr.bf16.mxu1 %v7741_v59  ;;  %v6913_v59 = vld [vmem:[%s9157_s1 + $0x968] ss:$12 sps:$4 sm:$0xff]   ;;  %v6949_v57 = vld [vmem:[%s9157_s1 + $0xc50] ss:$12 sps:$4 sm:$0xff]  }
 0x1e7   :  { %6033 = vmatpush3.bf16.msra.mxu0 %v6905_v63  ;;  %v6950_v63 = vld [vmem:[%s9157_s1 + $0xdd0] ss:$12 sps:$4 sm:$0xff]  }
 0x1e8   :  { %6055 = vmatpush3.bf16.msra.mxu1 %v6906_v61  ;;  %6034 = vmatprep.subr.bf16.mxu0 %v6907_v62  ;;  %v6951_v61 = vld [vmem:[%s9157_s1 + $0xcf8] ss:$12 sps:$4 sm:$0xff]  }
 0x1e9   :  { %6056 = vmatprep.subr.bf16.mxu1 %v6908_v48  ;;  %v6952_v62 = vld [vmem:[%s9157_s1 + $0xe78] ss:$12 sps:$4 sm:$0xff]  }
 0x1ea   :  { %v6953_v48 = vld [vmem:[%s9157_s1 + $0xc38] ss:$12 sps:$4 sm:$0xff]  }
 0x1eb   :  { %6035 = vmatpush3.bf16.msra.mxu0 %v6909_v54  ;;  %v6954_v54 = vld [vmem:[%s9157_s1 + $0xdb8] ss:$12 sps:$4 sm:$0xff]  }
 0x1ec   :  { %6057 = vmatpush3.bf16.msra.mxu1 %v6910_v1  ;;  %6036 = vmatprep.subr.bf16.mxu0 %v6911_v2  ;;  %v6955_v1 = vld [vmem:[%s9157_s1 + $0xce0] ss:$12 sps:$4 sm:$0xff]  }
 0x1ed   :  { %6058 = vmatprep.subr.bf16.mxu1 %v6912_v53  ;;  %v6956_v2 = vld [vmem:[%s9157_s1 + $0xe60] ss:$12 sps:$4 sm:$0xff]  }
 0x1ee   :  { %v6957_v53 = vld [vmem:[%s9157_s1 + $0xc20] ss:$12 sps:$4 sm:$0xff]  }
 0x1ef   :  { %6037 = vmatpush3.bf16.msra.mxu0 %v6913_v59  ;;  %v6958_v59 = vld [vmem:[%s9157_s1 + $0xda0] ss:$12 sps:$4 sm:$0xff]  }
 0x1f0   :  { %6059 = vmatpush3.bf16.msra.mxu1 %v6914_v3  ;;  %6038 = vmatprep.subr.bf16.mxu0 %v6915_v5  ;;  %v6959_v3 = vld [vmem:[%s9157_s1 + $0xcc8] ss:$12 sps:$4 sm:$0xff]  }
 0x1f1   :  { %6060 = vmatprep.subr.bf16.mxu1 %v6916_v9  ;;  %v6960_v5 = vld [vmem:[%s9157_s1 + $0xe48] ss:$12 sps:$4 sm:$0xff]  }
 0x1f2   :  { %v6961_v9 = vld [vmem:[%s9157_s1 + $0xc08] ss:$12 sps:$4 sm:$0xff]  }
 0x1f3   :  { %6039 = vmatpush3.bf16.msra.mxu0 %v6917_v10  ;;  %v6962_v10 = vld [vmem:[%s9157_s1 + $0xd88] ss:$12 sps:$4 sm:$0xff]  }
 0x1f4   :  { %6061 = vmatpush3.bf16.msra.mxu1 %v6918_v14  ;;  %6040 = vmatprep.subr.bf16.mxu0 %v6919_v58  ;;  %v6963_v14 = vld [vmem:[%s9157_s1 + $0x1070] ss:$12 sps:$4 sm:$0xff]  }
 0x1f5   :  { %6062 = vmatprep.subr.bf16.mxu1 %v6920_v15  ;;  %v6964_v58 = vld [vmem:[%s9157_s1 + $0x11f0] ss:$12 sps:$4 sm:$0xff]  }
 0x1f6   :  { %v6965_v15 = vld [vmem:[%s9157_s1 + $0xfb0] ss:$12 sps:$4 sm:$0xff]  }
 0x1f7   :  { %6041 = vmatpush3.bf16.msra.mxu0 %v6921_v26  ;;  %v6966_v26 = vld [vmem:[%s9157_s1 + $0x1130] ss:$12 sps:$4 sm:$0xff]  }
 0x1f8   :  { %6063 = vmatpush3.bf16.msra.mxu1 %v6922_v6  ;;  %6042 = vmatprep.subr.bf16.mxu0 %v6923_v16  ;;  %v6967_v6 = vld [vmem:[%s9157_s1 + $0x1058] ss:$12 sps:$4 sm:$0xff]  }
 0x1f9   :  { %6064 = vmatprep.subr.bf16.mxu1 %v6924_v20  ;;  %v6968_v16 = vld [vmem:[%s9157_s1 + $0x11d8] ss:$12 sps:$4 sm:$0xff]  }
 0x1fa   :  { %v6969_v20 = vld [vmem:[%s9157_s1 + $0xf98] ss:$12 sps:$4 sm:$0xff]  }
 0x1fb   :  { %6043 = vmatpush3.bf16.msra.mxu0 %v6925_v22  ;;  %v6970_v22 = vld [vmem:[%s9157_s1 + $0x1118] ss:$12 sps:$4 sm:$0xff]  }
 0x1fc   :  { %6065 = vmatpush3.bf16.msra.mxu1 %v6926_v25  ;;  %6044 = vmatprep.subr.bf16.mxu0 %v6927_v28  ;;  %v6971_v25 = vld [vmem:[%s9157_s1 + $0x1040] ss:$12 sps:$4 sm:$0xff]  }
 0x1fd   :  { %6066 = vmatprep.subr.bf16.mxu1 %v6928_v29  ;;  %v6974_v28 = vld [vmem:[%s9157_s1 + $0x1100] ss:$12 sps:$4 sm:$0xff]   ;;  %v6975_v29 = vld [vmem:[%s9157_s1 + $0x1028] ss:$12 sps:$4 sm:$0xff]  }
 0x1ff   :  { %6045 = vmatpush3.bf16.msra.mxu0 %v6929_v38  ;;  %v6978_v38 = vld [vmem:[%s9157_s1 + $0x10e8] ss:$12 sps:$4 sm:$0xff]  }
 0x200   :  { %6067 = vmatpush3.bf16.msra.mxu1 %v6930_v41  ;;  %6074 = vmatprep.subr.bf16.mxu0 %v6931_v42  ;;  %v6979_v41 = vld [vmem:[%s9157_s1 + $0x1010] ss:$12 sps:$4 sm:$0xff]  }
 0x201   :  { %6096 = vmatprep.subr.bf16.mxu1 %v6932_v30  ;;  %v6980_v42 = vld [vmem:[%s9157_s1 + $0x1190] ss:$12 sps:$4 sm:$0xff]  }
 0x202   :  { %v4412_v17 = vpop.f32.mrf.mxu0  ;;  %4815 = vmatmul.mubr.bf16.vlgmr.msra.gmra.mxu0 %v7931_v12  ;;  %v6939_v12 = vld [vmem:[%s9157_s1 + $0xd40] ss:$12 sps:$4 sm:$0xff]   ;;  %v6981_v30 = vld [vmem:[%s9157_s1 + $0xf50] ss:$12 sps:$4 sm:$0xff]  }
 0x203   :  { %v4453_v23 = vpop.f32.mrf.mxu1  ;;  %4855 = vmatmul.mubr.bf16.vlgmr.msra.gmra.mxu1 %v7947_v39  ;;  %v4413_v31 = vadd.f32 %v4412_v17, %v8618_v37  ;;  %6075 = vmatpush3.bf16.msra.mxu0 %v6933_v13  ;;  %v6940_v39 = vld [vmem:[%s9157_s1 + $0xec0] ss:$12 sps:$4 sm:$0xff]   ;;  %v6982_v13 = vld [vmem:[%s9157_s1 + $0x10d0] ss:$12 sps:$4 sm:$0xff]   ;;  %v6986_v17 = vld [vmem:[%s9157_s1 + $0x10b8] ss:$12 sps:$4 sm:$0xff]  }
 0x204   :  { %6097 = vmatpush3.bf16.msra.mxu1 %v6934_v18  ;;  %v4414_v40 = vpop.f32.mrf.mxu0  ;;  %6076 = vmatprep.subr.bf16.mxu0 %v6935_v33  ;;  %v6983_v18 = vld [vmem:[%s9157_s1 + $0xff8] ss:$12 sps:$4 sm:$0xff]  }
 0x205   :  { %v4455_v44 = vpop.f32.mrf.mxu1  ;;  %6098 = vmatprep.subr.bf16.mxu1 %v6936_v34  ;;  %v8824_v37 = vadd.f32 %v4453_v23, %v4413_v31  ;;  %v4415_v45 = vadd.f32 %v4414_v40, %v8623_v24  ;;  %4894 = vmatprep.mubr.bf16.mxu0 %v7943_v19  ;;  %v6943_v19 = vld [vmem:[%s9157_s1 + $0xd28] ss:$12 sps:$4 sm:$0xff]   ;;  %v6984_v33 = vld [vmem:[%s9157_s1 + $0x1178] ss:$12 sps:$4 sm:$0xff]   ;;  %v6987_v23 = vld [vmem:[%s9157_s1 + $0xfe0] ss:$12 sps:$4 sm:$0xff]  }
 0x206   :  { %4934 = vmatprep.mubr.bf16.mxu1 %v7966_v27  ;;  %v4416_v46 = vpop.f32.mrf.mxu0  ;;  %v6944_v27 = vld [vmem:[%s9157_s1 + $0xea8] ss:$12 sps:$4 sm:$0xff]   ;;  %v6985_v34 = vld [vmem:[%s9157_s1 + $0xf38] ss:$12 sps:$4 sm:$0xff]   ;;  %v6988_v31 = vld [vmem:[%s9157_s1 + $0x1160] ss:$12 sps:$4 sm:$0xff]  }
 0x207   :  { %v4457_v47 = vpop.f32.mrf.mxu1  ;;  %v8829_v60 = vadd.f32 %v4455_v44, %v4415_v45  ;;  %6077 = vmatpush3.bf16.msra.mxu0 %v6937_v36  ;;  %v6989_v36 = vld [vmem:[%s9157_s1 + $0xf20] ss:$12 sps:$4 sm:$0xff]   ;;  %v6991_v40 = vld [vmem:[%s9157_s1 + $0xfc8] ss:$12 sps:$4 sm:$0xff]  }
 0x208   :  { %6099 = vmatpush3.bf16.msra.mxu1 %v6938_v32  ;;  %v4417_v51 = vpop.f32.mrf.mxu0  ;;  %6078 = vmatprep.subr.bf16.mxu0 %v6939_v12  ;;  %v6990_v32 = vld [vmem:[%s9157_s1 + $0x10a0] ss:$12 sps:$4 sm:$0xff]   ;;  %v6992_v44 = vld [vmem:[%s9157_s1 + $0x1148] ss:$12 sps:$4 sm:$0xff]  }
 0x209   :  { %v4458_v24 = vpop.f32.mrf.mxu1  ;;  %6100 = vmatprep.subr.bf16.mxu1 %v6940_v39  ;;  %v6993_v12 = vld [vmem:[%s9157_s1 + $0xf08] ss:$12 sps:$4 sm:$0xff]  }
 0x20a   :  { %v6994_v39 = vld [vmem:[%s9157_s1 + $0x1088] ss:$12 sps:$4 sm:$0xff]  }
 0x20b   :  { %6079 = vmatpush3.bf16.msra.mxu0 %v6941_v0 }
 0x20c   :  { %6101 = vmatpush3.bf16.msra.mxu1 %v6942_v50  ;;  %6080 = vmatprep.subr.bf16.mxu0 %v6943_v19 }
 0x20d   :  { %6102 = vmatprep.subr.bf16.mxu1 %v6944_v27 }
 0x20f   :  { %6081 = vmatpush3.bf16.msra.mxu0 %v6945_v52 }
 0x210   :  { %6103 = vmatpush3.bf16.msra.mxu1 %v6946_v35  ;;  %6082 = vmatprep.subr.bf16.mxu0 %v6947_v55 }
 0x211   :  { %6104 = vmatprep.subr.bf16.mxu1 %v6948_v56 }
 0x213   :  { %6083 = vmatpush3.bf16.msra.mxu0 %v6949_v57 }
 0x214   :  { %6105 = vmatpush3.bf16.msra.mxu1 %v6950_v63  ;;  %6084 = vmatprep.subr.bf16.mxu0 %v6951_v61 }
 0x215   :  { %6106 = vmatprep.subr.bf16.mxu1 %v6952_v62 }
 0x217   :  { %6085 = vmatpush3.bf16.msra.mxu0 %v6953_v48 }
 0x218   :  { %6107 = vmatpush3.bf16.msra.mxu1 %v6954_v54  ;;  %6086 = vmatprep.subr.bf16.mxu0 %v6955_v1 }
 0x219   :  { %6108 = vmatprep.subr.bf16.mxu1 %v6956_v2  ;;  %v5117_v2 = vld [vmem:[%s9159_s3 + $0xf8] sm:$0xff] }
 0x21b   :  { %6087 = vmatpush3.bf16.msra.mxu0 %v6957_v53 }
 0x21c   :  { %6109 = vmatpush3.bf16.msra.mxu1 %v6958_v59  ;;  %6088 = vmatprep.subr.bf16.mxu0 %v6959_v3  ;;  %v5101_v3 = vld [vmem:[%s9159_s3 + $0x78] sm:$0xff] }
 0x21d   :  { %6110 = vmatprep.subr.bf16.mxu1 %v6960_v5  ;;  %v5116_v5 = vld [vmem:[%s9159_s3 + $0xf0] sm:$0xff] }
 0x21f   :  { %6089 = vmatpush3.bf16.msra.mxu0 %v6961_v9 }
 0x220   :  { %6111 = vmatpush3.bf16.msra.mxu1 %v6962_v10  ;;  %6118 = vmatprep.subr.bf16.mxu0 %v6963_v14  ;;  %v5100_v14 = vld [vmem:[%s9159_s3 + $0x70] sm:$0xff] }
 0x221   :  { %6140 = vmatprep.subr.bf16.mxu1 %v6964_v58 }
 0x222   :  { %4895 = vmatmul.mubr.bf16.vlgmr.msra.gmra.mxu0 %v8156_v7  ;;  %v6972_v7 = vld [vmem:[%s9157_s1 + $0x11c0] ss:$12 sps:$4 sm:$0xff]  }
 0x223   :  { %4935 = vmatmul.mubr.bf16.vlgmr.msra.gmra.mxu1 %v8172_v4  ;;  %6119 = vmatpush3.bf16.msra.mxu0 %v6965_v15  ;;  %v6973_v4 = vld [vmem:[%s9157_s1 + $0xf80] ss:$12 sps:$4 sm:$0xff]  }
 0x224   :  { %6141 = vmatpush3.bf16.msra.mxu1 %v6966_v26  ;;  %6120 = vmatprep.subr.bf16.mxu0 %v6967_v6  ;;  %v5115_v26 = vld [vmem:[%s9159_s3 + $0xe8] sm:$0xff] }
 0x225   :  { %6142 = vmatprep.subr.bf16.mxu1 %v6968_v16  ;;  %4974 = vmatprep.mubr.bf16.mxu0 %v8168_v11  ;;  %v6976_v11 = vld [vmem:[%s9157_s1 + $0x11a8] ss:$12 sps:$4 sm:$0xff]  }
 0x226   :  { %5014 = vmatprep.mubr.bf16.mxu1 %v8188_v21  ;;  %v6977_v21 = vld [vmem:[%s9157_s1 + $0xf68] ss:$12 sps:$4 sm:$0xff]  }
 0x227   :  { %6121 = vmatpush3.bf16.msra.mxu0 %v6969_v20  ;;  %v5895_v20 = vld [vmem:[%s9160_s4] ss:$0 sm:$0xff] }
 0x228   :  { %6143 = vmatpush3.bf16.msra.mxu1 %v6970_v22  ;;  %6122 = vmatprep.subr.bf16.mxu0 %v6971_v25  ;;  %v5099_v22 = vld [vmem:[%s9159_s3 + $0x68] sm:$0xff] }
 0x229   :  { %6144 = vmatprep.subr.bf16.mxu1 %v6972_v7  ;;  %v7022_v7 = vmov 0.0  }
 0x22a   :  { %31 = vst.msk [vmem:[#allocation2] sm:$0x3f] %vm9022_vm4, %v7022_v7 }
 0x22b   :  { %6123 = vmatpush3.bf16.msra.mxu0 %v6973_v4  ;;  %v5114_v4 = vld [vmem:[%s9159_s3 + $0xe0] sm:$0xff] }
 0x22c   :  { %6145 = vmatpush3.bf16.msra.mxu1 %v6974_v28  ;;  %6124 = vmatprep.subr.bf16.mxu0 %v6975_v29 }
 0x22d   :  { %6146 = vmatprep.subr.bf16.mxu1 %v6976_v11  ;;  %v5098_v11 = vld [vmem:[%s9159_s3 + $0x60] sm:$0xff] }
 0x22f   :  { %6125 = vmatpush3.bf16.msra.mxu0 %v6977_v21 }
 0x230   :  { %6147 = vmatpush3.bf16.msra.mxu1 %v6978_v38  ;;  %6126 = vmatprep.subr.bf16.mxu0 %v6979_v41  ;;  %v5113_v38 = vld [vmem:[%s9159_s3 + $0xd8] sm:$0xff] }
 0x231   :  { %6148 = vmatprep.subr.bf16.mxu1 %v6980_v42  ;;  %v5097_v41 = vld [vmem:[%s9159_s3 + $0x58] sm:$0xff]  ;;  %v5112_v42 = vld [vmem:[%s9159_s3 + $0xd0] sm:$0xff] }
 0x233   :  { %6127 = vmatpush3.bf16.msra.mxu0 %v6981_v30  ;;  %v5096_v30 = vld [vmem:[%s9159_s3 + $0x50] sm:$0xff] }
 0x234   :  { %6149 = vmatpush3.bf16.msra.mxu1 %v6982_v13  ;;  %6128 = vmatprep.subr.bf16.mxu0 %v6983_v18  ;;  %v5111_v13 = vld [vmem:[%s9159_s3 + $0xc8] sm:$0xff] }
 0x235   :  { %6150 = vmatprep.subr.bf16.mxu1 %v6984_v33  ;;  %v5095_v18 = vld [vmem:[%s9159_s3 + $0x48] sm:$0xff]  ;;  %v5110_v33 = vld [vmem:[%s9159_s3 + $0xc0] sm:$0xff] }
 0x237   :  { %6129 = vmatpush3.bf16.msra.mxu0 %v6985_v34  ;;  %v5094_v34 = vld [vmem:[%s9159_s3 + $0x40] sm:$0xff] }
 0x238   :  { %6151 = vmatpush3.bf16.msra.mxu1 %v6986_v17  ;;  %6130 = vmatprep.subr.bf16.mxu0 %v6987_v23  ;;  %v5109_v17 = vld [vmem:[%s9159_s3 + $0xb8] sm:$0xff] }
 0x239   :  { %6152 = vmatprep.subr.bf16.mxu1 %v6988_v31  ;;  %v5093_v23 = vld [vmem:[%s9159_s3 + $0x38] sm:$0xff]  ;;  %v5108_v31 = vld [vmem:[%s9159_s3 + $0xb0] sm:$0xff] }
 0x23b   :  { %6131 = vmatpush3.bf16.msra.mxu0 %v6989_v36  ;;  %v5092_v36 = vld [vmem:[%s9159_s3 + $0x30] sm:$0xff] }
 0x23c   :  { %6153 = vmatpush3.bf16.msra.mxu1 %v6990_v32  ;;  %6132 = vmatprep.subr.bf16.mxu0 %v6991_v40  ;;  %v5123_v32 = vld [vmem:[%s9159_s3 + $0x128] sm:$0xf] }
 0x23d   :  { %6154 = vmatprep.subr.bf16.mxu1 %v6992_v44  ;;  %v5107_v40 = vld [vmem:[%s9159_s3 + $0xa8] sm:$0xff]  ;;  %v5122_v44 = vld [vmem:[%s9159_s3 + $0x120] sm:$0xff] }
 0x23f   :  { %6133 = vmatpush3.bf16.msra.mxu0 %v6993_v12  ;;  %v5091_v12 = vld [vmem:[%s9159_s3 + $0x28] sm:$0xff] }
 0x240   :  { %6155 = vmatpush3.bf16.msra.mxu1 %v6994_v39  ;;  %6162 = vmatprep.subr.mxu0 %v5117_v2  ;;  %v5121_v39 = vld [vmem:[%s9159_s3 + $0x118] sm:$0xff] }
 0x241   :  { %6204 = vmatprep.subr.mxu1 %v7022_v7 }
 0x242   :  { %v4494_v45 = vpop.f32.mrf.mxu0  ;;  %4975 = vmatmul.mubr.bf16.vlgmr.msra.gmra.mxu0 %v8373_v8 }
 0x243   :  { %v4535_v46 = vpop.f32.mrf.mxu1  ;;  %5015 = vmatmul.mubr.bf16.vlgmr.msra.gmra.mxu1 %v8386_v49  ;;  %v4495_v47 = vadd.f32 %v4494_v45, %v8824_v37  ;;  %6163 = vmatpush3.msra.mxu0 %v5101_v3  ;;  %v5106_v45 = vld [vmem:[%s9159_s3 + $0xa0] sm:$0xff] }
 0x244   :  { %v4496_v0 = vpop.f32.mrf.mxu0  ;;  %6164 = vmatprep.subr.mxu0 %v5116_v5  ;;  %6216 = vmatprep.mubr.msk.f32.mxu1 %vm7023_vm6, %v7022_v7 }
 0x245   :  { %v4537_v50 = vpop.f32.mrf.mxu1  ;;  %v9000_v51 = vadd.f32 %v4535_v46, %v4495_v47  ;;  %v4497_v24 = vadd.f32 %v4496_v0, %v8829_v60  ;;  %6165 = vmatpush3.msra.mxu0 %v5100_v14  ;;  %6205 = vmatpush3.msk.msra.mxu1 %vm5153_vm5, %v5123_v32  ;;  %v5090_v46 = vld [vmem:[%s9159_s3 + $0x20] sm:$0xff]  ;;  %v5120_v47 = vld [vmem:[%s9159_s3 + $0x110] sm:$0xff]  ;;  %v5105_v0 = vld [vmem:[%s9159_s3 + $0x98] sm:$0xff] }
 0x246   :  { %v4498_v19 = vpop.f32.mrf.mxu0  ;;  %6166 = vmatprep.subr.mxu0 %v5115_v26  ;;  %6206 = vmatprep.subr.mxu1 %v7022_v7 }
 0x247   :  { %v4539_v27 = vpop.f32.mrf.mxu1  ;;  %v9003_v52 = vadd.f32 %v4537_v50, %v4497_v24  ;;  %6167 = vmatpush3.msra.mxu0 %v5099_v22  ;;  %6207 = vmatpush3.msra.mxu1 %v5122_v44  ;;  %v5089_v50 = vld [vmem:[%s9159_s3 + $0x18] sm:$0xff]  ;;  %v5119_v24 = vld [vmem:[%s9159_s3 + $0x108] sm:$0xff]  ;;  %v5104_v19 = vld [vmem:[%s9159_s3 + $0x90] sm:$0xff] }
 0x248   :  { %v4499_v35 = vpop.f32.mrf.mxu0  ;;  %6168 = vmatprep.subr.mxu0 %v5114_v4  ;;  %6208 = vmatprep.subr.mxu1 %v7022_v7  ;;  %v5088_v27 = vld [vmem:[%s9159_s3 + $0x10] sm:$0xff] }
 0x249   :  { %v4540_v55 = vpop.f32.mrf.mxu1  ;;  %v5025_v56 = vcombine.low %v9000_v51, %v9003_v52  ;;  %6169 = vmatpush3.msra.mxu0 %v5098_v11  ;;  %6209 = vmatpush3.msra.mxu1 %v5121_v39  ;;  %v5118_v35 = vld [vmem:[%s9159_s3 + $0x100] sm:$0xff]  ;;  %v5061_v39 = vsub.s32 1, %v7173_v43 }
 0x24a   :  { %6170 = vmatprep.subr.mxu0 %v5113_v38  ;;  %6210 = vmatprep.subr.mxu1 %v7022_v7  ;;  %v5103_v55 = vld [vmem:[%s9159_s3 + $0x88] sm:$0xff] }
 0x24b   :  { %6171 = vmatpush3.msra.mxu0 %v5097_v41  ;;  %6211 = vmatpush3.msra.mxu1 %v5120_v47  ;;  %v5053_v47 = vld [vmem:[%s9158_s2] sm:$0x7] }
 0x24c   :  { %6172 = vmatprep.subr.mxu0 %v5112_v42  ;;  %6212 = vmatprep.subr.mxu1 %v7022_v7 }
 0x24d   :  { %6173 = vmatpush3.msra.mxu0 %v5096_v30  ;;  %6213 = vmatpush3.msra.mxu1 %v5119_v24  ;;  %v7024_v30 = vmov 1983009808  }
 0x24e   :  { %6174 = vmatprep.subr.mxu0 %v5111_v13  ;;  %6214 = vmatprep.subr.mxu1 %v7022_v7  ;;  %v5027_v13 = vunpack.c.l.s4 %v7024_v30 }
 0x24f   :  { %6175 = vmatpush3.msra.mxu0 %v5095_v18  ;;  %6215 = vmatpush3.msra.mxu1 %v5118_v35 }
 0x250   :  { %6176 = vmatprep.subr.mxu0 %v5110_v33 }
 0x251   :  { %6177 = vmatpush3.msra.mxu0 %v5094_v34 }
 0x252   :  { %6178 = vmatprep.subr.mxu0 %v5109_v17 }
 0x253   :  { %6179 = vmatpush3.msra.mxu0 %v5093_v23 }
 0x254   :  { %6180 = vmatprep.subr.mxu0 %v5108_v31  ;;  %v5028_v31 = vunpack.c.0.s8 %v5027_v13 }
 0x255   :  { %6181 = vmatpush3.msra.mxu0 %v5092_v36 }
 0x256   :  { %6182 = vmatprep.subr.mxu0 %v5107_v40 }
 0x257   :  { %6183 = vmatpush3.msra.mxu0 %v5091_v12  ;;  %v5057_v12 = vsub.s32 0, %v7173_v43 }
 0x258   :  { %6184 = vmatprep.subr.mxu0 %v5106_v45 }
 0x259   :  { %6185 = vmatpush3.msra.mxu0 %v5090_v46 }
 0x25a   :  { %6186 = vmatprep.subr.mxu0 %v5105_v0  ;;  %v5031_v0 = vsub.s32 %v5028_v31, %v7173_v43 }
 0x25b   :  { %6187 = vmatpush3.msra.mxu0 %v5089_v50 }
 0x25c   :  { %6188 = vmatprep.subr.mxu0 %v5104_v19 }
 0x25d   :  { %6189 = vmatpush3.msra.mxu0 %v5088_v27 }
 0x25e   :  { %6190 = vmatprep.subr.mxu0 %v5103_v55  ;;  %v5058_v55 = vrot.slane %v5053_v47, %v5057_v12 }
 0x262   :  { %v5914_v8 = vpop.f32.mrf.mxu0 }
 0x263   :  { %v5936_v57 = vpop.f32.mrf.mxu1 }
 0x264   :  { %v5915_v49 = vpop.f32.mrf.mxu0 }
 0x265   :  { %v5937_v63 = vpop.f32.mrf.mxu1  ;;  %v5916_v37 = vadd.f32 %v5915_v49, %v5914_v8  ;;  %v5087_v8 = vld [vmem:[%s9159_s3 + $0x8] sm:$0xff]  ;;  %v5086_v49 = vld [vmem:[%s9159_s3] sm:$0xff] }
 0x266   :  { %v5938_v61 = vadd.f32 %v5937_v63, %v5936_v57  ;;  %v5917_v62 = vpop.f32.mrf.mxu0  ;;  %v5102_v57 = vld [vmem:[%s9159_s3 + $0x80] sm:$0xff]  ;;  %6191 = vmatpush3.msra.mxu0 %v5087_v8  ;;  %v5062_v8 = vrot.slane %v5053_v47, %v5061_v39 }
 0x267   :  { %v5939_v48 = vpop.f32.mrf.mxu1  ;;  %6192 = vmatprep.subr.mxu0 %v5102_v57  ;;  %v5065_v57 = vsub.s32 2, %v7173_v43 }
 0x268   :  { %v4617_v54 = vadd.f32 %v5938_v61, %v5916_v37  ;;  %v5918_v1 = vpop.f32.mrf.mxu0  ;;  %6193 = vmatpush3.msra.mxu0 %v5086_v49  ;;  %v5032_v49 = vrot.slane %v5025_v56, %v5031_v0 }
 0x269   :  { %v5940_v60 = vpop.f32.mrf.mxu1 }
 0x282   :  { %v5958_v53 = vpop.f32.mrf.mxu0 }
 0x283   :  { %v5980_v59 = vpop.f32.mrf.mxu1 }
 0x284   :  { %v5959_v9 = vpop.f32.mrf.mxu0 }
 0x285   :  { %v5981_v10 = vpop.f32.mrf.mxu1  ;;  %v5960_v58 = vadd.f32 %v5959_v9, %v5958_v53 }
 0x286   :  { %v5982_v15 = vadd.f32 %v5981_v10, %v5980_v59  ;;  %v5961_v6 = vpop.f32.mrf.mxu0 }
 0x287   :  { %v5983_v16 = vpop.f32.mrf.mxu1  ;;  %v4657_v25 = vadd.f32 %v5960_v58, %v4617_v54 }
 0x288   :  { %v5962_v28 = vpop.f32.mrf.mxu0 }
 0x289   :  { %v5984_v29 = vpop.f32.mrf.mxu1  ;;  %v9039_v21 = vadd.f32 %v5982_v15, %v4657_v25 }
 0x2a2   :  { %v6002_v63 = vpop.f32.mrf.mxu0 }
 0x2a3   :  { %v6024_v37 = vpop.f32.mrf.mxu1 }
 0x2a4   :  { %v6003_v61 = vpop.f32.mrf.mxu0 }
 0x2a5   :  { %v6025_v62 = vpop.f32.mrf.mxu1  ;;  %v6004_v48 = vadd.f32 %v6003_v61, %v6002_v63 }
 0x2a6   :  { %v6026_v54 = vadd.f32 %v6025_v62, %v6024_v37  ;;  %v6005_v1 = vpop.f32.mrf.mxu0  ;;  %v32_v37 = vld [vmem:[#allocation2] sm:$0x3f]  ;;  %v5066_v62 = vrot.slane %v5053_v47, %v5065_v57 }
 0x2a7   :  { %v6027_v60 = vpop.f32.mrf.mxu1  ;;  %v4737_v2 = vadd.f32 %v6004_v48, %v9039_v21  ;;  %v5067_v48 = vcombine.low %v5058_v55, %v5062_v8 }
 0x2a8   :  { %v6006_v53 = vpop.f32.mrf.mxu0  ;;  %v5081_v60 = vrot.slane %v5066_v62, %v5031_v0 }
 0x2a9   :  { %v6028_v59 = vpop.f32.mrf.mxu1  ;;  %v4777_v3 = vadd.f32 %v6026_v54, %v4737_v2  ;;  %v5074_v1 = vrot.slane %v5067_v48, %v5031_v0 }
 0x2ab   :  { %v5082_v2 = vcombine.low %v5074_v1, %v5081_v60 }
 0x2c2   :  { %v6046_v5 = vpop.f32.mrf.mxu0 }
 0x2c3   :  { %v6068_v9 = vpop.f32.mrf.mxu1 }
 0x2c4   :  { %v6047_v10 = vpop.f32.mrf.mxu0 }
 0x2c5   :  { %v6069_v14 = vpop.f32.mrf.mxu1  ;;  %v6048_v21 = vadd.f32 %v6047_v10, %v6046_v5 }
 0x2c6   :  { %v6049_v58 = vpop.f32.mrf.mxu0  ;;  %v6070_v41 = vadd.f32 %v6069_v14, %v6068_v9 }
 0x2c7   :  { %v6071_v15 = vpop.f32.mrf.mxu1  ;;  %v4817_v38 = vadd.f32 %v6048_v21, %v4777_v3 }
 0x2c8   :  { %v6050_v26 = vpop.f32.mrf.mxu0 }
 0x2c9   :  { %v6072_v6 = vpop.f32.mrf.mxu1  ;;  %v4857_v18 = vadd.f32 %v6070_v41, %v4817_v38 }
 0x2e2   :  { %v6090_v16 = vpop.f32.mrf.mxu0 }
 0x2e3   :  { %v6112_v22 = vpop.f32.mrf.mxu1 }
 0x2e4   :  { %v6091_v25 = vpop.f32.mrf.mxu0 }
 0x2e5   :  { %v6113_v7 = vpop.f32.mrf.mxu1  ;;  %v6092_v42 = vadd.f32 %v6091_v25, %v6090_v16 }
 0x2e6   :  { %v6093_v4 = vpop.f32.mrf.mxu0  ;;  %v6114_v34 = vadd.f32 %v6113_v7, %v6112_v22 }
 0x2e7   :  { %v6115_v28 = vpop.f32.mrf.mxu1  ;;  %v4897_v33 = vadd.f32 %v6092_v42, %v4857_v18 }
 0x2e8   :  { %v6094_v29 = vpop.f32.mrf.mxu0 }
 0x2e9   :  { %v6116_v11 = vpop.f32.mrf.mxu1  ;;  %v4937_v40 = vadd.f32 %v6114_v34, %v4897_v33 }
 0x302   :  { %v6134_v17 = vpop.f32.mrf.mxu0 }
 0x303   :  { %v6156_v23 = vpop.f32.mrf.mxu1 }
 0x304   :  { %v6135_v36 = vpop.f32.mrf.mxu0 }
 0x305   :  { %v6157_v32 = vpop.f32.mrf.mxu1  ;;  %v6136_v44 = vadd.f32 %v6135_v36, %v6134_v17 }
 0x306   :  { %v6137_v45 = vpop.f32.mrf.mxu0  ;;  %v6158_v24 = vadd.f32 %v6157_v32, %v6156_v23 }
 0x307   :  { %v6159_v46 = vpop.f32.mrf.mxu1  ;;  %v4977_v50 = vadd.f32 %v6136_v44, %v4937_v40 }
 0x308   :  { %v6138_v19 = vpop.f32.mrf.mxu0 }
 0x309   :  { %v6160_v27 = vpop.f32.mrf.mxu1  ;;  %v5017_v35 = vadd.f32 %v6158_v24, %v4977_v50 }
 0x30b   :  { %v5039_v63 = vrot.slane %v5017_v35, %v5031_v0 }
 0x30d   :  { %v5040_v61 = vcombine.low %v5032_v49, %v5039_v63 }
 0x30f   :  { %v5042_v54 = vadd.f32 %v5040_v61, %v32_v37 }
 0x311   :  { %5048 = vst.msk [vmem:[#allocation2] sm:$0x3f] %vm9022_vm4, %v5042_v54 }
 0x318   :  { %v5052_v53 = vld [vmem:[#allocation2] sm:$0x3f] }
 0x319   :  { %v5084_v59 = vadd.f32 %v5082_v2, %v5052_v53 }
 0x31b   :  { %v5085_v3 = vmax.f32 %v5084_v59, 0.0 }
 0x31d   :  { %v5132_v43 = vcombine.high %v5085_v3, %v5085_v3  ;;  %v5139_v5 = vrot.slane %v5085_v3, %v5031_v0 }
 0x31f   :  { %v5147_v51 = vcombine.high %v5139_v5, %v5139_v5  ;;  %v5146_v52 = vrot.slane %v5132_v43, %v5031_v0 }
 0x321   :  { %5221 = vmatprep.mubr.f32.mxu0 %v5147_v51  ;;  %6217 = vmatmul.mubr.msk.f32.vlgmr.msra.gmra.mxu1 %vm5150_vm7, %v5146_v52 }
 0x322   :  { %5222 = vmatmul.mubr.f32.vlgmr.msra.gmra.mxu0 %v5139_v5 }
 0x3e1   :  { %v5293_v56 = vpop.f32.mrf.mxu1 }
 0x3e2   :  { %v6194_v9 = vpop.f32.mrf.mxu0 }
 0x3e3   :  { %v6218_v10 = vpop.f32.mrf.mxu1 }
 0x3e4   :  { %v6195_v14 = vpop.f32.mrf.mxu0 }
 0x3e5   :  { %v6196_v58 = vadd.f32 %v6195_v14, %v6194_v9 }
 0x3e7   :  { %v5224_v15 = vadd.f32 %v6196_v58, %v5895_v20 }
 0x3e9   :  { %v5294_v26 = vadd.f32 %v5293_v56, %v5224_v15 }
 0x3eb   :  { %v5297_v6 = vsub.f32 0.0, %v5294_v26 }
 0x3ed   :  { %v5298_v16 = vmul.f32 1.442695, %v5297_v6 }
 0x3ef   :  { %6995 = vpow2.f32 %v5298_v16 }
 0x3fc   :  { %v6996_v22 = vpop.eup %6995 }
 0x3fd   :  { %v5300_v25 = vadd.f32 1.0, %v6996_v22 }
 0x3ff   :  { %6997 = vrcp.f32 %v5300_v25 }
 0x40c   :  { %v6998_v7 = vpop.eup %6997 }
 0x40d   :  { %5304 = vst.msk [vmem:[#allocation3] sm:$0x3] %vm5303_vm8, %v6998_v7 }
 0x40e   :  { %7010 = shalt.err (!%p7007_p4)
}
 0x40f   :  { %5314 = dma.vmem_to_hbm [thread:$0]  %s5312_s0, 32, %s9161_s5, [#allocation4]  }
 0x410   :  { %7019 = dma.done.wait [#allocation4], 32  }
 0x411   :  { %7020 = vsyncadd [#allocation4], 4294967264 }
 0x412   :  { %5318 = vsyncpa [#allocation4], 1 }

</bundles_post_ra>
